<compile_context>
chip_gen: v7x
topology: tpu7x:2x2x1
jax: 0.10.0
libtpu: 0.0.40
codegen_flags: <defaults>
</compile_context>

<pallas_src>
import functools
import math

import numpy as np

import jax
import jax.numpy as jnp
from jax.experimental import pallas as pl
from jax.experimental.pallas import tpu as pltpu

# ------------------------- configuration (small demo shapes) ------------------
BATCH = 2
IN_DIM = 32
HIDDEN = 32
MAX_STEPS = 2      # constructor arg (default 10) -- small for the demo
MAX_SUBGOALS = 2   # constructor arg (default 5)  -- small for the demo
LN_EPS = 1e-5
GATE = 128         # lane width of one (padded) GRU gate slot

_VMEM = pl.BlockSpec(memory_space=pltpu.MemorySpace.VMEM)


# ------------------------------ parameter packing -----------------------------
class _Packer:
    """Packs many small [rows, cols] tensors into one tall 2-D f32 buffer.

    Each tensor starts at an 8-aligned row, so the in-kernel recovery
    `ref[r:r+rows, :cols]` is a static, sublane-aligned (free) view."""

    def __init__(self, cols):
        self.cols = cols
        self.rows = 0
        self.layout = {}     # name -> (row_offset, n_rows, n_cols, is_matmul_weight)
        self.chunks = []

    def add(self, name, arr, mat):
        arr = np.asarray(arr, np.float32)
        if arr.ndim == 1:
            arr = arr[None, :]
        r, c = arr.shape
        assert c <= self.cols, (name, arr.shape, self.cols)
        pad_r = -(-r // 8) * 8
        buf = np.zeros((pad_r, self.cols), np.float32)
        buf[:r, :c] = arr
        self.layout[name] = (self.rows, r, c, mat)
        self.chunks.append(buf)
        self.rows += pad_r

    def finalize(self):
        return jnp.asarray(np.concatenate(self.chunks, axis=0)), self.layout


def _gate_pad(w, h):
    """[in, 3H] gate-stacked -> [in, 3*GATE]: gate g at lane offset g*GATE."""
    w = np.asarray(w, np.float32)
    assert h <= GATE
    out = np.zeros((w.shape[0], 3 * GATE), np.float32)
    for g in range(3):
        out[:, g * GATE:g * GATE + h] = w[:, g * h:(g + 1) * h]
    return out


def pack_params(params, in_dim, hidden):
    """Pack the natural parameter pytree into 2 VMEM buffers + static layouts."""
    H = hidden
    main = _Packer(max(in_dim, hidden))   # all "narrow" tensors
    gate = _Packer(6 * GATE)              # gate-stacked / fused wide tensors

    def add_enc(tag, p):
        main.add(tag + ".w1", p["w1"], True)
        main.add(tag + ".b1", p["b1"], False)
        main.add(tag + ".g", p["gamma"], False)
        main.add(tag + ".beta", p["beta"], False)
        main.add(tag + ".w2", p["w2"], True)
        main.add(tag + ".b2", p["b2"], False)

    sd = params["subgoal_decomposer"]
    ps = params["plan_step"]
    add_enc("se", params["state_encoder"])
    add_enc("ge", params["goal_encoder"])
    add_enc("sge", sd["goal_encoder"])
    add_enc("sgd", sd["subgoal_decoder"])
    add_enc("pse", ps["encoder"])
    add_enc("ad", params["action_decoder"])

    sp = sd["stop_predictor"]
    main.add("stop.w1", sp["w1"], True)
    main.add("stop.b1", sp["b1"], False)
    main.add("stop.w2", sp["w2"], True)
    main.add("stop.b2", sp["b2"], False)

    pc = ps["precondition_checker"]
    main.add("pre.w1b", pc["w1b"], True)
    main.add("pre.b1", pc["b1"], False)
    main.add("pre.w2", pc["w2"], True)
    main.add("pre.b2", pc["b2"], False)

    ep = ps["effect_predictor"]
    main.add("eff.b1", ep["b1"], False)
    main.add("eff.w2", ep["w2"], True)
    main.add("eff.b2", ep["b2"], False)

    su = params["success_predictor"]
    main.add("suc.w1a", su["w1a"], True)
    main.add("suc.w1b", su["w1b"], True)
    main.add("suc.b1", su["b1"], False)
    main.add("suc.w2", su["w2"], True)
    main.add("suc.b2", su["b2"], False)

    g = sd["gru"]
    gate.add("sdg.wih", _gate_pad(g["wih"], H), True)
    gate.add("sdg.whh", _gate_pad(g["whh"], H), True)
    gate.add("sdg.bih", _gate_pad(g["bih"], H), False)
    gate.add("sdg.bhh", _gate_pad(g["bhh"], H), False)

    pd = params["plan_decoder"]
    # fused [H, 6*GATE]: input-side (wih_a) gates in lanes 0:3*GATE, hidden-side
    # (whh) gates in lanes 3*GATE:6*GATE -> one dot per step for current_state.
    wcs = np.concatenate([_gate_pad(pd["wih_a"], H), _gate_pad(pd["whh"], H)], axis=1)
    gate.add("pd.wcs", wcs, True)
    gate.add("pd.wihb", _gate_pad(pd["wih_b"], H), True)
    gate.add("pd.bih", _gate_pad(pd["bih"], H), False)
    gate.add("pd.bhh", _gate_pad(pd["bhh"], H), False)

    # fused [H, 2*GATE]: precondition_checker.w1a (lanes 0:H) and
    # effect_predictor.w1 (lanes GATE:GATE+H) -> one dot for step_emb.
    stepf = np.zeros((H, 2 * GATE), np.float32)
    stepf[:, 0:H] = np.asarray(pc["w1a"], np.float32)
    stepf[:, GATE:GATE + H] = np.asarray(ep["w1"], np.float32)
    gate.add("stepf", stepf, True)

    main_buf, main_off = main.finalize()
    gate_buf, gate_off = gate.finalize()
    return main_buf, gate_buf, main_off, gate_off


# --------------------------------- the kernel ---------------------------------
def _planner_kernel(main_ref, gate_ref, init_ref, goal_ref,
                    plan_ref, states_ref, subgoals_ref, scal_ref,
                    hs_scratch, *,
                    main_off, gate_off, hidden, max_steps, max_subgoals):
    H = hidden

    # ---- recover all parameters via static aligned views (matmul weights bf16)
    W = {}
    for name, (r, nr, nc, mat) in main_off.items():
        v = main_ref[r:r + nr, :nc]
        W[name] = v.astype(jnp.bfloat16) if mat else v
    for name, (r, nr, nc, mat) in gate_off.items():
        v = gate_ref[r:r + nr, :nc]
        W[name] = v.astype(jnp.bfloat16) if mat else v

    def bdot(x, w):
        # bf16 x bf16 -> f32 accumulate: single-pass MXU on v5e/v6e/v7x.
        return jnp.dot(x.astype(jnp.bfloat16), w, preferred_element_type=jnp.float32)

    def encoder(pre, x):
        """Linear -> LayerNorm -> ReLU -> Linear (single-pass LN variance)."""
        h = bdot(x, W[pre + ".w1"]) + W[pre + ".b1"]
        mu = jnp.mean(h, axis=-1, keepdims=True)
        var = jnp.mean(h * h, axis=-1, keepdims=True) - mu * mu
        h = (h - mu) * jax.lax.rsqrt(var + LN_EPS) * W[pre + ".g"] + W[pre + ".beta"]
        h = jnp.maximum(h, 0.0)
        return bdot(h, W[pre + ".w2"]) + W[pre + ".b2"]

    def gru_combine(gi, gh, h):
        """PyTorch GRUCell gate math; gi/gh are [B, 3*GATE] gate-padded
        pre-activations (biases already folded in).  Gate slices start at lane
        offsets 0/GATE/2*GATE -> free vreg views."""
        r = jax.nn.sigmoid(gi[:, 0:H] + gh[:, 0:H])
        z = jax.nn.sigmoid(gi[:, GATE:GATE + H] + gh[:, GATE:GATE + H])
        n = jnp.tanh(gi[:, 2 * GATE:2 * GATE + H] + r * gh[:, 2 * GATE:2 * GATE + H])
        return (1.0 - z) * n + z * h

    def batch_mean(x):                        # [B, 1] -> [1, 1]
        return jnp.mean(x, axis=0, keepdims=True)

    x0 = init_ref[...]
    g0 = goal_ref[...]
    B = x0.shape[0]

    state_embedding = encoder("se", x0)
    goal_embedding = encoder("ge", g0)

    # ---- SubgoalDecomposer: GRU recurrence first, heads batched afterwards ----
    sd_goal_emb = encoder("sge", g0)
    gi_sub = bdot(sd_goal_emb, W["sdg.wih"]) + W["sdg.bih"]     # loop-invariant
    h = state_embedding
    sub_hs = []
    for i in range(max_subgoals):
        gh = bdot(h, W["sdg.whh"]) + W["sdg.bhh"]
        h = gru_combine(gi_sub, gh, h)
        sub_hs.append(h)
        hs_scratch[i * B:(i + 1) * B, :] = h

    hs = hs_scratch[0:max_subgoals * B, :]                       # [S*B, H]
    subgoal_all = encoder("sgd", hs)                             # [S*B, D]
    sh = jnp.maximum(bdot(hs, W["stop.w1"]) + W["stop.b1"], 0.0)
    stop_all = jax.nn.sigmoid(bdot(sh, W["stop.w2"]) + W["stop.b2"])   # [S*B, 1]

    # subgoals written once, batch-major: (B, S*D)
    subgoals_ref[...] = jnp.concatenate(
        [subgoal_all[i * B:(i + 1) * B, :] for i in range(max_subgoals)], axis=-1)

    # ---- hierarchical planning loops ------------------------------------------
    # TODO(synk): the reference uses data-dependent Python `break`s (variable-
    # length plan/states).  Here the break tests are on-device multiplicative
    # masks: shapes are fixed at max_subgoals*max_steps and the state simply
    # stops updating once a break fires, so final state / success match.
    actions = []
    states = [state_embedding]
    current_state = state_embedding
    subgoal_active = jnp.ones((1, 1), jnp.float32)
    for i in range(max_subgoals):
        if i > 0:
            stop_mean = batch_mean(stop_all[(i - 1) * B:i * B, :])
            subgoal_active = subgoal_active * (stop_mean <= 0.9).astype(jnp.float32)
        subgoal_embedding = sub_hs[i]
        # loop-invariant (per-subgoal) projections hoisted out of the step loop
        gi_b = bdot(subgoal_embedding, W["pd.wihb"]) + W["pd.bih"]   # [B, 3*GATE]
        suc_b = bdot(subgoal_embedding, W["suc.w1b"])                # [B, H]
        step_active = subgoal_active
        for _ in range(max_steps):
            # plan-decoder GRUCell: ONE fused dot for both input- and hidden-
            # side projections of current_state ([H, 6*GATE] weight).
            g_cs = bdot(current_state, W["pd.wcs"])                  # [B, 6*GATE]
            gi = g_cs[:, 0:3 * GATE] + gi_b
            gh = g_cs[:, 3 * GATE:6 * GATE] + W["pd.bhh"]
            decoder_state = gru_combine(gi, gh, current_state)

            action = encoder("ad", decoder_state)
            actions.append(action)

            # PlanStep (decoded_step omitted -- unused downstream).  step_emb's
            # precondition/effect first layers share ONE fused dot.
            step_emb = encoder("pse", action)
            tf = bdot(step_emb, W["stepf"])                          # [B, 2*GATE]
            ph = jnp.maximum(
                tf[:, 0:H] + bdot(current_state, W["pre.w1b"]) + W["pre.b1"], 0.0)
            precond = jax.nn.sigmoid(bdot(ph, W["pre.w2"]) + W["pre.b2"])  # [B, 1]
            eh = jnp.maximum(tf[:, GATE:GATE + H] + W["eff.b1"], 0.0)
            effects = bdot(eh, W["eff.w2"]) + W["eff.b2"]            # [B, H]

            new_state = current_state + effects * precond
            current_state = (step_active * new_state
                             + (1.0 - step_active) * current_state)
            states.append(current_state)

            sh2 = jnp.maximum(bdot(current_state, W["suc.w1a"]) + suc_b
                              + W["suc.b1"], 0.0)
            success = jax.nn.sigmoid(bdot(sh2, W["suc.w2"]) + W["suc.b2"])
            step_active = step_active * (batch_mean(success) <= 0.9).astype(jnp.float32)

    # ---- final success head ----------------------------------------------------
    fh = jnp.maximum(bdot(current_state, W["suc.w1a"])
                     + bdot(goal_embedding, W["suc.w1b"]) + W["suc.b1"], 0.0)
    overall = jax.nn.sigmoid(bdot(fh, W["suc.w2"]) + W["suc.b2"])     # [B, 1]

    # ---- consolidated, lane-dense, batch-major output writes (one store each) --
    plan_ref[...] = jnp.concatenate(actions, axis=-1)       # (B, T*D)
    states_ref[...] = jnp.concatenate(states, axis=-1)      # (B, (1+T)*H)
    scal_ref[...] = jnp.concatenate(
        [stop_all[i * B:(i + 1) * B, :] for i in range(max_subgoals)] + [overall],
        axis=-1)                                             # (B, S+1)


# ------------------------------ parameter init --------------------------------
def _uniform(key, shape, bound):
    return jax.random.uniform(key, shape, jnp.float32, -bound, bound)


def _linear(key, fan_in, fan_out):
    k1, k2 = jax.random.split(key)
    b = 1.0 / math.sqrt(fan_in)
    return _uniform(k1, (fan_in, fan_out), b), _uniform(k2, (1, fan_out), b)


def _enc_params(key, d_in, d_hid, d_out):
    k1, k2 = jax.random.split(key)
    w1, b1 = _linear(k1, d_in, d_hid)
    w2, b2 = _linear(k2, d_hid, d_out)
    return {"w1": w1, "b1": b1,
            "gamma": jnp.ones((1, d_hid), jnp.float32),
            "beta": jnp.zeros((1, d_hid), jnp.float32),
            "w2": w2, "b2": b2}


def _mlp_params(key, d_in, d_hid, d_out):
    k1, k2 = jax.random.split(key)
    w1, b1 = _linear(k1, d_in, d_hid)
    w2, b2 = _linear(k2, d_hid, d_out)
    return {"w1": w1, "b1": b1, "w2": w2, "b2": b2}


def _mlp2_params(key, d_half, d_hid, d_out):
    """Linear(2*d_half, d_hid) with W1 stored as two [d_half, d_hid] halves."""
    k1, k2, k3, k4 = jax.random.split(key, 4)
    bound = 1.0 / math.sqrt(2 * d_half)
    w2, b2 = _linear(k4, d_hid, d_out)
    return {"w1a": _uniform(k1, (d_half, d_hid), bound),
            "w1b": _uniform(k2, (d_half, d_hid), bound),
            "b1": _uniform(k3, (1, d_hid), bound),
            "w2": w2, "b2": b2}


def _gru_params(key, d_in, d_hid):
    """nn.GRUCell, transposed & gate-stacked: wih [d_in, 3H], whh [H, 3H], (r,z,n)."""
    ks = jax.random.split(key, 4)
    bound = 1.0 / math.sqrt(d_hid)
    return {"wih": _uniform(ks[0], (d_in, 3 * d_hid), bound),
            "whh": _uniform(ks[1], (d_hid, 3 * d_hid), bound),
            "bih": _uniform(ks[2], (1, 3 * d_hid), bound),
            "bhh": _uniform(ks[3], (1, 3 * d_hid), bound)}


def _gru2_params(key, d_hid):
    """GRUCell with 2H-wide input; input weight stored split into two [H, 3H] halves."""
    ks = jax.random.split(key, 5)
    bound = 1.0 / math.sqrt(d_hid)
    return {"wih_a": _uniform(ks[0], (d_hid, 3 * d_hid), bound),
            "wih_b": _uniform(ks[1], (d_hid, 3 * d_hid), bound),
            "whh": _uniform(ks[2], (d_hid, 3 * d_hid), bound),
            "bih": _uniform(ks[3], (1, 3 * d_hid), bound),
            "bhh": _uniform(ks[4], (1, 3 * d_hid), bound)}


def init_params(key, input_dim=IN_DIM, hidden_dim=HIDDEN):
    ks = jax.random.split(key, 12)
    return {
        "state_encoder": _enc_params(ks[0], input_dim, hidden_dim, hidden_dim),
        "goal_encoder": _enc_params(ks[1], input_dim, hidden_dim, hidden_dim),
        "subgoal_decomposer": {
            "goal_encoder": _enc_params(ks[2], input_dim, hidden_dim, hidden_dim),
            "gru": _gru_params(ks[3], hidden_dim, hidden_dim),
            "subgoal_decoder": _enc_params(ks[4], hidden_dim, hidden_dim, input_dim),
            "stop_predictor": _mlp_params(ks[5], hidden_dim, hidden_dim // 2, 1),
        },
        "plan_step": {
            "encoder": _enc_params(ks[6], input_dim, hidden_dim, hidden_dim),
            # plan_step.decoder omitted: decoded_step is never used downstream.
            "precondition_checker": _mlp2_params(ks[7], hidden_dim, hidden_dim, 1),
            "effect_predictor": _mlp_params(ks[8], hidden_dim, hidden_dim, hidden_dim),
        },
        "plan_decoder": _gru2_params(ks[9], hidden_dim),
        "action_decoder": _enc_params(ks[10], hidden_dim, hidden_dim, input_dim),
        "success_predictor": _mlp2_params(ks[11], hidden_dim, hidden_dim, 1),
    }


# ------------------------------- forward builder -------------------------------
def make_forward(main_off, gate_off, *, batch, in_dim, hidden, max_steps, max_subgoals):
    total_steps = max_steps * max_subgoals
    srows = -(-(max_subgoals * batch) // 8) * 8
    kernel = functools.partial(_planner_kernel, main_off=main_off, gate_off=gate_off,
                               hidden=hidden, max_steps=max_steps,
                               max_subgoals=max_subgoals)
    out_shapes = (
        jax.ShapeDtypeStruct((batch, total_steps * in_dim), jnp.float32),       # plan
        jax.ShapeDtypeStruct((batch, (1 + total_steps) * hidden), jnp.float32),  # states
        jax.ShapeDtypeStruct((batch, max_subgoals * in_dim), jnp.float32),       # subgoals
        jax.ShapeDtypeStruct((batch, max_subgoals + 1), jnp.float32),            # stop|success
    )

    @jax.jit
    def forward(main_buf, gate_buf, initial_state, goal):
        plan2d, states2d, subgoals2d, scal = pl.pallas_call(
            kernel,
            out_shape=out_shapes,
            in_specs=[_VMEM] * 4,
            out_specs=tuple([_VMEM] * 4),
            scratch_shapes=[pltpu.VMEM((srows, hidden), jnp.float32)],
        )(main_buf, gate_buf, initial_state, goal)
        # Only free row-major reshapes / column slices here -- no transposes.
        return {
            "plan": plan2d.reshape(batch, total_steps, in_dim),
            "states": states2d.reshape(batch, 1 + total_steps, hidden),
            "subgoals": subgoals2d.reshape(batch, max_subgoals, in_dim),
            "stop_probs": scal[:, :max_subgoals],
            "success": scal[:, max_subgoals:],
        }

    return forward


# ---------------- pure-JAX mirror (same masked-break / bf16-dot math) ----------
def _bdot_ref(x, w):
    return jnp.dot(x.astype(jnp.bfloat16), w.astype(jnp.bfloat16),
                   preferred_element_type=jnp.float32)


def _enc_ref(p, x):
    h = _bdot_ref(x, p["w1"]) + p["b1"]
    mu = jnp.mean(h, axis=-1, keepdims=True)
    var = jnp.mean(h * h, axis=-1, keepdims=True) - mu * mu
    h = (h - mu) * jax.lax.rsqrt(var + LN_EPS) * p["gamma"] + p["beta"]
    h = jnp.maximum(h, 0.0)
    return _bdot_ref(h, p["w2"]) + p["b2"]


def _gru_ref(gi, gh, h, H):
    r = jax.nn.sigmoid(gi[:, :H] + gh[:, :H])
    z = jax.nn.sigmoid(gi[:, H:2 * H] + gh[:, H:2 * H])
    n = jnp.tanh(gi[:, 2 * H:] + r * gh[:, 2 * H:])
    return (1.0 - z) * n + z * h


def reference_forward(params, initial_state, goal, *, max_steps, max_subgoals):
    p = params
    H = p["state_encoder"]["w2"].shape[1]
    state_embedding = _enc_ref(p["state_encoder"], initial_state)
    goal_embedding = _enc_ref(p["goal_encoder"], goal)

    sd = p["subgoal_decomposer"]
    sd_goal_emb = _enc_ref(sd["goal_encoder"], goal)
    gi_sub = _bdot_ref(sd_goal_emb, sd["gru"]["wih"]) + sd["gru"]["bih"]
    h = state_embedding
    sub_hs, stops, subgoals = [], [], []
    for _ in range(max_subgoals):
        gh = _bdot_ref(h, sd["gru"]["whh"]) + sd["gru"]["bhh"]
        h = _gru_ref(gi_sub, gh, h, H)
        sub_hs.append(h)
        sp = sd["stop_predictor"]
        sh = jnp.maximum(_bdot_ref(h, sp["w1"]) + sp["b1"], 0.0)
        stops.append(jax.nn.sigmoid(_bdot_ref(sh, sp["w2"]) + sp["b2"]))
        subgoals.append(_enc_ref(sd["subgoal_decoder"], h))

    ps, pd, su = p["plan_step"], p["plan_decoder"], p["success_predictor"]
    pc, ep = ps["precondition_checker"], ps["effect_predictor"]
    actions, states = [], [state_embedding]
    current_state = state_embedding
    subgoal_active = jnp.ones((1, 1), jnp.float32)
    for i in range(max_subgoals):
        if i > 0:
            m = jnp.mean(stops[i - 1], axis=0, keepdims=True)
            subgoal_active = subgoal_active * (m <= 0.9).astype(jnp.float32)
        se = sub_hs[i]
        gi_b = _bdot_ref(se, pd["wih_b"]) + pd["bih"]
        suc_b = _bdot_ref(se, su["w1b"])
        step_active = subgoal_active
        for _ in range(max_steps):
            gi = _bdot_ref(current_state, pd["wih_a"]) + gi_b
            gh = _bdot_ref(current_state, pd["whh"]) + pd["bhh"]
            ds = _gru_ref(gi, gh, current_state, H)
            action = _enc_ref(p["action_decoder"], ds)
            actions.append(action)
            step_emb = _enc_ref(ps["encoder"], action)
            ph = jnp.maximum(_bdot_ref(step_emb, pc["w1a"])
                             + _bdot_ref(current_state, pc["w1b"]) + pc["b1"], 0.0)
            precond = jax.nn.sigmoid(_bdot_ref(ph, pc["w2"]) + pc["b2"])
            eh = jnp.maximum(_bdot_ref(step_emb, ep["w1"]) + ep["b1"], 0.0)
            effects = _bdot_ref(eh, ep["w2"]) + ep["b2"]
            new_state = current_state + effects * precond
            current_state = step_active * new_state + (1.0 - step_active) * current_state
            states.append(current_state)
            sh2 = jnp.maximum(_bdot_ref(current_state, su["w1a"]) + suc_b + su["b1"], 0.0)
            success = jax.nn.sigmoid(_bdot_ref(sh2, su["w2"]) + su["b2"])
            step_active = step_active * (
                (jnp.mean(success, axis=0, keepdims=True) <= 0.9).astype(jnp.float32))

    fh = jnp.maximum(_bdot_ref(current_state, su["w1a"])
                     + _bdot_ref(goal_embedding, su["w1b"]) + su["b1"], 0.0)
    overall = jax.nn.sigmoid(_bdot_ref(fh, su["w2"]) + su["b2"])
    return {"plan": jnp.stack(actions, 1), "states": jnp.stack(states, 1),
            "subgoals": jnp.stack(subgoals, 1),
            "stop_probs": jnp.concatenate(stops, axis=-1), "success": overall}


# ----------------------------------- main --------------------------------------
if __name__ == "__main__":
    key = jax.random.PRNGKey(0)
    k_params, k_state, k_goal = jax.random.split(key, 3)

    params = init_params(k_params)
    initial_state = jax.random.normal(k_state, (BATCH, IN_DIM), jnp.float32)
    goal = jax.random.normal(k_goal, (BATCH, IN_DIM), jnp.float32)

    # Pack all ~50 parameter leaves into 2 buffers (once, outside the jit):
    # one HBM->VMEM DMA per buffer instead of one per leaf.
    main_buf, gate_buf, main_off, gate_off = pack_params(params, IN_DIM, HIDDEN)

    forward = make_forward(main_off, gate_off, batch=BATCH, in_dim=IN_DIM,
                           hidden=HIDDEN, max_steps=MAX_STEPS,
                           max_subgoals=MAX_SUBGOALS)
    out = forward(main_buf, gate_buf, initial_state, goal)
    jax.block_until_ready(out)

    total_steps = MAX_STEPS * MAX_SUBGOALS
    assert out["plan"].shape == (BATCH, total_steps, IN_DIM)
    assert out["states"].shape == (BATCH, 1 + total_steps, HIDDEN)
    assert out["subgoals"].shape == (BATCH, MAX_SUBGOALS, IN_DIM)
    assert out["stop_probs"].shape == (BATCH, MAX_SUBGOALS)
    assert out["success"].shape == (BATCH, 1)

    ref = reference_forward(params, initial_state, goal,
                            max_steps=MAX_STEPS, max_subgoals=MAX_SUBGOALS)
    for name in out:
        assert bool(jnp.all(jnp.isfinite(out[name]))), name
        assert bool(jnp.allclose(out[name], ref[name], rtol=5e-2, atol=5e-2)), name

    print("KERNEL_OK")
</pallas_src>

<mosaic_0001>
module attributes {stable_mosaic.version = 11 : i64} {
  func.func @_planner_kernel(%arg0: memref<880x32xf32, #tpu.memory_space<vmem>>, %arg1: memref<192x768xf32, #tpu.memory_space<vmem>>, %arg2: memref<2x32xf32, #tpu.memory_space<vmem>>, %arg3: memref<2x32xf32, #tpu.memory_space<vmem>>, %arg4: memref<2x128xf32, #tpu.memory_space<vmem>>, %arg5: memref<2x160xf32, #tpu.memory_space<vmem>>, %arg6: memref<2x64xf32, #tpu.memory_space<vmem>>, %arg7: memref<2x3xf32, #tpu.memory_space<vmem>>, %arg8: memref<8x32xf32, #tpu.memory_space<vmem>>) attributes {dimension_semantics = [], scalar_prefetch = 0 : i64, scratch_operands = 1 : i64, tpu.core_type = #tpu.core_type<tc>} {
    %c0 = arith.constant 0 : index
    %c0_0 = arith.constant 0 : index
    %0 = vector.load %arg0[%c0, %c0_0] : memref<880x32xf32, #tpu.memory_space<vmem>>, vector<32x32xf32>
    %1 = arith.truncf %0 : vector<32x32xf32> to vector<32x32xbf16>
    %c32 = arith.constant 32 : index
    %c0_1 = arith.constant 0 : index
    %2 = vector.load %arg0[%c32, %c0_1] : memref<880x32xf32, #tpu.memory_space<vmem>>, vector<1x32xf32>
    %c40 = arith.constant 40 : index
    %c0_2 = arith.constant 0 : index
    %3 = vector.load %arg0[%c40, %c0_2] : memref<880x32xf32, #tpu.memory_space<vmem>>, vector<1x32xf32>
    %c48 = arith.constant 48 : index
    %c0_3 = arith.constant 0 : index
    %4 = vector.load %arg0[%c48, %c0_3] : memref<880x32xf32, #tpu.memory_space<vmem>>, vector<1x32xf32>
    %c56 = arith.constant 56 : index
    %c0_4 = arith.constant 0 : index
    %5 = vector.load %arg0[%c56, %c0_4] : memref<880x32xf32, #tpu.memory_space<vmem>>, vector<32x32xf32>
    %6 = arith.truncf %5 : vector<32x32xf32> to vector<32x32xbf16>
    %c88 = arith.constant 88 : index
    %c0_5 = arith.constant 0 : index
    %7 = vector.load %arg0[%c88, %c0_5] : memref<880x32xf32, #tpu.memory_space<vmem>>, vector<1x32xf32>
    %c96 = arith.constant 96 : index
    %c0_6 = arith.constant 0 : index
    %8 = vector.load %arg0[%c96, %c0_6] : memref<880x32xf32, #tpu.memory_space<vmem>>, vector<32x32xf32>
    %9 = arith.truncf %8 : vector<32x32xf32> to vector<32x32xbf16>
    %c128 = arith.constant 128 : index
    %c0_7 = arith.constant 0 : index
    %10 = vector.load %arg0[%c128, %c0_7] : memref<880x32xf32, #tpu.memory_space<vmem>>, vector<1x32xf32>
    %c136 = arith.constant 136 : index
    %c0_8 = arith.constant 0 : index
    %11 = vector.load %arg0[%c136, %c0_8] : memref<880x32xf32, #tpu.memory_space<vmem>>, vector<1x32xf32>
    %c144 = arith.constant 144 : index
    %c0_9 = arith.constant 0 : index
    %12 = vector.load %arg0[%c144, %c0_9] : memref<880x32xf32, #tpu.memory_space<vmem>>, vector<1x32xf32>
    %c152 = arith.constant 152 : index
    %c0_10 = arith.constant 0 : index
    %13 = vector.load %arg0[%c152, %c0_10] : memref<880x32xf32, #tpu.memory_space<vmem>>, vector<32x32xf32>
    %14 = arith.truncf %13 : vector<32x32xf32> to vector<32x32xbf16>
    %c184 = arith.constant 184 : index
    %c0_11 = arith.constant 0 : index
    %15 = vector.load %arg0[%c184, %c0_11] : memref<880x32xf32, #tpu.memory_space<vmem>>, vector<1x32xf32>
    %c192 = arith.constant 192 : index
    %c0_12 = arith.constant 0 : index
    %16 = vector.load %arg0[%c192, %c0_12] : memref<880x32xf32, #tpu.memory_space<vmem>>, vector<32x32xf32>
    %17 = arith.truncf %16 : vector<32x32xf32> to vector<32x32xbf16>
    %c224 = arith.constant 224 : index
    %c0_13 = arith.constant 0 : index
    %18 = vector.load %arg0[%c224, %c0_13] : memref<880x32xf32, #tpu.memory_space<vmem>>, vector<1x32xf32>
    %c232 = arith.constant 232 : index
    %c0_14 = arith.constant 0 : index
    %19 = vector.load %arg0[%c232, %c0_14] : memref<880x32xf32, #tpu.memory_space<vmem>>, vector<1x32xf32>
    %c240 = arith.constant 240 : index
    %c0_15 = arith.constant 0 : index
    %20 = vector.load %arg0[%c240, %c0_15] : memref<880x32xf32, #tpu.memory_space<vmem>>, vector<1x32xf32>
    %c248 = arith.constant 248 : index
    %c0_16 = arith.constant 0 : index
    %21 = vector.load %arg0[%c248, %c0_16] : memref<880x32xf32, #tpu.memory_space<vmem>>, vector<32x32xf32>
    %22 = arith.truncf %21 : vector<32x32xf32> to vector<32x32xbf16>
    %c280 = arith.constant 280 : index
    %c0_17 = arith.constant 0 : index
    %23 = vector.load %arg0[%c280, %c0_17] : memref<880x32xf32, #tpu.memory_space<vmem>>, vector<1x32xf32>
    %c288 = arith.constant 288 : index
    %c0_18 = arith.constant 0 : index
    %24 = vector.load %arg0[%c288, %c0_18] : memref<880x32xf32, #tpu.memory_space<vmem>>, vector<32x32xf32>
    %25 = arith.truncf %24 : vector<32x32xf32> to vector<32x32xbf16>
    %c320 = arith.constant 320 : index
    %c0_19 = arith.constant 0 : index
    %26 = vector.load %arg0[%c320, %c0_19] : memref<880x32xf32, #tpu.memory_space<vmem>>, vector<1x32xf32>
    %c328 = arith.constant 328 : index
    %c0_20 = arith.constant 0 : index
    %27 = vector.load %arg0[%c328, %c0_20] : memref<880x32xf32, #tpu.memory_space<vmem>>, vector<1x32xf32>
    %c336 = arith.constant 336 : index
    %c0_21 = arith.constant 0 : index
    %28 = vector.load %arg0[%c336, %c0_21] : memref<880x32xf32, #tpu.memory_space<vmem>>, vector<1x32xf32>
    %c344 = arith.constant 344 : index
    %c0_22 = arith.constant 0 : index
    %29 = vector.load %arg0[%c344, %c0_22] : memref<880x32xf32, #tpu.memory_space<vmem>>, vector<32x32xf32>
    %30 = arith.truncf %29 : vector<32x32xf32> to vector<32x32xbf16>
    %c376 = arith.constant 376 : index
    %c0_23 = arith.constant 0 : index
    %31 = vector.load %arg0[%c376, %c0_23] : memref<880x32xf32, #tpu.memory_space<vmem>>, vector<1x32xf32>
    %c384 = arith.constant 384 : index
    %c0_24 = arith.constant 0 : index
    %32 = vector.load %arg0[%c384, %c0_24] : memref<880x32xf32, #tpu.memory_space<vmem>>, vector<32x32xf32>
    %33 = arith.truncf %32 : vector<32x32xf32> to vector<32x32xbf16>
    %c416 = arith.constant 416 : index
    %c0_25 = arith.constant 0 : index
    %34 = vector.load %arg0[%c416, %c0_25] : memref<880x32xf32, #tpu.memory_space<vmem>>, vector<1x32xf32>
    %c424 = arith.constant 424 : index
    %c0_26 = arith.constant 0 : index
    %35 = vector.load %arg0[%c424, %c0_26] : memref<880x32xf32, #tpu.memory_space<vmem>>, vector<1x32xf32>
    %c432 = arith.constant 432 : index
    %c0_27 = arith.constant 0 : index
    %36 = vector.load %arg0[%c432, %c0_27] : memref<880x32xf32, #tpu.memory_space<vmem>>, vector<1x32xf32>
    %c440 = arith.constant 440 : index
    %c0_28 = arith.constant 0 : index
    %37 = vector.load %arg0[%c440, %c0_28] : memref<880x32xf32, #tpu.memory_space<vmem>>, vector<32x32xf32>
    %38 = arith.truncf %37 : vector<32x32xf32> to vector<32x32xbf16>
    %c472 = arith.constant 472 : index
    %c0_29 = arith.constant 0 : index
    %39 = vector.load %arg0[%c472, %c0_29] : memref<880x32xf32, #tpu.memory_space<vmem>>, vector<1x32xf32>
    %c480 = arith.constant 480 : index
    %c0_30 = arith.constant 0 : index
    %40 = vector.load %arg0[%c480, %c0_30] : memref<880x32xf32, #tpu.memory_space<vmem>>, vector<32x32xf32>
    %41 = arith.truncf %40 : vector<32x32xf32> to vector<32x32xbf16>
    %c512 = arith.constant 512 : index
    %c0_31 = arith.constant 0 : index
    %42 = vector.load %arg0[%c512, %c0_31] : memref<880x32xf32, #tpu.memory_space<vmem>>, vector<1x32xf32>
    %c520 = arith.constant 520 : index
    %c0_32 = arith.constant 0 : index
    %43 = vector.load %arg0[%c520, %c0_32] : memref<880x32xf32, #tpu.memory_space<vmem>>, vector<1x32xf32>
    %c528 = arith.constant 528 : index
    %c0_33 = arith.constant 0 : index
    %44 = vector.load %arg0[%c528, %c0_33] : memref<880x32xf32, #tpu.memory_space<vmem>>, vector<1x32xf32>
    %c536 = arith.constant 536 : index
    %c0_34 = arith.constant 0 : index
    %45 = vector.load %arg0[%c536, %c0_34] : memref<880x32xf32, #tpu.memory_space<vmem>>, vector<32x32xf32>
    %46 = arith.truncf %45 : vector<32x32xf32> to vector<32x32xbf16>
    %c568 = arith.constant 568 : index
    %c0_35 = arith.constant 0 : index
    %47 = vector.load %arg0[%c568, %c0_35] : memref<880x32xf32, #tpu.memory_space<vmem>>, vector<1x32xf32>
    %c576 = arith.constant 576 : index
    %c0_36 = arith.constant 0 : index
    %48 = vector.load %arg0[%c576, %c0_36] : memref<880x32xf32, #tpu.memory_space<vmem>>, vector<32x16xf32>
    %49 = arith.truncf %48 : vector<32x16xf32> to vector<32x16xbf16>
    %c608 = arith.constant 608 : index
    %c0_37 = arith.constant 0 : index
    %50 = vector.load %arg0[%c608, %c0_37] : memref<880x32xf32, #tpu.memory_space<vmem>>, vector<1x16xf32>
    %c616 = arith.constant 616 : index
    %c0_38 = arith.constant 0 : index
    %51 = vector.load %arg0[%c616, %c0_38] : memref<880x32xf32, #tpu.memory_space<vmem>>, vector<16x1xf32>
    %52 = arith.truncf %51 : vector<16x1xf32> to vector<16x1xbf16>
    %c632 = arith.constant 632 : index
    %c0_39 = arith.constant 0 : index
    %53 = vector.load %arg0[%c632, %c0_39] : memref<880x32xf32, #tpu.memory_space<vmem>>, vector<1x1xf32>
    %c640 = arith.constant 640 : index
    %c0_40 = arith.constant 0 : index
    %54 = vector.load %arg0[%c640, %c0_40] : memref<880x32xf32, #tpu.memory_space<vmem>>, vector<32x32xf32>
    %55 = arith.truncf %54 : vector<32x32xf32> to vector<32x32xbf16>
    %c672 = arith.constant 672 : index
    %c0_41 = arith.constant 0 : index
    %56 = vector.load %arg0[%c672, %c0_41] : memref<880x32xf32, #tpu.memory_space<vmem>>, vector<1x32xf32>
    %c680 = arith.constant 680 : index
    %c0_42 = arith.constant 0 : index
    %57 = vector.load %arg0[%c680, %c0_42] : memref<880x32xf32, #tpu.memory_space<vmem>>, vector<32x1xf32>
    %58 = arith.truncf %57 : vector<32x1xf32> to vector<32x1xbf16>
    %c712 = arith.constant 712 : index
    %c0_43 = arith.constant 0 : index
    %59 = vector.load %arg0[%c712, %c0_43] : memref<880x32xf32, #tpu.memory_space<vmem>>, vector<1x1xf32>
    %c720 = arith.constant 720 : index
    %c0_44 = arith.constant 0 : index
    %60 = vector.load %arg0[%c720, %c0_44] : memref<880x32xf32, #tpu.memory_space<vmem>>, vector<1x32xf32>
    %c728 = arith.constant 728 : index
    %c0_45 = arith.constant 0 : index
    %61 = vector.load %arg0[%c728, %c0_45] : memref<880x32xf32, #tpu.memory_space<vmem>>, vector<32x32xf32>
    %62 = arith.truncf %61 : vector<32x32xf32> to vector<32x32xbf16>
    %c760 = arith.constant 760 : index
    %c0_46 = arith.constant 0 : index
    %63 = vector.load %arg0[%c760, %c0_46] : memref<880x32xf32, #tpu.memory_space<vmem>>, vector<1x32xf32>
    %c768 = arith.constant 768 : index
    %c0_47 = arith.constant 0 : index
    %64 = vector.load %arg0[%c768, %c0_47] : memref<880x32xf32, #tpu.memory_space<vmem>>, vector<32x32xf32>
    %65 = arith.truncf %64 : vector<32x32xf32> to vector<32x32xbf16>
    %c800 = arith.constant 800 : index
    %c0_48 = arith.constant 0 : index
    %66 = vector.load %arg0[%c800, %c0_48] : memref<880x32xf32, #tpu.memory_space<vmem>>, vector<32x32xf32>
    %67 = arith.truncf %66 : vector<32x32xf32> to vector<32x32xbf16>
    %c832 = arith.constant 832 : index
    %c0_49 = arith.constant 0 : index
    %68 = vector.load %arg0[%c832, %c0_49] : memref<880x32xf32, #tpu.memory_space<vmem>>, vector<1x32xf32>
    %c840 = arith.constant 840 : index
    %c0_50 = arith.constant 0 : index
    %69 = vector.load %arg0[%c840, %c0_50] : memref<880x32xf32, #tpu.memory_space<vmem>>, vector<32x1xf32>
    %70 = arith.truncf %69 : vector<32x1xf32> to vector<32x1xbf16>
    %c872 = arith.constant 872 : index
    %c0_51 = arith.constant 0 : index
    %71 = vector.load %arg0[%c872, %c0_51] : memref<880x32xf32, #tpu.memory_space<vmem>>, vector<1x1xf32>
    %c0_52 = arith.constant 0 : index
    %c0_53 = arith.constant 0 : index
    %72 = vector.load %arg1[%c0_52, %c0_53] : memref<192x768xf32, #tpu.memory_space<vmem>>, vector<32x384xf32>
    %73 = arith.truncf %72 : vector<32x384xf32> to vector<32x384xbf16>
    %c32_54 = arith.constant 32 : index
    %c0_55 = arith.constant 0 : index
    %74 = vector.load %arg1[%c32_54, %c0_55] : memref<192x768xf32, #tpu.memory_space<vmem>>, vector<32x384xf32>
    %75 = arith.truncf %74 : vector<32x384xf32> to vector<32x384xbf16>
    %c64 = arith.constant 64 : index
    %c0_56 = arith.constant 0 : index
    %76 = vector.load %arg1[%c64, %c0_56] : memref<192x768xf32, #tpu.memory_space<vmem>>, vector<1x384xf32>
    %c72 = arith.constant 72 : index
    %c0_57 = arith.constant 0 : index
    %77 = vector.load %arg1[%c72, %c0_57] : memref<192x768xf32, #tpu.memory_space<vmem>>, vector<1x384xf32>
    %c80 = arith.constant 80 : index
    %c0_58 = arith.constant 0 : index
    %78 = vector.load %arg1[%c80, %c0_58] : memref<192x768xf32, #tpu.memory_space<vmem>>, vector<32x768xf32>
    %79 = arith.truncf %78 : vector<32x768xf32> to vector<32x768xbf16>
    %c112 = arith.constant 112 : index
    %c0_59 = arith.constant 0 : index
    %80 = vector.load %arg1[%c112, %c0_59] : memref<192x768xf32, #tpu.memory_space<vmem>>, vector<32x384xf32>
    %81 = arith.truncf %80 : vector<32x384xf32> to vector<32x384xbf16>
    %c144_60 = arith.constant 144 : index
    %c0_61 = arith.constant 0 : index
    %82 = vector.load %arg1[%c144_60, %c0_61] : memref<192x768xf32, #tpu.memory_space<vmem>>, vector<1x384xf32>
    %c152_62 = arith.constant 152 : index
    %c0_63 = arith.constant 0 : index
    %83 = vector.load %arg1[%c152_62, %c0_63] : memref<192x768xf32, #tpu.memory_space<vmem>>, vector<1x384xf32>
    %c160 = arith.constant 160 : index
    %c0_64 = arith.constant 0 : index
    %84 = vector.load %arg1[%c160, %c0_64] : memref<192x768xf32, #tpu.memory_space<vmem>>, vector<32x256xf32>
    %85 = arith.truncf %84 : vector<32x256xf32> to vector<32x256xbf16>
    %c0_65 = arith.constant 0 : index
    %c0_66 = arith.constant 0 : index
    %86 = vector.load %arg2[%c0_65, %c0_66] : memref<2x32xf32, #tpu.memory_space<vmem>>, vector<2x32xf32>
    %c0_67 = arith.constant 0 : index
    %c0_68 = arith.constant 0 : index
    %87 = vector.load %arg3[%c0_67, %c0_68] : memref<2x32xf32, #tpu.memory_space<vmem>>, vector<2x32xf32>
    %88 = arith.truncf %86 : vector<2x32xf32> to vector<2x32xbf16>
    %cst = arith.constant dense<0.000000e+00> : vector<2x32xf32>
    %89 = tpu.matmul %88, %1, %cst {dimension_numbers = #tpu.dot_dimension_numbers<[1], [0], [0], [1], [0, 0, 1, 1], [], []>} : vector<2x32xbf16>, vector<32x32xbf16>, vector<2x32xf32> -> vector<2x32xf32>
    %90 = vector.broadcast %2 : vector<1x32xf32> to vector<2x32xf32>
    %91 = arith.addf %89, %90 : vector<2x32xf32>
    %cst_69 = arith.constant dense<0.000000e+00> : vector<2xf32>
    %92 = vector.multi_reduction <add>, %91, %cst_69 [1] : vector<2x32xf32> to vector<2xf32>
    %93 = vector.shape_cast %92 : vector<2xf32> to vector<2x1xf32>
    %cst_70 = arith.constant 3.200000e+01 : f32
    %94 = vector.broadcast %cst_70 : f32 to vector<2x1xf32>
    %95 = arith.divf %93, %94 : vector<2x1xf32>
    %96 = arith.mulf %91, %91 : vector<2x32xf32>
    %cst_71 = arith.constant dense<0.000000e+00> : vector<2xf32>
    %97 = vector.multi_reduction <add>, %96, %cst_71 [1] : vector<2x32xf32> to vector<2xf32>
    %98 = vector.shape_cast %97 : vector<2xf32> to vector<2x1xf32>
    %cst_72 = arith.constant 3.200000e+01 : f32
    %99 = vector.broadcast %cst_72 : f32 to vector<2x1xf32>
    %100 = arith.divf %98, %99 : vector<2x1xf32>
    %101 = arith.mulf %95, %95 : vector<2x1xf32>
    %102 = arith.subf %100, %101 : vector<2x1xf32>
    %103 = vector.broadcast %95 : vector<2x1xf32> to vector<2x32xf32>
    %104 = arith.subf %91, %103 : vector<2x32xf32>
    %cst_73 = arith.constant 9.99999974E-6 : f32
    %105 = vector.broadcast %cst_73 : f32 to vector<2x1xf32>
    %106 = arith.addf %102, %105 : vector<2x1xf32>
    %107 = math.rsqrt %106 : vector<2x1xf32>
    %108 = vector.broadcast %107 : vector<2x1xf32> to vector<2x32xf32>
    %109 = arith.mulf %104, %108 : vector<2x32xf32>
    %110 = vector.broadcast %3 : vector<1x32xf32> to vector<2x32xf32>
    %111 = arith.mulf %109, %110 : vector<2x32xf32>
    %112 = vector.broadcast %4 : vector<1x32xf32> to vector<2x32xf32>
    %113 = arith.addf %111, %112 : vector<2x32xf32>
    %cst_74 = arith.constant 0.000000e+00 : f32
    %114 = vector.broadcast %cst_74 : f32 to vector<2x32xf32>
    %115 = arith.maximumf %113, %114 : vector<2x32xf32>
    %116 = arith.truncf %115 : vector<2x32xf32> to vector<2x32xbf16>
    %cst_75 = arith.constant dense<0.000000e+00> : vector<2x32xf32>
    %117 = tpu.matmul %116, %6, %cst_75 {dimension_numbers = #tpu.dot_dimension_numbers<[1], [0], [0], [1], [0, 0, 1, 1], [], []>} : vector<2x32xbf16>, vector<32x32xbf16>, vector<2x32xf32> -> vector<2x32xf32>
    %118 = vector.broadcast %7 : vector<1x32xf32> to vector<2x32xf32>
    %119 = arith.addf %117, %118 : vector<2x32xf32>
    %120 = arith.truncf %87 : vector<2x32xf32> to vector<2x32xbf16>
    %cst_76 = arith.constant dense<0.000000e+00> : vector<2x32xf32>
    %121 = tpu.matmul %120, %9, %cst_76 {dimension_numbers = #tpu.dot_dimension_numbers<[1], [0], [0], [1], [0, 0, 1, 1], [], []>} : vector<2x32xbf16>, vector<32x32xbf16>, vector<2x32xf32> -> vector<2x32xf32>
    %122 = vector.broadcast %10 : vector<1x32xf32> to vector<2x32xf32>
    %123 = arith.addf %121, %122 : vector<2x32xf32>
    %cst_77 = arith.constant dense<0.000000e+00> : vector<2xf32>
    %124 = vector.multi_reduction <add>, %123, %cst_77 [1] : vector<2x32xf32> to vector<2xf32>
    %125 = vector.shape_cast %124 : vector<2xf32> to vector<2x1xf32>
    %cst_78 = arith.constant 3.200000e+01 : f32
    %126 = vector.broadcast %cst_78 : f32 to vector<2x1xf32>
    %127 = arith.divf %125, %126 : vector<2x1xf32>
    %128 = arith.mulf %123, %123 : vector<2x32xf32>
    %cst_79 = arith.constant dense<0.000000e+00> : vector<2xf32>
    %129 = vector.multi_reduction <add>, %128, %cst_79 [1] : vector<2x32xf32> to vector<2xf32>
    %130 = vector.shape_cast %129 : vector<2xf32> to vector<2x1xf32>
    %cst_80 = arith.constant 3.200000e+01 : f32
    %131 = vector.broadcast %cst_80 : f32 to vector<2x1xf32>
    %132 = arith.divf %130, %131 : vector<2x1xf32>
    %133 = arith.mulf %127, %127 : vector<2x1xf32>
    %134 = arith.subf %132, %133 : vector<2x1xf32>
    %135 = vector.broadcast %127 : vector<2x1xf32> to vector<2x32xf32>
    %136 = arith.subf %123, %135 : vector<2x32xf32>
    %cst_81 = arith.constant 9.99999974E-6 : f32
    %137 = vector.broadcast %cst_81 : f32 to vector<2x1xf32>
    %138 = arith.addf %134, %137 : vector<2x1xf32>
    %139 = math.rsqrt %138 : vector<2x1xf32>
    %140 = vector.broadcast %139 : vector<2x1xf32> to vector<2x32xf32>
    %141 = arith.mulf %136, %140 : vector<2x32xf32>
    %142 = vector.broadcast %11 : vector<1x32xf32> to vector<2x32xf32>
    %143 = arith.mulf %141, %142 : vector<2x32xf32>
    %144 = vector.broadcast %12 : vector<1x32xf32> to vector<2x32xf32>
    %145 = arith.addf %143, %144 : vector<2x32xf32>
    %cst_82 = arith.constant 0.000000e+00 : f32
    %146 = vector.broadcast %cst_82 : f32 to vector<2x32xf32>
    %147 = arith.maximumf %145, %146 : vector<2x32xf32>
    %148 = arith.truncf %147 : vector<2x32xf32> to vector<2x32xbf16>
    %cst_83 = arith.constant dense<0.000000e+00> : vector<2x32xf32>
    %149 = tpu.matmul %148, %14, %cst_83 {dimension_numbers = #tpu.dot_dimension_numbers<[1], [0], [0], [1], [0, 0, 1, 1], [], []>} : vector<2x32xbf16>, vector<32x32xbf16>, vector<2x32xf32> -> vector<2x32xf32>
    %150 = vector.broadcast %15 : vector<1x32xf32> to vector<2x32xf32>
    %151 = arith.addf %149, %150 : vector<2x32xf32>
    %152 = arith.truncf %87 : vector<2x32xf32> to vector<2x32xbf16>
    %cst_84 = arith.constant dense<0.000000e+00> : vector<2x32xf32>
    %153 = tpu.matmul %152, %17, %cst_84 {dimension_numbers = #tpu.dot_dimension_numbers<[1], [0], [0], [1], [0, 0, 1, 1], [], []>} : vector<2x32xbf16>, vector<32x32xbf16>, vector<2x32xf32> -> vector<2x32xf32>
    %154 = vector.broadcast %18 : vector<1x32xf32> to vector<2x32xf32>
    %155 = arith.addf %153, %154 : vector<2x32xf32>
    %cst_85 = arith.constant dense<0.000000e+00> : vector<2xf32>
    %156 = vector.multi_reduction <add>, %155, %cst_85 [1] : vector<2x32xf32> to vector<2xf32>
    %157 = vector.shape_cast %156 : vector<2xf32> to vector<2x1xf32>
    %cst_86 = arith.constant 3.200000e+01 : f32
    %158 = vector.broadcast %cst_86 : f32 to vector<2x1xf32>
    %159 = arith.divf %157, %158 : vector<2x1xf32>
    %160 = arith.mulf %155, %155 : vector<2x32xf32>
    %cst_87 = arith.constant dense<0.000000e+00> : vector<2xf32>
    %161 = vector.multi_reduction <add>, %160, %cst_87 [1] : vector<2x32xf32> to vector<2xf32>
    %162 = vector.shape_cast %161 : vector<2xf32> to vector<2x1xf32>
    %cst_88 = arith.constant 3.200000e+01 : f32
    %163 = vector.broadcast %cst_88 : f32 to vector<2x1xf32>
    %164 = arith.divf %162, %163 : vector<2x1xf32>
    %165 = arith.mulf %159, %159 : vector<2x1xf32>
    %166 = arith.subf %164, %165 : vector<2x1xf32>
    %167 = vector.broadcast %159 : vector<2x1xf32> to vector<2x32xf32>
    %168 = arith.subf %155, %167 : vector<2x32xf32>
    %cst_89 = arith.constant 9.99999974E-6 : f32
    %169 = vector.broadcast %cst_89 : f32 to vector<2x1xf32>
    %170 = arith.addf %166, %169 : vector<2x1xf32>
    %171 = math.rsqrt %170 : vector<2x1xf32>
    %172 = vector.broadcast %171 : vector<2x1xf32> to vector<2x32xf32>
    %173 = arith.mulf %168, %172 : vector<2x32xf32>
    %174 = vector.broadcast %19 : vector<1x32xf32> to vector<2x32xf32>
    %175 = arith.mulf %173, %174 : vector<2x32xf32>
    %176 = vector.broadcast %20 : vector<1x32xf32> to vector<2x32xf32>
    %177 = arith.addf %175, %176 : vector<2x32xf32>
    %cst_90 = arith.constant 0.000000e+00 : f32
    %178 = vector.broadcast %cst_90 : f32 to vector<2x32xf32>
    %179 = arith.maximumf %177, %178 : vector<2x32xf32>
    %180 = arith.truncf %179 : vector<2x32xf32> to vector<2x32xbf16>
    %cst_91 = arith.constant dense<0.000000e+00> : vector<2x32xf32>
    %181 = tpu.matmul %180, %22, %cst_91 {dimension_numbers = #tpu.dot_dimension_numbers<[1], [0], [0], [1], [0, 0, 1, 1], [], []>} : vector<2x32xbf16>, vector<32x32xbf16>, vector<2x32xf32> -> vector<2x32xf32>
    %182 = vector.broadcast %23 : vector<1x32xf32> to vector<2x32xf32>
    %183 = arith.addf %181, %182 : vector<2x32xf32>
    %184 = arith.truncf %183 : vector<2x32xf32> to vector<2x32xbf16>
    %cst_92 = arith.constant dense<0.000000e+00> : vector<2x384xf32>
    %185 = tpu.matmul %184, %73, %cst_92 {dimension_numbers = #tpu.dot_dimension_numbers<[1], [0], [0], [1], [0, 0, 1, 1], [], []>} : vector<2x32xbf16>, vector<32x384xbf16>, vector<2x384xf32> -> vector<2x384xf32>
    %186 = vector.broadcast %76 : vector<1x384xf32> to vector<2x384xf32>
    %187 = arith.addf %185, %186 : vector<2x384xf32>
    %188 = arith.truncf %119 : vector<2x32xf32> to vector<2x32xbf16>
    %cst_93 = arith.constant dense<0.000000e+00> : vector<2x384xf32>
    %189 = tpu.matmul %188, %75, %cst_93 {dimension_numbers = #tpu.dot_dimension_numbers<[1], [0], [0], [1], [0, 0, 1, 1], [], []>} : vector<2x32xbf16>, vector<32x384xbf16>, vector<2x384xf32> -> vector<2x384xf32>
    %190 = vector.broadcast %77 : vector<1x384xf32> to vector<2x384xf32>
    %191 = arith.addf %189, %190 : vector<2x384xf32>
    %192 = vector.extract_strided_slice %187 {offsets = [0, 0], sizes = [2, 32], strides = [1, 1]} : vector<2x384xf32> to vector<2x32xf32>
    %193 = vector.extract_strided_slice %191 {offsets = [0, 0], sizes = [2, 32], strides = [1, 1]} : vector<2x384xf32> to vector<2x32xf32>
    %194 = arith.addf %192, %193 : vector<2x32xf32>
    %195 = arith.negf %194 : vector<2x32xf32>
    %196 = math.exp %195 : vector<2x32xf32>
    %cst_94 = arith.constant 1.000000e+00 : f32
    %197 = vector.broadcast %cst_94 : f32 to vector<2x32xf32>
    %198 = arith.addf %197, %196 : vector<2x32xf32>
    %199 = arith.divf %197, %198 : vector<2x32xf32>
    %200 = vector.extract_strided_slice %187 {offsets = [0, 128], sizes = [2, 32], strides = [1, 1]} : vector<2x384xf32> to vector<2x32xf32>
    %201 = vector.extract_strided_slice %191 {offsets = [0, 128], sizes = [2, 32], strides = [1, 1]} : vector<2x384xf32> to vector<2x32xf32>
    %202 = arith.addf %200, %201 : vector<2x32xf32>
    %203 = arith.negf %202 : vector<2x32xf32>
    %204 = math.exp %203 : vector<2x32xf32>
    %cst_95 = arith.constant 1.000000e+00 : f32
    %205 = vector.broadcast %cst_95 : f32 to vector<2x32xf32>
    %206 = arith.addf %205, %204 : vector<2x32xf32>
    %207 = arith.divf %205, %206 : vector<2x32xf32>
    %208 = vector.extract_strided_slice %187 {offsets = [0, 256], sizes = [2, 32], strides = [1, 1]} : vector<2x384xf32> to vector<2x32xf32>
    %209 = vector.extract_strided_slice %191 {offsets = [0, 256], sizes = [2, 32], strides = [1, 1]} : vector<2x384xf32> to vector<2x32xf32>
    %210 = arith.mulf %199, %209 : vector<2x32xf32>
    %211 = arith.addf %208, %210 : vector<2x32xf32>
    %212 = math.tanh %211 : vector<2x32xf32>
    %cst_96 = arith.constant 1.000000e+00 : f32
    %213 = vector.broadcast %cst_96 : f32 to vector<2x32xf32>
    %214 = arith.subf %213, %207 : vector<2x32xf32>
    %215 = arith.mulf %214, %212 : vector<2x32xf32>
    %216 = arith.mulf %207, %119 : vector<2x32xf32>
    %217 = arith.addf %215, %216 : vector<2x32xf32>
    %c0_97 = arith.constant 0 : index
    %c0_98 = arith.constant 0 : index
    %218 = vector.load %arg8[%c0_97, %c0_98] : memref<8x32xf32, #tpu.memory_space<vmem>>, vector<2x32xf32>
    tpu.vector_store %arg8[%c0_97, %c0_98], %217 {strides = array<i32>} : memref<8x32xf32, #tpu.memory_space<vmem>>, vector<2x32xf32>,
    %219 = arith.truncf %217 : vector<2x32xf32> to vector<2x32xbf16>
    %cst_99 = arith.constant dense<0.000000e+00> : vector<2x384xf32>
    %220 = tpu.matmul %219, %75, %cst_99 {dimension_numbers = #tpu.dot_dimension_numbers<[1], [0], [0], [1], [0, 0, 1, 1], [], []>} : vector<2x32xbf16>, vector<32x384xbf16>, vector<2x384xf32> -> vector<2x384xf32>
    %221 = vector.broadcast %77 : vector<1x384xf32> to vector<2x384xf32>
    %222 = arith.addf %220, %221 : vector<2x384xf32>
    %223 = vector.extract_strided_slice %187 {offsets = [0, 0], sizes = [2, 32], strides = [1, 1]} : vector<2x384xf32> to vector<2x32xf32>
    %224 = vector.extract_strided_slice %222 {offsets = [0, 0], sizes = [2, 32], strides = [1, 1]} : vector<2x384xf32> to vector<2x32xf32>
    %225 = arith.addf %223, %224 : vector<2x32xf32>
    %226 = arith.negf %225 : vector<2x32xf32>
    %227 = math.exp %226 : vector<2x32xf32>
    %cst_100 = arith.constant 1.000000e+00 : f32
    %228 = vector.broadcast %cst_100 : f32 to vector<2x32xf32>
    %229 = arith.addf %228, %227 : vector<2x32xf32>
    %230 = arith.divf %228, %229 : vector<2x32xf32>
    %231 = vector.extract_strided_slice %187 {offsets = [0, 128], sizes = [2, 32], strides = [1, 1]} : vector<2x384xf32> to vector<2x32xf32>
    %232 = vector.extract_strided_slice %222 {offsets = [0, 128], sizes = [2, 32], strides = [1, 1]} : vector<2x384xf32> to vector<2x32xf32>
    %233 = arith.addf %231, %232 : vector<2x32xf32>
    %234 = arith.negf %233 : vector<2x32xf32>
    %235 = math.exp %234 : vector<2x32xf32>
    %cst_101 = arith.constant 1.000000e+00 : f32
    %236 = vector.broadcast %cst_101 : f32 to vector<2x32xf32>
    %237 = arith.addf %236, %235 : vector<2x32xf32>
    %238 = arith.divf %236, %237 : vector<2x32xf32>
    %239 = vector.extract_strided_slice %187 {offsets = [0, 256], sizes = [2, 32], strides = [1, 1]} : vector<2x384xf32> to vector<2x32xf32>
    %240 = vector.extract_strided_slice %222 {offsets = [0, 256], sizes = [2, 32], strides = [1, 1]} : vector<2x384xf32> to vector<2x32xf32>
    %241 = arith.mulf %230, %240 : vector<2x32xf32>
    %242 = arith.addf %239, %241 : vector<2x32xf32>
    %243 = math.tanh %242 : vector<2x32xf32>
    %cst_102 = arith.constant 1.000000e+00 : f32
    %244 = vector.broadcast %cst_102 : f32 to vector<2x32xf32>
    %245 = arith.subf %244, %238 : vector<2x32xf32>
    %246 = arith.mulf %245, %243 : vector<2x32xf32>
    %247 = arith.mulf %238, %217 : vector<2x32xf32>
    %248 = arith.addf %246, %247 : vector<2x32xf32>
    %c2 = arith.constant 2 : index
    %c0_103 = arith.constant 0 : index
    %249 = vector.load %arg8[%c2, %c0_103] : memref<8x32xf32, #tpu.memory_space<vmem>>, vector<2x32xf32>
    tpu.vector_store %arg8[%c2, %c0_103], %248 {strides = array<i32>} : memref<8x32xf32, #tpu.memory_space<vmem>>, vector<2x32xf32>,
    %c0_104 = arith.constant 0 : index
    %c0_105 = arith.constant 0 : index
    %250 = vector.load %arg8[%c0_104, %c0_105] : memref<8x32xf32, #tpu.memory_space<vmem>>, vector<4x32xf32>
    %251 = arith.truncf %250 : vector<4x32xf32> to vector<4x32xbf16>
    %cst_106 = arith.constant dense<0.000000e+00> : vector<4x32xf32>
    %252 = tpu.matmul %251, %25, %cst_106 {dimension_numbers = #tpu.dot_dimension_numbers<[1], [0], [0], [1], [0, 0, 1, 1], [], []>} : vector<4x32xbf16>, vector<32x32xbf16>, vector<4x32xf32> -> vector<4x32xf32>
    %253 = vector.broadcast %26 : vector<1x32xf32> to vector<4x32xf32>
    %254 = arith.addf %252, %253 : vector<4x32xf32>
    %cst_107 = arith.constant dense<0.000000e+00> : vector<4xf32>
    %255 = vector.multi_reduction <add>, %254, %cst_107 [1] : vector<4x32xf32> to vector<4xf32>
    %256 = vector.shape_cast %255 : vector<4xf32> to vector<4x1xf32>
    %cst_108 = arith.constant 3.200000e+01 : f32
    %257 = vector.broadcast %cst_108 : f32 to vector<4x1xf32>
    %258 = arith.divf %256, %257 : vector<4x1xf32>
    %259 = arith.mulf %254, %254 : vector<4x32xf32>
    %cst_109 = arith.constant dense<0.000000e+00> : vector<4xf32>
    %260 = vector.multi_reduction <add>, %259, %cst_109 [1] : vector<4x32xf32> to vector<4xf32>
    %261 = vector.shape_cast %260 : vector<4xf32> to vector<4x1xf32>
    %cst_110 = arith.constant 3.200000e+01 : f32
    %262 = vector.broadcast %cst_110 : f32 to vector<4x1xf32>
    %263 = arith.divf %261, %262 : vector<4x1xf32>
    %264 = arith.mulf %258, %258 : vector<4x1xf32>
    %265 = arith.subf %263, %264 : vector<4x1xf32>
    %266 = vector.broadcast %258 : vector<4x1xf32> to vector<4x32xf32>
    %267 = arith.subf %254, %266 : vector<4x32xf32>
    %cst_111 = arith.constant 9.99999974E-6 : f32
    %268 = vector.broadcast %cst_111 : f32 to vector<4x1xf32>
    %269 = arith.addf %265, %268 : vector<4x1xf32>
    %270 = math.rsqrt %269 : vector<4x1xf32>
    %271 = vector.broadcast %270 : vector<4x1xf32> to vector<4x32xf32>
    %272 = arith.mulf %267, %271 : vector<4x32xf32>
    %273 = vector.broadcast %27 : vector<1x32xf32> to vector<4x32xf32>
    %274 = arith.mulf %272, %273 : vector<4x32xf32>
    %275 = vector.broadcast %28 : vector<1x32xf32> to vector<4x32xf32>
    %276 = arith.addf %274, %275 : vector<4x32xf32>
    %cst_112 = arith.constant 0.000000e+00 : f32
    %277 = vector.broadcast %cst_112 : f32 to vector<4x32xf32>
    %278 = arith.maximumf %276, %277 : vector<4x32xf32>
    %279 = arith.truncf %278 : vector<4x32xf32> to vector<4x32xbf16>
    %cst_113 = arith.constant dense<0.000000e+00> : vector<4x32xf32>
    %280 = tpu.matmul %279, %30, %cst_113 {dimension_numbers = #tpu.dot_dimension_numbers<[1], [0], [0], [1], [0, 0, 1, 1], [], []>} : vector<4x32xbf16>, vector<32x32xbf16>, vector<4x32xf32> -> vector<4x32xf32>
    %281 = vector.broadcast %31 : vector<1x32xf32> to vector<4x32xf32>
    %282 = arith.addf %280, %281 : vector<4x32xf32>
    %283 = arith.truncf %250 : vector<4x32xf32> to vector<4x32xbf16>
    %cst_114 = arith.constant dense<0.000000e+00> : vector<4x16xf32>
    %284 = tpu.matmul %283, %49, %cst_114 {dimension_numbers = #tpu.dot_dimension_numbers<[1], [0], [0], [1], [0, 0, 1, 1], [], []>} : vector<4x32xbf16>, vector<32x16xbf16>, vector<4x16xf32> -> vector<4x16xf32>
    %285 = vector.broadcast %50 : vector<1x16xf32> to vector<4x16xf32>
    %286 = arith.addf %284, %285 : vector<4x16xf32>
    %cst_115 = arith.constant 0.000000e+00 : f32
    %287 = vector.broadcast %cst_115 : f32 to vector<4x16xf32>
    %288 = arith.maximumf %286, %287 : vector<4x16xf32>
    %289 = arith.truncf %288 : vector<4x16xf32> to vector<4x16xbf16>
    %cst_116 = arith.constant dense<0.000000e+00> : vector<4x1xf32>
    %290 = tpu.matmul %289, %52, %cst_116 {dimension_numbers = #tpu.dot_dimension_numbers<[1], [0], [0], [1], [0, 0, 1, 1], [], []>} : vector<4x16xbf16>, vector<16x1xbf16>, vector<4x1xf32> -> vector<4x1xf32>
    %291 = vector.broadcast %53 : vector<1x1xf32> to vector<4x1xf32>
    %292 = arith.addf %290, %291 : vector<4x1xf32>
    %293 = arith.negf %292 : vector<4x1xf32>
    %294 = math.exp %293 : vector<4x1xf32>
    %cst_117 = arith.constant 1.000000e+00 : f32
    %295 = vector.broadcast %cst_117 : f32 to vector<4x1xf32>
    %296 = arith.addf %295, %294 : vector<4x1xf32>
    %297 = arith.divf %295, %296 : vector<4x1xf32>
    %298 = vector.extract_strided_slice %282 {offsets = [0, 0], sizes = [2, 32], strides = [1, 1]} : vector<4x32xf32> to vector<2x32xf32>
    %299 = vector.extract_strided_slice %282 {offsets = [2, 0], sizes = [2, 32], strides = [1, 1]} : vector<4x32xf32> to vector<2x32xf32>
    %300 = tpu.concatenate %298, %299 in 1 : vector<2x32xf32>, vector<2x32xf32> -> vector<2x64xf32>
    %c0_118 = arith.constant 0 : index
    %c0_119 = arith.constant 0 : index
    %301 = vector.load %arg6[%c0_118, %c0_119] : memref<2x64xf32, #tpu.memory_space<vmem>>, vector<2x64xf32>
    tpu.vector_store %arg6[%c0_118, %c0_119], %300 {strides = array<i32>} : memref<2x64xf32, #tpu.memory_space<vmem>>, vector<2x64xf32>,
    %cst_120 = arith.constant 1.000000e+00 : f32
    %302 = vector.broadcast %cst_120 : f32 to vector<1x1xf32>
    %303 = arith.truncf %217 : vector<2x32xf32> to vector<2x32xbf16>
    %cst_121 = arith.constant dense<0.000000e+00> : vector<2x384xf32>
    %304 = tpu.matmul %303, %81, %cst_121 {dimension_numbers = #tpu.dot_dimension_numbers<[1], [0], [0], [1], [0, 0, 1, 1], [], []>} : vector<2x32xbf16>, vector<32x384xbf16>, vector<2x384xf32> -> vector<2x384xf32>
    %305 = vector.broadcast %82 : vector<1x384xf32> to vector<2x384xf32>
    %306 = arith.addf %304, %305 : vector<2x384xf32>
    %307 = arith.truncf %217 : vector<2x32xf32> to vector<2x32xbf16>
    %cst_122 = arith.constant dense<0.000000e+00> : vector<2x32xf32>
    %308 = tpu.matmul %307, %67, %cst_122 {dimension_numbers = #tpu.dot_dimension_numbers<[1], [0], [0], [1], [0, 0, 1, 1], [], []>} : vector<2x32xbf16>, vector<32x32xbf16>, vector<2x32xf32> -> vector<2x32xf32>
    %309 = arith.truncf %119 : vector<2x32xf32> to vector<2x32xbf16>
    %cst_123 = arith.constant dense<0.000000e+00> : vector<2x768xf32>
    %310 = tpu.matmul %309, %79, %cst_123 {dimension_numbers = #tpu.dot_dimension_numbers<[1], [0], [0], [1], [0, 0, 1, 1], [], []>} : vector<2x32xbf16>, vector<32x768xbf16>, vector<2x768xf32> -> vector<2x768xf32>
    %311 = vector.extract_strided_slice %310 {offsets = [0, 0], sizes = [2, 384], strides = [1, 1]} : vector<2x768xf32> to vector<2x384xf32>
    %312 = arith.addf %311, %306 : vector<2x384xf32>
    %313 = vector.extract_strided_slice %310 {offsets = [0, 384], sizes = [2, 384], strides = [1, 1]} : vector<2x768xf32> to vector<2x384xf32>
    %314 = vector.broadcast %83 : vector<1x384xf32> to vector<2x384xf32>
    %315 = arith.addf %313, %314 : vector<2x384xf32>
    %316 = vector.extract_strided_slice %312 {offsets = [0, 0], sizes = [2, 32], strides = [1, 1]} : vector<2x384xf32> to vector<2x32xf32>
    %317 = vector.extract_strided_slice %315 {offsets = [0, 0], sizes = [2, 32], strides = [1, 1]} : vector<2x384xf32> to vector<2x32xf32>
    %318 = arith.addf %316, %317 : vector<2x32xf32>
    %319 = arith.negf %318 : vector<2x32xf32>
    %320 = math.exp %319 : vector<2x32xf32>
    %cst_124 = arith.constant 1.000000e+00 : f32
    %321 = vector.broadcast %cst_124 : f32 to vector<2x32xf32>
    %322 = arith.addf %321, %320 : vector<2x32xf32>
    %323 = arith.divf %321, %322 : vector<2x32xf32>
    %324 = vector.extract_strided_slice %312 {offsets = [0, 128], sizes = [2, 32], strides = [1, 1]} : vector<2x384xf32> to vector<2x32xf32>
    %325 = vector.extract_strided_slice %315 {offsets = [0, 128], sizes = [2, 32], strides = [1, 1]} : vector<2x384xf32> to vector<2x32xf32>
    %326 = arith.addf %324, %325 : vector<2x32xf32>
    %327 = arith.negf %326 : vector<2x32xf32>
    %328 = math.exp %327 : vector<2x32xf32>
    %cst_125 = arith.constant 1.000000e+00 : f32
    %329 = vector.broadcast %cst_125 : f32 to vector<2x32xf32>
    %330 = arith.addf %329, %328 : vector<2x32xf32>
    %331 = arith.divf %329, %330 : vector<2x32xf32>
    %332 = vector.extract_strided_slice %312 {offsets = [0, 256], sizes = [2, 32], strides = [1, 1]} : vector<2x384xf32> to vector<2x32xf32>
    %333 = vector.extract_strided_slice %315 {offsets = [0, 256], sizes = [2, 32], strides = [1, 1]} : vector<2x384xf32> to vector<2x32xf32>
    %334 = arith.mulf %323, %333 : vector<2x32xf32>
    %335 = arith.addf %332, %334 : vector<2x32xf32>
    %336 = math.tanh %335 : vector<2x32xf32>
    %cst_126 = arith.constant 1.000000e+00 : f32
    %337 = vector.broadcast %cst_126 : f32 to vector<2x32xf32>
    %338 = arith.subf %337, %331 : vector<2x32xf32>
    %339 = arith.mulf %338, %336 : vector<2x32xf32>
    %340 = arith.mulf %331, %119 : vector<2x32xf32>
    %341 = arith.addf %339, %340 : vector<2x32xf32>
    %342 = arith.truncf %341 : vector<2x32xf32> to vector<2x32xbf16>
    %cst_127 = arith.constant dense<0.000000e+00> : vector<2x32xf32>
    %343 = tpu.matmul %342, %41, %cst_127 {dimension_numbers = #tpu.dot_dimension_numbers<[1], [0], [0], [1], [0, 0, 1, 1], [], []>} : vector<2x32xbf16>, vector<32x32xbf16>, vector<2x32xf32> -> vector<2x32xf32>
    %344 = vector.broadcast %42 : vector<1x32xf32> to vector<2x32xf32>
    %345 = arith.addf %343, %344 : vector<2x32xf32>
    %cst_128 = arith.constant dense<0.000000e+00> : vector<2xf32>
    %346 = vector.multi_reduction <add>, %345, %cst_128 [1] : vector<2x32xf32> to vector<2xf32>
    %347 = vector.shape_cast %346 : vector<2xf32> to vector<2x1xf32>
    %cst_129 = arith.constant 3.200000e+01 : f32
    %348 = vector.broadcast %cst_129 : f32 to vector<2x1xf32>
    %349 = arith.divf %347, %348 : vector<2x1xf32>
    %350 = arith.mulf %345, %345 : vector<2x32xf32>
    %cst_130 = arith.constant dense<0.000000e+00> : vector<2xf32>
    %351 = vector.multi_reduction <add>, %350, %cst_130 [1] : vector<2x32xf32> to vector<2xf32>
    %352 = vector.shape_cast %351 : vector<2xf32> to vector<2x1xf32>
    %cst_131 = arith.constant 3.200000e+01 : f32
    %353 = vector.broadcast %cst_131 : f32 to vector<2x1xf32>
    %354 = arith.divf %352, %353 : vector<2x1xf32>
    %355 = arith.mulf %349, %349 : vector<2x1xf32>
    %356 = arith.subf %354, %355 : vector<2x1xf32>
    %357 = vector.broadcast %349 : vector<2x1xf32> to vector<2x32xf32>
    %358 = arith.subf %345, %357 : vector<2x32xf32>
    %cst_132 = arith.constant 9.99999974E-6 : f32
    %359 = vector.broadcast %cst_132 : f32 to vector<2x1xf32>
    %360 = arith.addf %356, %359 : vector<2x1xf32>
    %361 = math.rsqrt %360 : vector<2x1xf32>
    %362 = vector.broadcast %361 : vector<2x1xf32> to vector<2x32xf32>
    %363 = arith.mulf %358, %362 : vector<2x32xf32>
    %364 = vector.broadcast %43 : vector<1x32xf32> to vector<2x32xf32>
    %365 = arith.mulf %363, %364 : vector<2x32xf32>
    %366 = vector.broadcast %44 : vector<1x32xf32> to vector<2x32xf32>
    %367 = arith.addf %365, %366 : vector<2x32xf32>
    %cst_133 = arith.constant 0.000000e+00 : f32
    %368 = vector.broadcast %cst_133 : f32 to vector<2x32xf32>
    %369 = arith.maximumf %367, %368 : vector<2x32xf32>
    %370 = arith.truncf %369 : vector<2x32xf32> to vector<2x32xbf16>
    %cst_134 = arith.constant dense<0.000000e+00> : vector<2x32xf32>
    %371 = tpu.matmul %370, %46, %cst_134 {dimension_numbers = #tpu.dot_dimension_numbers<[1], [0], [0], [1], [0, 0, 1, 1], [], []>} : vector<2x32xbf16>, vector<32x32xbf16>, vector<2x32xf32> -> vector<2x32xf32>
    %372 = vector.broadcast %47 : vector<1x32xf32> to vector<2x32xf32>
    %373 = arith.addf %371, %372 : vector<2x32xf32>
    %374 = arith.truncf %373 : vector<2x32xf32> to vector<2x32xbf16>
    %cst_135 = arith.constant dense<0.000000e+00> : vector<2x32xf32>
    %375 = tpu.matmul %374, %33, %cst_135 {dimension_numbers = #tpu.dot_dimension_numbers<[1], [0], [0], [1], [0, 0, 1, 1], [], []>} : vector<2x32xbf16>, vector<32x32xbf16>, vector<2x32xf32> -> vector<2x32xf32>
    %376 = vector.broadcast %34 : vector<1x32xf32> to vector<2x32xf32>
    %377 = arith.addf %375, %376 : vector<2x32xf32>
    %cst_136 = arith.constant dense<0.000000e+00> : vector<2xf32>
    %378 = vector.multi_reduction <add>, %377, %cst_136 [1] : vector<2x32xf32> to vector<2xf32>
    %379 = vector.shape_cast %378 : vector<2xf32> to vector<2x1xf32>
    %cst_137 = arith.constant 3.200000e+01 : f32
    %380 = vector.broadcast %cst_137 : f32 to vector<2x1xf32>
    %381 = arith.divf %379, %380 : vector<2x1xf32>
    %382 = arith.mulf %377, %377 : vector<2x32xf32>
    %cst_138 = arith.constant dense<0.000000e+00> : vector<2xf32>
    %383 = vector.multi_reduction <add>, %382, %cst_138 [1] : vector<2x32xf32> to vector<2xf32>
    %384 = vector.shape_cast %383 : vector<2xf32> to vector<2x1xf32>
    %cst_139 = arith.constant 3.200000e+01 : f32
    %385 = vector.broadcast %cst_139 : f32 to vector<2x1xf32>
    %386 = arith.divf %384, %385 : vector<2x1xf32>
    %387 = arith.mulf %381, %381 : vector<2x1xf32>
    %388 = arith.subf %386, %387 : vector<2x1xf32>
    %389 = vector.broadcast %381 : vector<2x1xf32> to vector<2x32xf32>
    %390 = arith.subf %377, %389 : vector<2x32xf32>
    %cst_140 = arith.constant 9.99999974E-6 : f32
    %391 = vector.broadcast %cst_140 : f32 to vector<2x1xf32>
    %392 = arith.addf %388, %391 : vector<2x1xf32>
    %393 = math.rsqrt %392 : vector<2x1xf32>
    %394 = vector.broadcast %393 : vector<2x1xf32> to vector<2x32xf32>
    %395 = arith.mulf %390, %394 : vector<2x32xf32>
    %396 = vector.broadcast %35 : vector<1x32xf32> to vector<2x32xf32>
    %397 = arith.mulf %395, %396 : vector<2x32xf32>
    %398 = vector.broadcast %36 : vector<1x32xf32> to vector<2x32xf32>
    %399 = arith.addf %397, %398 : vector<2x32xf32>
    %cst_141 = arith.constant 0.000000e+00 : f32
    %400 = vector.broadcast %cst_141 : f32 to vector<2x32xf32>
    %401 = arith.maximumf %399, %400 : vector<2x32xf32>
    %402 = arith.truncf %401 : vector<2x32xf32> to vector<2x32xbf16>
    %cst_142 = arith.constant dense<0.000000e+00> : vector<2x32xf32>
    %403 = tpu.matmul %402, %38, %cst_142 {dimension_numbers = #tpu.dot_dimension_numbers<[1], [0], [0], [1], [0, 0, 1, 1], [], []>} : vector<2x32xbf16>, vector<32x32xbf16>, vector<2x32xf32> -> vector<2x32xf32>
    %404 = vector.broadcast %39 : vector<1x32xf32> to vector<2x32xf32>
    %405 = arith.addf %403, %404 : vector<2x32xf32>
    %406 = arith.truncf %405 : vector<2x32xf32> to vector<2x32xbf16>
    %cst_143 = arith.constant dense<0.000000e+00> : vector<2x256xf32>
    %407 = tpu.matmul %406, %85, %cst_143 {dimension_numbers = #tpu.dot_dimension_numbers<[1], [0], [0], [1], [0, 0, 1, 1], [], []>} : vector<2x32xbf16>, vector<32x256xbf16>, vector<2x256xf32> -> vector<2x256xf32>
    %408 = vector.extract_strided_slice %407 {offsets = [0, 0], sizes = [2, 32], strides = [1, 1]} : vector<2x256xf32> to vector<2x32xf32>
    %409 = arith.truncf %119 : vector<2x32xf32> to vector<2x32xbf16>
    %cst_144 = arith.constant dense<0.000000e+00> : vector<2x32xf32>
    %410 = tpu.matmul %409, %55, %cst_144 {dimension_numbers = #tpu.dot_dimension_numbers<[1], [0], [0], [1], [0, 0, 1, 1], [], []>} : vector<2x32xbf16>, vector<32x32xbf16>, vector<2x32xf32> -> vector<2x32xf32>
    %411 = arith.addf %408, %410 : vector<2x32xf32>
    %412 = vector.broadcast %56 : vector<1x32xf32> to vector<2x32xf32>
    %413 = arith.addf %411, %412 : vector<2x32xf32>
    %cst_145 = arith.constant 0.000000e+00 : f32
    %414 = vector.broadcast %cst_145 : f32 to vector<2x32xf32>
    %415 = arith.maximumf %413, %414 : vector<2x32xf32>
    %416 = arith.truncf %415 : vector<2x32xf32> to vector<2x32xbf16>
    %cst_146 = arith.constant dense<0.000000e+00> : vector<2x1xf32>
    %417 = tpu.matmul %416, %58, %cst_146 {dimension_numbers = #tpu.dot_dimension_numbers<[1], [0], [0], [1], [0, 0, 1, 1], [], []>} : vector<2x32xbf16>, vector<32x1xbf16>, vector<2x1xf32> -> vector<2x1xf32>
    %418 = vector.broadcast %59 : vector<1x1xf32> to vector<2x1xf32>
    %419 = arith.addf %417, %418 : vector<2x1xf32>
    %420 = arith.negf %419 : vector<2x1xf32>
    %421 = math.exp %420 : vector<2x1xf32>
    %cst_147 = arith.constant 1.000000e+00 : f32
    %422 = vector.broadcast %cst_147 : f32 to vector<2x1xf32>
    %423 = arith.addf %422, %421 : vector<2x1xf32>
    %424 = arith.divf %422, %423 : vector<2x1xf32>
    %425 = vector.extract_strided_slice %407 {offsets = [0, 128], sizes = [2, 32], strides = [1, 1]} : vector<2x256xf32> to vector<2x32xf32>
    %426 = vector.broadcast %60 : vector<1x32xf32> to vector<2x32xf32>
    %427 = arith.addf %425, %426 : vector<2x32xf32>
    %cst_148 = arith.constant 0.000000e+00 : f32
    %428 = vector.broadcast %cst_148 : f32 to vector<2x32xf32>
    %429 = arith.maximumf %427, %428 : vector<2x32xf32>
    %430 = arith.truncf %429 : vector<2x32xf32> to vector<2x32xbf16>
    %cst_149 = arith.constant dense<0.000000e+00> : vector<2x32xf32>
    %431 = tpu.matmul %430, %62, %cst_149 {dimension_numbers = #tpu.dot_dimension_numbers<[1], [0], [0], [1], [0, 0, 1, 1], [], []>} : vector<2x32xbf16>, vector<32x32xbf16>, vector<2x32xf32> -> vector<2x32xf32>
    %432 = vector.broadcast %63 : vector<1x32xf32> to vector<2x32xf32>
    %433 = arith.addf %431, %432 : vector<2x32xf32>
    %434 = vector.broadcast %424 : vector<2x1xf32> to vector<2x32xf32>
    %435 = arith.mulf %433, %434 : vector<2x32xf32>
    %436 = arith.addf %119, %435 : vector<2x32xf32>
    %437 = vector.broadcast %302 : vector<1x1xf32> to vector<2x32xf32>
    %438 = arith.mulf %437, %436 : vector<2x32xf32>
    %cst_150 = arith.constant 1.000000e+00 : f32
    %439 = vector.broadcast %cst_150 : f32 to vector<1x1xf32>
    %440 = arith.subf %439, %302 : vector<1x1xf32>
    %441 = vector.broadcast %440 : vector<1x1xf32> to vector<2x32xf32>
    %442 = arith.mulf %441, %119 : vector<2x32xf32>
    %443 = arith.addf %438, %442 : vector<2x32xf32>
    %444 = arith.truncf %443 : vector<2x32xf32> to vector<2x32xbf16>
    %cst_151 = arith.constant dense<0.000000e+00> : vector<2x32xf32>
    %445 = tpu.matmul %444, %65, %cst_151 {dimension_numbers = #tpu.dot_dimension_numbers<[1], [0], [0], [1], [0, 0, 1, 1], [], []>} : vector<2x32xbf16>, vector<32x32xbf16>, vector<2x32xf32> -> vector<2x32xf32>
    %446 = arith.addf %445, %308 : vector<2x32xf32>
    %447 = vector.broadcast %68 : vector<1x32xf32> to vector<2x32xf32>
    %448 = arith.addf %446, %447 : vector<2x32xf32>
    %cst_152 = arith.constant 0.000000e+00 : f32
    %449 = vector.broadcast %cst_152 : f32 to vector<2x32xf32>
    %450 = arith.maximumf %448, %449 : vector<2x32xf32>
    %451 = arith.truncf %450 : vector<2x32xf32> to vector<2x32xbf16>
    %cst_153 = arith.constant dense<0.000000e+00> : vector<2x1xf32>
    %452 = tpu.matmul %451, %70, %cst_153 {dimension_numbers = #tpu.dot_dimension_numbers<[1], [0], [0], [1], [0, 0, 1, 1], [], []>} : vector<2x32xbf16>, vector<32x1xbf16>, vector<2x1xf32> -> vector<2x1xf32>
    %453 = vector.broadcast %71 : vector<1x1xf32> to vector<2x1xf32>
    %454 = arith.addf %452, %453 : vector<2x1xf32>
    %455 = arith.negf %454 : vector<2x1xf32>
    %456 = math.exp %455 : vector<2x1xf32>
    %cst_154 = arith.constant 1.000000e+00 : f32
    %457 = vector.broadcast %cst_154 : f32 to vector<2x1xf32>
    %458 = arith.addf %457, %456 : vector<2x1xf32>
    %459 = arith.divf %457, %458 : vector<2x1xf32>
    %cst_155 = arith.constant dense<0.000000e+00> : vector<1xf32>
    %460 = vector.multi_reduction <add>, %459, %cst_155 [0] : vector<2x1xf32> to vector<1xf32>
    %461 = vector.shape_cast %460 : vector<1xf32> to vector<1x1xf32>
    %cst_156 = arith.constant 2.000000e+00 : f32
    %462 = vector.broadcast %cst_156 : f32 to vector<1x1xf32>
    %463 = arith.divf %461, %462 : vector<1x1xf32>
    %cst_157 = arith.constant 0.899999976 : f32
    %464 = vector.broadcast %cst_157 : f32 to vector<1x1xf32>
    %465 = arith.cmpf ole, %463, %464 : vector<1x1xf32>
    %466 = arith.extui %465 : vector<1x1xi1> to vector<1x1xi32>
    %467 = arith.sitofp %466 : vector<1x1xi32> to vector<1x1xf32>
    %468 = arith.mulf %302, %467 : vector<1x1xf32>
    %469 = arith.truncf %443 : vector<2x32xf32> to vector<2x32xbf16>
    %cst_158 = arith.constant dense<0.000000e+00> : vector<2x768xf32>
    %470 = tpu.matmul %469, %79, %cst_158 {dimension_numbers = #tpu.dot_dimension_numbers<[1], [0], [0], [1], [0, 0, 1, 1], [], []>} : vector<2x32xbf16>, vector<32x768xbf16>, vector<2x768xf32> -> vector<2x768xf32>
    %471 = vector.extract_strided_slice %470 {offsets = [0, 0], sizes = [2, 384], strides = [1, 1]} : vector<2x768xf32> to vector<2x384xf32>
    %472 = arith.addf %471, %306 : vector<2x384xf32>
    %473 = vector.extract_strided_slice %470 {offsets = [0, 384], sizes = [2, 384], strides = [1, 1]} : vector<2x768xf32> to vector<2x384xf32>
    %474 = vector.broadcast %83 : vector<1x384xf32> to vector<2x384xf32>
    %475 = arith.addf %473, %474 : vector<2x384xf32>
    %476 = vector.extract_strided_slice %472 {offsets = [0, 0], sizes = [2, 32], strides = [1, 1]} : vector<2x384xf32> to vector<2x32xf32>
    %477 = vector.extract_strided_slice %475 {offsets = [0, 0], sizes = [2, 32], strides = [1, 1]} : vector<2x384xf32> to vector<2x32xf32>
    %478 = arith.addf %476, %477 : vector<2x32xf32>
    %479 = arith.negf %478 : vector<2x32xf32>
    %480 = math.exp %479 : vector<2x32xf32>
    %cst_159 = arith.constant 1.000000e+00 : f32
    %481 = vector.broadcast %cst_159 : f32 to vector<2x32xf32>
    %482 = arith.addf %481, %480 : vector<2x32xf32>
    %483 = arith.divf %481, %482 : vector<2x32xf32>
    %484 = vector.extract_strided_slice %472 {offsets = [0, 128], sizes = [2, 32], strides = [1, 1]} : vector<2x384xf32> to vector<2x32xf32>
    %485 = vector.extract_strided_slice %475 {offsets = [0, 128], sizes = [2, 32], strides = [1, 1]} : vector<2x384xf32> to vector<2x32xf32>
    %486 = arith.addf %484, %485 : vector<2x32xf32>
    %487 = arith.negf %486 : vector<2x32xf32>
    %488 = math.exp %487 : vector<2x32xf32>
    %cst_160 = arith.constant 1.000000e+00 : f32
    %489 = vector.broadcast %cst_160 : f32 to vector<2x32xf32>
    %490 = arith.addf %489, %488 : vector<2x32xf32>
    %491 = arith.divf %489, %490 : vector<2x32xf32>
    %492 = vector.extract_strided_slice %472 {offsets = [0, 256], sizes = [2, 32], strides = [1, 1]} : vector<2x384xf32> to vector<2x32xf32>
    %493 = vector.extract_strided_slice %475 {offsets = [0, 256], sizes = [2, 32], strides = [1, 1]} : vector<2x384xf32> to vector<2x32xf32>
    %494 = arith.mulf %483, %493 : vector<2x32xf32>
    %495 = arith.addf %492, %494 : vector<2x32xf32>
    %496 = math.tanh %495 : vector<2x32xf32>
    %cst_161 = arith.constant 1.000000e+00 : f32
    %497 = vector.broadcast %cst_161 : f32 to vector<2x32xf32>
    %498 = arith.subf %497, %491 : vector<2x32xf32>
    %499 = arith.mulf %498, %496 : vector<2x32xf32>
    %500 = arith.mulf %491, %443 : vector<2x32xf32>
    %501 = arith.addf %499, %500 : vector<2x32xf32>
    %502 = arith.truncf %501 : vector<2x32xf32> to vector<2x32xbf16>
    %cst_162 = arith.constant dense<0.000000e+00> : vector<2x32xf32>
    %503 = tpu.matmul %502, %41, %cst_162 {dimension_numbers = #tpu.dot_dimension_numbers<[1], [0], [0], [1], [0, 0, 1, 1], [], []>} : vector<2x32xbf16>, vector<32x32xbf16>, vector<2x32xf32> -> vector<2x32xf32>
    %504 = vector.broadcast %42 : vector<1x32xf32> to vector<2x32xf32>
    %505 = arith.addf %503, %504 : vector<2x32xf32>
    %cst_163 = arith.constant dense<0.000000e+00> : vector<2xf32>
    %506 = vector.multi_reduction <add>, %505, %cst_163 [1] : vector<2x32xf32> to vector<2xf32>
    %507 = vector.shape_cast %506 : vector<2xf32> to vector<2x1xf32>
    %cst_164 = arith.constant 3.200000e+01 : f32
    %508 = vector.broadcast %cst_164 : f32 to vector<2x1xf32>
    %509 = arith.divf %507, %508 : vector<2x1xf32>
    %510 = arith.mulf %505, %505 : vector<2x32xf32>
    %cst_165 = arith.constant dense<0.000000e+00> : vector<2xf32>
    %511 = vector.multi_reduction <add>, %510, %cst_165 [1] : vector<2x32xf32> to vector<2xf32>
    %512 = vector.shape_cast %511 : vector<2xf32> to vector<2x1xf32>
    %cst_166 = arith.constant 3.200000e+01 : f32
    %513 = vector.broadcast %cst_166 : f32 to vector<2x1xf32>
    %514 = arith.divf %512, %513 : vector<2x1xf32>
    %515 = arith.mulf %509, %509 : vector<2x1xf32>
    %516 = arith.subf %514, %515 : vector<2x1xf32>
    %517 = vector.broadcast %509 : vector<2x1xf32> to vector<2x32xf32>
    %518 = arith.subf %505, %517 : vector<2x32xf32>
    %cst_167 = arith.constant 9.99999974E-6 : f32
    %519 = vector.broadcast %cst_167 : f32 to vector<2x1xf32>
    %520 = arith.addf %516, %519 : vector<2x1xf32>
    %521 = math.rsqrt %520 : vector<2x1xf32>
    %522 = vector.broadcast %521 : vector<2x1xf32> to vector<2x32xf32>
    %523 = arith.mulf %518, %522 : vector<2x32xf32>
    %524 = vector.broadcast %43 : vector<1x32xf32> to vector<2x32xf32>
    %525 = arith.mulf %523, %524 : vector<2x32xf32>
    %526 = vector.broadcast %44 : vector<1x32xf32> to vector<2x32xf32>
    %527 = arith.addf %525, %526 : vector<2x32xf32>
    %cst_168 = arith.constant 0.000000e+00 : f32
    %528 = vector.broadcast %cst_168 : f32 to vector<2x32xf32>
    %529 = arith.maximumf %527, %528 : vector<2x32xf32>
    %530 = arith.truncf %529 : vector<2x32xf32> to vector<2x32xbf16>
    %cst_169 = arith.constant dense<0.000000e+00> : vector<2x32xf32>
    %531 = tpu.matmul %530, %46, %cst_169 {dimension_numbers = #tpu.dot_dimension_numbers<[1], [0], [0], [1], [0, 0, 1, 1], [], []>} : vector<2x32xbf16>, vector<32x32xbf16>, vector<2x32xf32> -> vector<2x32xf32>
    %532 = vector.broadcast %47 : vector<1x32xf32> to vector<2x32xf32>
    %533 = arith.addf %531, %532 : vector<2x32xf32>
    %534 = arith.truncf %533 : vector<2x32xf32> to vector<2x32xbf16>
    %cst_170 = arith.constant dense<0.000000e+00> : vector<2x32xf32>
    %535 = tpu.matmul %534, %33, %cst_170 {dimension_numbers = #tpu.dot_dimension_numbers<[1], [0], [0], [1], [0, 0, 1, 1], [], []>} : vector<2x32xbf16>, vector<32x32xbf16>, vector<2x32xf32> -> vector<2x32xf32>
    %536 = vector.broadcast %34 : vector<1x32xf32> to vector<2x32xf32>
    %537 = arith.addf %535, %536 : vector<2x32xf32>
    %cst_171 = arith.constant dense<0.000000e+00> : vector<2xf32>
    %538 = vector.multi_reduction <add>, %537, %cst_171 [1] : vector<2x32xf32> to vector<2xf32>
    %539 = vector.shape_cast %538 : vector<2xf32> to vector<2x1xf32>
    %cst_172 = arith.constant 3.200000e+01 : f32
    %540 = vector.broadcast %cst_172 : f32 to vector<2x1xf32>
    %541 = arith.divf %539, %540 : vector<2x1xf32>
    %542 = arith.mulf %537, %537 : vector<2x32xf32>
    %cst_173 = arith.constant dense<0.000000e+00> : vector<2xf32>
    %543 = vector.multi_reduction <add>, %542, %cst_173 [1] : vector<2x32xf32> to vector<2xf32>
    %544 = vector.shape_cast %543 : vector<2xf32> to vector<2x1xf32>
    %cst_174 = arith.constant 3.200000e+01 : f32
    %545 = vector.broadcast %cst_174 : f32 to vector<2x1xf32>
    %546 = arith.divf %544, %545 : vector<2x1xf32>
    %547 = arith.mulf %541, %541 : vector<2x1xf32>
    %548 = arith.subf %546, %547 : vector<2x1xf32>
    %549 = vector.broadcast %541 : vector<2x1xf32> to vector<2x32xf32>
    %550 = arith.subf %537, %549 : vector<2x32xf32>
    %cst_175 = arith.constant 9.99999974E-6 : f32
    %551 = vector.broadcast %cst_175 : f32 to vector<2x1xf32>
    %552 = arith.addf %548, %551 : vector<2x1xf32>
    %553 = math.rsqrt %552 : vector<2x1xf32>
    %554 = vector.broadcast %553 : vector<2x1xf32> to vector<2x32xf32>
    %555 = arith.mulf %550, %554 : vector<2x32xf32>
    %556 = vector.broadcast %35 : vector<1x32xf32> to vector<2x32xf32>
    %557 = arith.mulf %555, %556 : vector<2x32xf32>
    %558 = vector.broadcast %36 : vector<1x32xf32> to vector<2x32xf32>
    %559 = arith.addf %557, %558 : vector<2x32xf32>
    %cst_176 = arith.constant 0.000000e+00 : f32
    %560 = vector.broadcast %cst_176 : f32 to vector<2x32xf32>
    %561 = arith.maximumf %559, %560 : vector<2x32xf32>
    %562 = arith.truncf %561 : vector<2x32xf32> to vector<2x32xbf16>
    %cst_177 = arith.constant dense<0.000000e+00> : vector<2x32xf32>
    %563 = tpu.matmul %562, %38, %cst_177 {dimension_numbers = #tpu.dot_dimension_numbers<[1], [0], [0], [1], [0, 0, 1, 1], [], []>} : vector<2x32xbf16>, vector<32x32xbf16>, vector<2x32xf32> -> vector<2x32xf32>
    %564 = vector.broadcast %39 : vector<1x32xf32> to vector<2x32xf32>
    %565 = arith.addf %563, %564 : vector<2x32xf32>
    %566 = arith.truncf %565 : vector<2x32xf32> to vector<2x32xbf16>
    %cst_178 = arith.constant dense<0.000000e+00> : vector<2x256xf32>
    %567 = tpu.matmul %566, %85, %cst_178 {dimension_numbers = #tpu.dot_dimension_numbers<[1], [0], [0], [1], [0, 0, 1, 1], [], []>} : vector<2x32xbf16>, vector<32x256xbf16>, vector<2x256xf32> -> vector<2x256xf32>
    %568 = vector.extract_strided_slice %567 {offsets = [0, 0], sizes = [2, 32], strides = [1, 1]} : vector<2x256xf32> to vector<2x32xf32>
    %569 = arith.truncf %443 : vector<2x32xf32> to vector<2x32xbf16>
    %cst_179 = arith.constant dense<0.000000e+00> : vector<2x32xf32>
    %570 = tpu.matmul %569, %55, %cst_179 {dimension_numbers = #tpu.dot_dimension_numbers<[1], [0], [0], [1], [0, 0, 1, 1], [], []>} : vector<2x32xbf16>, vector<32x32xbf16>, vector<2x32xf32> -> vector<2x32xf32>
    %571 = arith.addf %568, %570 : vector<2x32xf32>
    %572 = vector.broadcast %56 : vector<1x32xf32> to vector<2x32xf32>
    %573 = arith.addf %571, %572 : vector<2x32xf32>
    %cst_180 = arith.constant 0.000000e+00 : f32
    %574 = vector.broadcast %cst_180 : f32 to vector<2x32xf32>
    %575 = arith.maximumf %573, %574 : vector<2x32xf32>
    %576 = arith.truncf %575 : vector<2x32xf32> to vector<2x32xbf16>
    %cst_181 = arith.constant dense<0.000000e+00> : vector<2x1xf32>
    %577 = tpu.matmul %576, %58, %cst_181 {dimension_numbers = #tpu.dot_dimension_numbers<[1], [0], [0], [1], [0, 0, 1, 1], [], []>} : vector<2x32xbf16>, vector<32x1xbf16>, vector<2x1xf32> -> vector<2x1xf32>
    %578 = vector.broadcast %59 : vector<1x1xf32> to vector<2x1xf32>
    %579 = arith.addf %577, %578 : vector<2x1xf32>
    %580 = arith.negf %579 : vector<2x1xf32>
    %581 = math.exp %580 : vector<2x1xf32>
    %cst_182 = arith.constant 1.000000e+00 : f32
    %582 = vector.broadcast %cst_182 : f32 to vector<2x1xf32>
    %583 = arith.addf %582, %581 : vector<2x1xf32>
    %584 = arith.divf %582, %583 : vector<2x1xf32>
    %585 = vector.extract_strided_slice %567 {offsets = [0, 128], sizes = [2, 32], strides = [1, 1]} : vector<2x256xf32> to vector<2x32xf32>
    %586 = vector.broadcast %60 : vector<1x32xf32> to vector<2x32xf32>
    %587 = arith.addf %585, %586 : vector<2x32xf32>
    %cst_183 = arith.constant 0.000000e+00 : f32
    %588 = vector.broadcast %cst_183 : f32 to vector<2x32xf32>
    %589 = arith.maximumf %587, %588 : vector<2x32xf32>
    %590 = arith.truncf %589 : vector<2x32xf32> to vector<2x32xbf16>
    %cst_184 = arith.constant dense<0.000000e+00> : vector<2x32xf32>
    %591 = tpu.matmul %590, %62, %cst_184 {dimension_numbers = #tpu.dot_dimension_numbers<[1], [0], [0], [1], [0, 0, 1, 1], [], []>} : vector<2x32xbf16>, vector<32x32xbf16>, vector<2x32xf32> -> vector<2x32xf32>
    %592 = vector.broadcast %63 : vector<1x32xf32> to vector<2x32xf32>
    %593 = arith.addf %591, %592 : vector<2x32xf32>
    %594 = vector.broadcast %584 : vector<2x1xf32> to vector<2x32xf32>
    %595 = arith.mulf %593, %594 : vector<2x32xf32>
    %596 = arith.addf %443, %595 : vector<2x32xf32>
    %597 = vector.broadcast %468 : vector<1x1xf32> to vector<2x32xf32>
    %598 = arith.mulf %597, %596 : vector<2x32xf32>
    %cst_185 = arith.constant 1.000000e+00 : f32
    %599 = vector.broadcast %cst_185 : f32 to vector<1x1xf32>
    %600 = arith.subf %599, %468 : vector<1x1xf32>
    %601 = vector.broadcast %600 : vector<1x1xf32> to vector<2x32xf32>
    %602 = arith.mulf %601, %443 : vector<2x32xf32>
    %603 = arith.addf %598, %602 : vector<2x32xf32>
    %604 = vector.extract_strided_slice %297 {offsets = [0, 0], sizes = [2, 1], strides = [1, 1]} : vector<4x1xf32> to vector<2x1xf32>
    %cst_186 = arith.constant dense<0.000000e+00> : vector<1xf32>
    %605 = vector.multi_reduction <add>, %604, %cst_186 [0] : vector<2x1xf32> to vector<1xf32>
    %606 = vector.shape_cast %605 : vector<1xf32> to vector<1x1xf32>
    %cst_187 = arith.constant 2.000000e+00 : f32
    %607 = vector.broadcast %cst_187 : f32 to vector<1x1xf32>
    %608 = arith.divf %606, %607 : vector<1x1xf32>
    %cst_188 = arith.constant 0.899999976 : f32
    %609 = vector.broadcast %cst_188 : f32 to vector<1x1xf32>
    %610 = arith.cmpf ole, %608, %609 : vector<1x1xf32>
    %611 = arith.extui %610 : vector<1x1xi1> to vector<1x1xi32>
    %612 = arith.sitofp %611 : vector<1x1xi32> to vector<1x1xf32>
    %613 = arith.mulf %302, %612 : vector<1x1xf32>
    %614 = arith.truncf %248 : vector<2x32xf32> to vector<2x32xbf16>
    %cst_189 = arith.constant dense<0.000000e+00> : vector<2x384xf32>
    %615 = tpu.matmul %614, %81, %cst_189 {dimension_numbers = #tpu.dot_dimension_numbers<[1], [0], [0], [1], [0, 0, 1, 1], [], []>} : vector<2x32xbf16>, vector<32x384xbf16>, vector<2x384xf32> -> vector<2x384xf32>
    %616 = vector.broadcast %82 : vector<1x384xf32> to vector<2x384xf32>
    %617 = arith.addf %615, %616 : vector<2x384xf32>
    %618 = arith.truncf %248 : vector<2x32xf32> to vector<2x32xbf16>
    %cst_190 = arith.constant dense<0.000000e+00> : vector<2x32xf32>
    %619 = tpu.matmul %618, %67, %cst_190 {dimension_numbers = #tpu.dot_dimension_numbers<[1], [0], [0], [1], [0, 0, 1, 1], [], []>} : vector<2x32xbf16>, vector<32x32xbf16>, vector<2x32xf32> -> vector<2x32xf32>
    %620 = arith.truncf %603 : vector<2x32xf32> to vector<2x32xbf16>
    %cst_191 = arith.constant dense<0.000000e+00> : vector<2x768xf32>
    %621 = tpu.matmul %620, %79, %cst_191 {dimension_numbers = #tpu.dot_dimension_numbers<[1], [0], [0], [1], [0, 0, 1, 1], [], []>} : vector<2x32xbf16>, vector<32x768xbf16>, vector<2x768xf32> -> vector<2x768xf32>
    %622 = vector.extract_strided_slice %621 {offsets = [0, 0], sizes = [2, 384], strides = [1, 1]} : vector<2x768xf32> to vector<2x384xf32>
    %623 = arith.addf %622, %617 : vector<2x384xf32>
    %624 = vector.extract_strided_slice %621 {offsets = [0, 384], sizes = [2, 384], strides = [1, 1]} : vector<2x768xf32> to vector<2x384xf32>
    %625 = vector.broadcast %83 : vector<1x384xf32> to vector<2x384xf32>
    %626 = arith.addf %624, %625 : vector<2x384xf32>
    %627 = vector.extract_strided_slice %623 {offsets = [0, 0], sizes = [2, 32], strides = [1, 1]} : vector<2x384xf32> to vector<2x32xf32>
    %628 = vector.extract_strided_slice %626 {offsets = [0, 0], sizes = [2, 32], strides = [1, 1]} : vector<2x384xf32> to vector<2x32xf32>
    %629 = arith.addf %627, %628 : vector<2x32xf32>
    %630 = arith.negf %629 : vector<2x32xf32>
    %631 = math.exp %630 : vector<2x32xf32>
    %cst_192 = arith.constant 1.000000e+00 : f32
    %632 = vector.broadcast %cst_192 : f32 to vector<2x32xf32>
    %633 = arith.addf %632, %631 : vector<2x32xf32>
    %634 = arith.divf %632, %633 : vector<2x32xf32>
    %635 = vector.extract_strided_slice %623 {offsets = [0, 128], sizes = [2, 32], strides = [1, 1]} : vector<2x384xf32> to vector<2x32xf32>
    %636 = vector.extract_strided_slice %626 {offsets = [0, 128], sizes = [2, 32], strides = [1, 1]} : vector<2x384xf32> to vector<2x32xf32>
    %637 = arith.addf %635, %636 : vector<2x32xf32>
    %638 = arith.negf %637 : vector<2x32xf32>
    %639 = math.exp %638 : vector<2x32xf32>
    %cst_193 = arith.constant 1.000000e+00 : f32
    %640 = vector.broadcast %cst_193 : f32 to vector<2x32xf32>
    %641 = arith.addf %640, %639 : vector<2x32xf32>
    %642 = arith.divf %640, %641 : vector<2x32xf32>
    %643 = vector.extract_strided_slice %623 {offsets = [0, 256], sizes = [2, 32], strides = [1, 1]} : vector<2x384xf32> to vector<2x32xf32>
    %644 = vector.extract_strided_slice %626 {offsets = [0, 256], sizes = [2, 32], strides = [1, 1]} : vector<2x384xf32> to vector<2x32xf32>
    %645 = arith.mulf %634, %644 : vector<2x32xf32>
    %646 = arith.addf %643, %645 : vector<2x32xf32>
    %647 = math.tanh %646 : vector<2x32xf32>
    %cst_194 = arith.constant 1.000000e+00 : f32
    %648 = vector.broadcast %cst_194 : f32 to vector<2x32xf32>
    %649 = arith.subf %648, %642 : vector<2x32xf32>
    %650 = arith.mulf %649, %647 : vector<2x32xf32>
    %651 = arith.mulf %642, %603 : vector<2x32xf32>
    %652 = arith.addf %650, %651 : vector<2x32xf32>
    %653 = arith.truncf %652 : vector<2x32xf32> to vector<2x32xbf16>
    %cst_195 = arith.constant dense<0.000000e+00> : vector<2x32xf32>
    %654 = tpu.matmul %653, %41, %cst_195 {dimension_numbers = #tpu.dot_dimension_numbers<[1], [0], [0], [1], [0, 0, 1, 1], [], []>} : vector<2x32xbf16>, vector<32x32xbf16>, vector<2x32xf32> -> vector<2x32xf32>
    %655 = vector.broadcast %42 : vector<1x32xf32> to vector<2x32xf32>
    %656 = arith.addf %654, %655 : vector<2x32xf32>
    %cst_196 = arith.constant dense<0.000000e+00> : vector<2xf32>
    %657 = vector.multi_reduction <add>, %656, %cst_196 [1] : vector<2x32xf32> to vector<2xf32>
    %658 = vector.shape_cast %657 : vector<2xf32> to vector<2x1xf32>
    %cst_197 = arith.constant 3.200000e+01 : f32
    %659 = vector.broadcast %cst_197 : f32 to vector<2x1xf32>
    %660 = arith.divf %658, %659 : vector<2x1xf32>
    %661 = arith.mulf %656, %656 : vector<2x32xf32>
    %cst_198 = arith.constant dense<0.000000e+00> : vector<2xf32>
    %662 = vector.multi_reduction <add>, %661, %cst_198 [1] : vector<2x32xf32> to vector<2xf32>
    %663 = vector.shape_cast %662 : vector<2xf32> to vector<2x1xf32>
    %cst_199 = arith.constant 3.200000e+01 : f32
    %664 = vector.broadcast %cst_199 : f32 to vector<2x1xf32>
    %665 = arith.divf %663, %664 : vector<2x1xf32>
    %666 = arith.mulf %660, %660 : vector<2x1xf32>
    %667 = arith.subf %665, %666 : vector<2x1xf32>
    %668 = vector.broadcast %660 : vector<2x1xf32> to vector<2x32xf32>
    %669 = arith.subf %656, %668 : vector<2x32xf32>
    %cst_200 = arith.constant 9.99999974E-6 : f32
    %670 = vector.broadcast %cst_200 : f32 to vector<2x1xf32>
    %671 = arith.addf %667, %670 : vector<2x1xf32>
    %672 = math.rsqrt %671 : vector<2x1xf32>
    %673 = vector.broadcast %672 : vector<2x1xf32> to vector<2x32xf32>
    %674 = arith.mulf %669, %673 : vector<2x32xf32>
    %675 = vector.broadcast %43 : vector<1x32xf32> to vector<2x32xf32>
    %676 = arith.mulf %674, %675 : vector<2x32xf32>
    %677 = vector.broadcast %44 : vector<1x32xf32> to vector<2x32xf32>
    %678 = arith.addf %676, %677 : vector<2x32xf32>
    %cst_201 = arith.constant 0.000000e+00 : f32
    %679 = vector.broadcast %cst_201 : f32 to vector<2x32xf32>
    %680 = arith.maximumf %678, %679 : vector<2x32xf32>
    %681 = arith.truncf %680 : vector<2x32xf32> to vector<2x32xbf16>
    %cst_202 = arith.constant dense<0.000000e+00> : vector<2x32xf32>
    %682 = tpu.matmul %681, %46, %cst_202 {dimension_numbers = #tpu.dot_dimension_numbers<[1], [0], [0], [1], [0, 0, 1, 1], [], []>} : vector<2x32xbf16>, vector<32x32xbf16>, vector<2x32xf32> -> vector<2x32xf32>
    %683 = vector.broadcast %47 : vector<1x32xf32> to vector<2x32xf32>
    %684 = arith.addf %682, %683 : vector<2x32xf32>
    %685 = arith.truncf %684 : vector<2x32xf32> to vector<2x32xbf16>
    %cst_203 = arith.constant dense<0.000000e+00> : vector<2x32xf32>
    %686 = tpu.matmul %685, %33, %cst_203 {dimension_numbers = #tpu.dot_dimension_numbers<[1], [0], [0], [1], [0, 0, 1, 1], [], []>} : vector<2x32xbf16>, vector<32x32xbf16>, vector<2x32xf32> -> vector<2x32xf32>
    %687 = vector.broadcast %34 : vector<1x32xf32> to vector<2x32xf32>
    %688 = arith.addf %686, %687 : vector<2x32xf32>
    %cst_204 = arith.constant dense<0.000000e+00> : vector<2xf32>
    %689 = vector.multi_reduction <add>, %688, %cst_204 [1] : vector<2x32xf32> to vector<2xf32>
    %690 = vector.shape_cast %689 : vector<2xf32> to vector<2x1xf32>
    %cst_205 = arith.constant 3.200000e+01 : f32
    %691 = vector.broadcast %cst_205 : f32 to vector<2x1xf32>
    %692 = arith.divf %690, %691 : vector<2x1xf32>
    %693 = arith.mulf %688, %688 : vector<2x32xf32>
    %cst_206 = arith.constant dense<0.000000e+00> : vector<2xf32>
    %694 = vector.multi_reduction <add>, %693, %cst_206 [1] : vector<2x32xf32> to vector<2xf32>
    %695 = vector.shape_cast %694 : vector<2xf32> to vector<2x1xf32>
    %cst_207 = arith.constant 3.200000e+01 : f32
    %696 = vector.broadcast %cst_207 : f32 to vector<2x1xf32>
    %697 = arith.divf %695, %696 : vector<2x1xf32>
    %698 = arith.mulf %692, %692 : vector<2x1xf32>
    %699 = arith.subf %697, %698 : vector<2x1xf32>
    %700 = vector.broadcast %692 : vector<2x1xf32> to vector<2x32xf32>
    %701 = arith.subf %688, %700 : vector<2x32xf32>
    %cst_208 = arith.constant 9.99999974E-6 : f32
    %702 = vector.broadcast %cst_208 : f32 to vector<2x1xf32>
    %703 = arith.addf %699, %702 : vector<2x1xf32>
    %704 = math.rsqrt %703 : vector<2x1xf32>
    %705 = vector.broadcast %704 : vector<2x1xf32> to vector<2x32xf32>
    %706 = arith.mulf %701, %705 : vector<2x32xf32>
    %707 = vector.broadcast %35 : vector<1x32xf32> to vector<2x32xf32>
    %708 = arith.mulf %706, %707 : vector<2x32xf32>
    %709 = vector.broadcast %36 : vector<1x32xf32> to vector<2x32xf32>
    %710 = arith.addf %708, %709 : vector<2x32xf32>
    %cst_209 = arith.constant 0.000000e+00 : f32
    %711 = vector.broadcast %cst_209 : f32 to vector<2x32xf32>
    %712 = arith.maximumf %710, %711 : vector<2x32xf32>
    %713 = arith.truncf %712 : vector<2x32xf32> to vector<2x32xbf16>
    %cst_210 = arith.constant dense<0.000000e+00> : vector<2x32xf32>
    %714 = tpu.matmul %713, %38, %cst_210 {dimension_numbers = #tpu.dot_dimension_numbers<[1], [0], [0], [1], [0, 0, 1, 1], [], []>} : vector<2x32xbf16>, vector<32x32xbf16>, vector<2x32xf32> -> vector<2x32xf32>
    %715 = vector.broadcast %39 : vector<1x32xf32> to vector<2x32xf32>
    %716 = arith.addf %714, %715 : vector<2x32xf32>
    %717 = arith.truncf %716 : vector<2x32xf32> to vector<2x32xbf16>
    %cst_211 = arith.constant dense<0.000000e+00> : vector<2x256xf32>
    %718 = tpu.matmul %717, %85, %cst_211 {dimension_numbers = #tpu.dot_dimension_numbers<[1], [0], [0], [1], [0, 0, 1, 1], [], []>} : vector<2x32xbf16>, vector<32x256xbf16>, vector<2x256xf32> -> vector<2x256xf32>
    %719 = vector.extract_strided_slice %718 {offsets = [0, 0], sizes = [2, 32], strides = [1, 1]} : vector<2x256xf32> to vector<2x32xf32>
    %720 = arith.truncf %603 : vector<2x32xf32> to vector<2x32xbf16>
    %cst_212 = arith.constant dense<0.000000e+00> : vector<2x32xf32>
    %721 = tpu.matmul %720, %55, %cst_212 {dimension_numbers = #tpu.dot_dimension_numbers<[1], [0], [0], [1], [0, 0, 1, 1], [], []>} : vector<2x32xbf16>, vector<32x32xbf16>, vector<2x32xf32> -> vector<2x32xf32>
    %722 = arith.addf %719, %721 : vector<2x32xf32>
    %723 = vector.broadcast %56 : vector<1x32xf32> to vector<2x32xf32>
    %724 = arith.addf %722, %723 : vector<2x32xf32>
    %cst_213 = arith.constant 0.000000e+00 : f32
    %725 = vector.broadcast %cst_213 : f32 to vector<2x32xf32>
    %726 = arith.maximumf %724, %725 : vector<2x32xf32>
    %727 = arith.truncf %726 : vector<2x32xf32> to vector<2x32xbf16>
    %cst_214 = arith.constant dense<0.000000e+00> : vector<2x1xf32>
    %728 = tpu.matmul %727, %58, %cst_214 {dimension_numbers = #tpu.dot_dimension_numbers<[1], [0], [0], [1], [0, 0, 1, 1], [], []>} : vector<2x32xbf16>, vector<32x1xbf16>, vector<2x1xf32> -> vector<2x1xf32>
    %729 = vector.broadcast %59 : vector<1x1xf32> to vector<2x1xf32>
    %730 = arith.addf %728, %729 : vector<2x1xf32>
    %731 = arith.negf %730 : vector<2x1xf32>
    %732 = math.exp %731 : vector<2x1xf32>
    %cst_215 = arith.constant 1.000000e+00 : f32
    %733 = vector.broadcast %cst_215 : f32 to vector<2x1xf32>
    %734 = arith.addf %733, %732 : vector<2x1xf32>
    %735 = arith.divf %733, %734 : vector<2x1xf32>
    %736 = vector.extract_strided_slice %718 {offsets = [0, 128], sizes = [2, 32], strides = [1, 1]} : vector<2x256xf32> to vector<2x32xf32>
    %737 = vector.broadcast %60 : vector<1x32xf32> to vector<2x32xf32>
    %738 = arith.addf %736, %737 : vector<2x32xf32>
    %cst_216 = arith.constant 0.000000e+00 : f32
    %739 = vector.broadcast %cst_216 : f32 to vector<2x32xf32>
    %740 = arith.maximumf %738, %739 : vector<2x32xf32>
    %741 = arith.truncf %740 : vector<2x32xf32> to vector<2x32xbf16>
    %cst_217 = arith.constant dense<0.000000e+00> : vector<2x32xf32>
    %742 = tpu.matmul %741, %62, %cst_217 {dimension_numbers = #tpu.dot_dimension_numbers<[1], [0], [0], [1], [0, 0, 1, 1], [], []>} : vector<2x32xbf16>, vector<32x32xbf16>, vector<2x32xf32> -> vector<2x32xf32>
    %743 = vector.broadcast %63 : vector<1x32xf32> to vector<2x32xf32>
    %744 = arith.addf %742, %743 : vector<2x32xf32>
    %745 = vector.broadcast %735 : vector<2x1xf32> to vector<2x32xf32>
    %746 = arith.mulf %744, %745 : vector<2x32xf32>
    %747 = arith.addf %603, %746 : vector<2x32xf32>
    %748 = vector.broadcast %613 : vector<1x1xf32> to vector<2x32xf32>
    %749 = arith.mulf %748, %747 : vector<2x32xf32>
    %cst_218 = arith.constant 1.000000e+00 : f32
    %750 = vector.broadcast %cst_218 : f32 to vector<1x1xf32>
    %751 = arith.subf %750, %613 : vector<1x1xf32>
    %752 = vector.broadcast %751 : vector<1x1xf32> to vector<2x32xf32>
    %753 = arith.mulf %752, %603 : vector<2x32xf32>
    %754 = arith.addf %749, %753 : vector<2x32xf32>
    %755 = arith.truncf %754 : vector<2x32xf32> to vector<2x32xbf16>
    %cst_219 = arith.constant dense<0.000000e+00> : vector<2x32xf32>
    %756 = tpu.matmul %755, %65, %cst_219 {dimension_numbers = #tpu.dot_dimension_numbers<[1], [0], [0], [1], [0, 0, 1, 1], [], []>} : vector<2x32xbf16>, vector<32x32xbf16>, vector<2x32xf32> -> vector<2x32xf32>
    %757 = arith.addf %756, %619 : vector<2x32xf32>
    %758 = vector.broadcast %68 : vector<1x32xf32> to vector<2x32xf32>
    %759 = arith.addf %757, %758 : vector<2x32xf32>
    %cst_220 = arith.constant 0.000000e+00 : f32
    %760 = vector.broadcast %cst_220 : f32 to vector<2x32xf32>
    %761 = arith.maximumf %759, %760 : vector<2x32xf32>
    %762 = arith.truncf %761 : vector<2x32xf32> to vector<2x32xbf16>
    %cst_221 = arith.constant dense<0.000000e+00> : vector<2x1xf32>
    %763 = tpu.matmul %762, %70, %cst_221 {dimension_numbers = #tpu.dot_dimension_numbers<[1], [0], [0], [1], [0, 0, 1, 1], [], []>} : vector<2x32xbf16>, vector<32x1xbf16>, vector<2x1xf32> -> vector<2x1xf32>
    %764 = vector.broadcast %71 : vector<1x1xf32> to vector<2x1xf32>
    %765 = arith.addf %763, %764 : vector<2x1xf32>
    %766 = arith.negf %765 : vector<2x1xf32>
    %767 = math.exp %766 : vector<2x1xf32>
    %cst_222 = arith.constant 1.000000e+00 : f32
    %768 = vector.broadcast %cst_222 : f32 to vector<2x1xf32>
    %769 = arith.addf %768, %767 : vector<2x1xf32>
    %770 = arith.divf %768, %769 : vector<2x1xf32>
    %cst_223 = arith.constant dense<0.000000e+00> : vector<1xf32>
    %771 = vector.multi_reduction <add>, %770, %cst_223 [0] : vector<2x1xf32> to vector<1xf32>
    %772 = vector.shape_cast %771 : vector<1xf32> to vector<1x1xf32>
    %cst_224 = arith.constant 2.000000e+00 : f32
    %773 = vector.broadcast %cst_224 : f32 to vector<1x1xf32>
    %774 = arith.divf %772, %773 : vector<1x1xf32>
    %cst_225 = arith.constant 0.899999976 : f32
    %775 = vector.broadcast %cst_225 : f32 to vector<1x1xf32>
    %776 = arith.cmpf ole, %774, %775 : vector<1x1xf32>
    %777 = arith.extui %776 : vector<1x1xi1> to vector<1x1xi32>
    %778 = arith.sitofp %777 : vector<1x1xi32> to vector<1x1xf32>
    %779 = arith.mulf %613, %778 : vector<1x1xf32>
    %780 = arith.truncf %754 : vector<2x32xf32> to vector<2x32xbf16>
    %cst_226 = arith.constant dense<0.000000e+00> : vector<2x768xf32>
    %781 = tpu.matmul %780, %79, %cst_226 {dimension_numbers = #tpu.dot_dimension_numbers<[1], [0], [0], [1], [0, 0, 1, 1], [], []>} : vector<2x32xbf16>, vector<32x768xbf16>, vector<2x768xf32> -> vector<2x768xf32>
    %782 = vector.extract_strided_slice %781 {offsets = [0, 0], sizes = [2, 384], strides = [1, 1]} : vector<2x768xf32> to vector<2x384xf32>
    %783 = arith.addf %782, %617 : vector<2x384xf32>
    %784 = vector.extract_strided_slice %781 {offsets = [0, 384], sizes = [2, 384], strides = [1, 1]} : vector<2x768xf32> to vector<2x384xf32>
    %785 = vector.broadcast %83 : vector<1x384xf32> to vector<2x384xf32>
    %786 = arith.addf %784, %785 : vector<2x384xf32>
    %787 = vector.extract_strided_slice %783 {offsets = [0, 0], sizes = [2, 32], strides = [1, 1]} : vector<2x384xf32> to vector<2x32xf32>
    %788 = vector.extract_strided_slice %786 {offsets = [0, 0], sizes = [2, 32], strides = [1, 1]} : vector<2x384xf32> to vector<2x32xf32>
    %789 = arith.addf %787, %788 : vector<2x32xf32>
    %790 = arith.negf %789 : vector<2x32xf32>
    %791 = math.exp %790 : vector<2x32xf32>
    %cst_227 = arith.constant 1.000000e+00 : f32
    %792 = vector.broadcast %cst_227 : f32 to vector<2x32xf32>
    %793 = arith.addf %792, %791 : vector<2x32xf32>
    %794 = arith.divf %792, %793 : vector<2x32xf32>
    %795 = vector.extract_strided_slice %783 {offsets = [0, 128], sizes = [2, 32], strides = [1, 1]} : vector<2x384xf32> to vector<2x32xf32>
    %796 = vector.extract_strided_slice %786 {offsets = [0, 128], sizes = [2, 32], strides = [1, 1]} : vector<2x384xf32> to vector<2x32xf32>
    %797 = arith.addf %795, %796 : vector<2x32xf32>
    %798 = arith.negf %797 : vector<2x32xf32>
    %799 = math.exp %798 : vector<2x32xf32>
    %cst_228 = arith.constant 1.000000e+00 : f32
    %800 = vector.broadcast %cst_228 : f32 to vector<2x32xf32>
    %801 = arith.addf %800, %799 : vector<2x32xf32>
    %802 = arith.divf %800, %801 : vector<2x32xf32>
    %803 = vector.extract_strided_slice %783 {offsets = [0, 256], sizes = [2, 32], strides = [1, 1]} : vector<2x384xf32> to vector<2x32xf32>
    %804 = vector.extract_strided_slice %786 {offsets = [0, 256], sizes = [2, 32], strides = [1, 1]} : vector<2x384xf32> to vector<2x32xf32>
    %805 = arith.mulf %794, %804 : vector<2x32xf32>
    %806 = arith.addf %803, %805 : vector<2x32xf32>
    %807 = math.tanh %806 : vector<2x32xf32>
    %cst_229 = arith.constant 1.000000e+00 : f32
    %808 = vector.broadcast %cst_229 : f32 to vector<2x32xf32>
    %809 = arith.subf %808, %802 : vector<2x32xf32>
    %810 = arith.mulf %809, %807 : vector<2x32xf32>
    %811 = arith.mulf %802, %754 : vector<2x32xf32>
    %812 = arith.addf %810, %811 : vector<2x32xf32>
    %813 = arith.truncf %812 : vector<2x32xf32> to vector<2x32xbf16>
    %cst_230 = arith.constant dense<0.000000e+00> : vector<2x32xf32>
    %814 = tpu.matmul %813, %41, %cst_230 {dimension_numbers = #tpu.dot_dimension_numbers<[1], [0], [0], [1], [0, 0, 1, 1], [], []>} : vector<2x32xbf16>, vector<32x32xbf16>, vector<2x32xf32> -> vector<2x32xf32>
    %815 = vector.broadcast %42 : vector<1x32xf32> to vector<2x32xf32>
    %816 = arith.addf %814, %815 : vector<2x32xf32>
    %cst_231 = arith.constant dense<0.000000e+00> : vector<2xf32>
    %817 = vector.multi_reduction <add>, %816, %cst_231 [1] : vector<2x32xf32> to vector<2xf32>
    %818 = vector.shape_cast %817 : vector<2xf32> to vector<2x1xf32>
    %cst_232 = arith.constant 3.200000e+01 : f32
    %819 = vector.broadcast %cst_232 : f32 to vector<2x1xf32>
    %820 = arith.divf %818, %819 : vector<2x1xf32>
    %821 = arith.mulf %816, %816 : vector<2x32xf32>
    %cst_233 = arith.constant dense<0.000000e+00> : vector<2xf32>
    %822 = vector.multi_reduction <add>, %821, %cst_233 [1] : vector<2x32xf32> to vector<2xf32>
    %823 = vector.shape_cast %822 : vector<2xf32> to vector<2x1xf32>
    %cst_234 = arith.constant 3.200000e+01 : f32
    %824 = vector.broadcast %cst_234 : f32 to vector<2x1xf32>
    %825 = arith.divf %823, %824 : vector<2x1xf32>
    %826 = arith.mulf %820, %820 : vector<2x1xf32>
    %827 = arith.subf %825, %826 : vector<2x1xf32>
    %828 = vector.broadcast %820 : vector<2x1xf32> to vector<2x32xf32>
    %829 = arith.subf %816, %828 : vector<2x32xf32>
    %cst_235 = arith.constant 9.99999974E-6 : f32
    %830 = vector.broadcast %cst_235 : f32 to vector<2x1xf32>
    %831 = arith.addf %827, %830 : vector<2x1xf32>
    %832 = math.rsqrt %831 : vector<2x1xf32>
    %833 = vector.broadcast %832 : vector<2x1xf32> to vector<2x32xf32>
    %834 = arith.mulf %829, %833 : vector<2x32xf32>
    %835 = vector.broadcast %43 : vector<1x32xf32> to vector<2x32xf32>
    %836 = arith.mulf %834, %835 : vector<2x32xf32>
    %837 = vector.broadcast %44 : vector<1x32xf32> to vector<2x32xf32>
    %838 = arith.addf %836, %837 : vector<2x32xf32>
    %cst_236 = arith.constant 0.000000e+00 : f32
    %839 = vector.broadcast %cst_236 : f32 to vector<2x32xf32>
    %840 = arith.maximumf %838, %839 : vector<2x32xf32>
    %841 = arith.truncf %840 : vector<2x32xf32> to vector<2x32xbf16>
    %cst_237 = arith.constant dense<0.000000e+00> : vector<2x32xf32>
    %842 = tpu.matmul %841, %46, %cst_237 {dimension_numbers = #tpu.dot_dimension_numbers<[1], [0], [0], [1], [0, 0, 1, 1], [], []>} : vector<2x32xbf16>, vector<32x32xbf16>, vector<2x32xf32> -> vector<2x32xf32>
    %843 = vector.broadcast %47 : vector<1x32xf32> to vector<2x32xf32>
    %844 = arith.addf %842, %843 : vector<2x32xf32>
    %845 = arith.truncf %844 : vector<2x32xf32> to vector<2x32xbf16>
    %cst_238 = arith.constant dense<0.000000e+00> : vector<2x32xf32>
    %846 = tpu.matmul %845, %33, %cst_238 {dimension_numbers = #tpu.dot_dimension_numbers<[1], [0], [0], [1], [0, 0, 1, 1], [], []>} : vector<2x32xbf16>, vector<32x32xbf16>, vector<2x32xf32> -> vector<2x32xf32>
    %847 = vector.broadcast %34 : vector<1x32xf32> to vector<2x32xf32>
    %848 = arith.addf %846, %847 : vector<2x32xf32>
    %cst_239 = arith.constant dense<0.000000e+00> : vector<2xf32>
    %849 = vector.multi_reduction <add>, %848, %cst_239 [1] : vector<2x32xf32> to vector<2xf32>
    %850 = vector.shape_cast %849 : vector<2xf32> to vector<2x1xf32>
    %cst_240 = arith.constant 3.200000e+01 : f32
    %851 = vector.broadcast %cst_240 : f32 to vector<2x1xf32>
    %852 = arith.divf %850, %851 : vector<2x1xf32>
    %853 = arith.mulf %848, %848 : vector<2x32xf32>
    %cst_241 = arith.constant dense<0.000000e+00> : vector<2xf32>
    %854 = vector.multi_reduction <add>, %853, %cst_241 [1] : vector<2x32xf32> to vector<2xf32>
    %855 = vector.shape_cast %854 : vector<2xf32> to vector<2x1xf32>
    %cst_242 = arith.constant 3.200000e+01 : f32
    %856 = vector.broadcast %cst_242 : f32 to vector<2x1xf32>
    %857 = arith.divf %855, %856 : vector<2x1xf32>
    %858 = arith.mulf %852, %852 : vector<2x1xf32>
    %859 = arith.subf %857, %858 : vector<2x1xf32>
    %860 = vector.broadcast %852 : vector<2x1xf32> to vector<2x32xf32>
    %861 = arith.subf %848, %860 : vector<2x32xf32>
    %cst_243 = arith.constant 9.99999974E-6 : f32
    %862 = vector.broadcast %cst_243 : f32 to vector<2x1xf32>
    %863 = arith.addf %859, %862 : vector<2x1xf32>
    %864 = math.rsqrt %863 : vector<2x1xf32>
    %865 = vector.broadcast %864 : vector<2x1xf32> to vector<2x32xf32>
    %866 = arith.mulf %861, %865 : vector<2x32xf32>
    %867 = vector.broadcast %35 : vector<1x32xf32> to vector<2x32xf32>
    %868 = arith.mulf %866, %867 : vector<2x32xf32>
    %869 = vector.broadcast %36 : vector<1x32xf32> to vector<2x32xf32>
    %870 = arith.addf %868, %869 : vector<2x32xf32>
    %cst_244 = arith.constant 0.000000e+00 : f32
    %871 = vector.broadcast %cst_244 : f32 to vector<2x32xf32>
    %872 = arith.maximumf %870, %871 : vector<2x32xf32>
    %873 = arith.truncf %872 : vector<2x32xf32> to vector<2x32xbf16>
    %cst_245 = arith.constant dense<0.000000e+00> : vector<2x32xf32>
    %874 = tpu.matmul %873, %38, %cst_245 {dimension_numbers = #tpu.dot_dimension_numbers<[1], [0], [0], [1], [0, 0, 1, 1], [], []>} : vector<2x32xbf16>, vector<32x32xbf16>, vector<2x32xf32> -> vector<2x32xf32>
    %875 = vector.broadcast %39 : vector<1x32xf32> to vector<2x32xf32>
    %876 = arith.addf %874, %875 : vector<2x32xf32>
    %877 = arith.truncf %876 : vector<2x32xf32> to vector<2x32xbf16>
    %cst_246 = arith.constant dense<0.000000e+00> : vector<2x256xf32>
    %878 = tpu.matmul %877, %85, %cst_246 {dimension_numbers = #tpu.dot_dimension_numbers<[1], [0], [0], [1], [0, 0, 1, 1], [], []>} : vector<2x32xbf16>, vector<32x256xbf16>, vector<2x256xf32> -> vector<2x256xf32>
    %879 = vector.extract_strided_slice %878 {offsets = [0, 0], sizes = [2, 32], strides = [1, 1]} : vector<2x256xf32> to vector<2x32xf32>
    %880 = arith.truncf %754 : vector<2x32xf32> to vector<2x32xbf16>
    %cst_247 = arith.constant dense<0.000000e+00> : vector<2x32xf32>
    %881 = tpu.matmul %880, %55, %cst_247 {dimension_numbers = #tpu.dot_dimension_numbers<[1], [0], [0], [1], [0, 0, 1, 1], [], []>} : vector<2x32xbf16>, vector<32x32xbf16>, vector<2x32xf32> -> vector<2x32xf32>
    %882 = arith.addf %879, %881 : vector<2x32xf32>
    %883 = vector.broadcast %56 : vector<1x32xf32> to vector<2x32xf32>
    %884 = arith.addf %882, %883 : vector<2x32xf32>
    %cst_248 = arith.constant 0.000000e+00 : f32
    %885 = vector.broadcast %cst_248 : f32 to vector<2x32xf32>
    %886 = arith.maximumf %884, %885 : vector<2x32xf32>
    %887 = arith.truncf %886 : vector<2x32xf32> to vector<2x32xbf16>
    %cst_249 = arith.constant dense<0.000000e+00> : vector<2x1xf32>
    %888 = tpu.matmul %887, %58, %cst_249 {dimension_numbers = #tpu.dot_dimension_numbers<[1], [0], [0], [1], [0, 0, 1, 1], [], []>} : vector<2x32xbf16>, vector<32x1xbf16>, vector<2x1xf32> -> vector<2x1xf32>
    %889 = vector.broadcast %59 : vector<1x1xf32> to vector<2x1xf32>
    %890 = arith.addf %888, %889 : vector<2x1xf32>
    %891 = arith.negf %890 : vector<2x1xf32>
    %892 = math.exp %891 : vector<2x1xf32>
    %cst_250 = arith.constant 1.000000e+00 : f32
    %893 = vector.broadcast %cst_250 : f32 to vector<2x1xf32>
    %894 = arith.addf %893, %892 : vector<2x1xf32>
    %895 = arith.divf %893, %894 : vector<2x1xf32>
    %896 = vector.extract_strided_slice %878 {offsets = [0, 128], sizes = [2, 32], strides = [1, 1]} : vector<2x256xf32> to vector<2x32xf32>
    %897 = vector.broadcast %60 : vector<1x32xf32> to vector<2x32xf32>
    %898 = arith.addf %896, %897 : vector<2x32xf32>
    %cst_251 = arith.constant 0.000000e+00 : f32
    %899 = vector.broadcast %cst_251 : f32 to vector<2x32xf32>
    %900 = arith.maximumf %898, %899 : vector<2x32xf32>
    %901 = arith.truncf %900 : vector<2x32xf32> to vector<2x32xbf16>
    %cst_252 = arith.constant dense<0.000000e+00> : vector<2x32xf32>
    %902 = tpu.matmul %901, %62, %cst_252 {dimension_numbers = #tpu.dot_dimension_numbers<[1], [0], [0], [1], [0, 0, 1, 1], [], []>} : vector<2x32xbf16>, vector<32x32xbf16>, vector<2x32xf32> -> vector<2x32xf32>
    %903 = vector.broadcast %63 : vector<1x32xf32> to vector<2x32xf32>
    %904 = arith.addf %902, %903 : vector<2x32xf32>
    %905 = vector.broadcast %895 : vector<2x1xf32> to vector<2x32xf32>
    %906 = arith.mulf %904, %905 : vector<2x32xf32>
    %907 = arith.addf %754, %906 : vector<2x32xf32>
    %908 = vector.broadcast %779 : vector<1x1xf32> to vector<2x32xf32>
    %909 = arith.mulf %908, %907 : vector<2x32xf32>
    %cst_253 = arith.constant 1.000000e+00 : f32
    %910 = vector.broadcast %cst_253 : f32 to vector<1x1xf32>
    %911 = arith.subf %910, %779 : vector<1x1xf32>
    %912 = vector.broadcast %911 : vector<1x1xf32> to vector<2x32xf32>
    %913 = arith.mulf %912, %754 : vector<2x32xf32>
    %914 = arith.addf %909, %913 : vector<2x32xf32>
    %915 = arith.truncf %914 : vector<2x32xf32> to vector<2x32xbf16>
    %cst_254 = arith.constant dense<0.000000e+00> : vector<2x32xf32>
    %916 = tpu.matmul %915, %65, %cst_254 {dimension_numbers = #tpu.dot_dimension_numbers<[1], [0], [0], [1], [0, 0, 1, 1], [], []>} : vector<2x32xbf16>, vector<32x32xbf16>, vector<2x32xf32> -> vector<2x32xf32>
    %917 = arith.truncf %151 : vector<2x32xf32> to vector<2x32xbf16>
    %cst_255 = arith.constant dense<0.000000e+00> : vector<2x32xf32>
    %918 = tpu.matmul %917, %67, %cst_255 {dimension_numbers = #tpu.dot_dimension_numbers<[1], [0], [0], [1], [0, 0, 1, 1], [], []>} : vector<2x32xbf16>, vector<32x32xbf16>, vector<2x32xf32> -> vector<2x32xf32>
    %919 = arith.addf %916, %918 : vector<2x32xf32>
    %920 = vector.broadcast %68 : vector<1x32xf32> to vector<2x32xf32>
    %921 = arith.addf %919, %920 : vector<2x32xf32>
    %cst_256 = arith.constant 0.000000e+00 : f32
    %922 = vector.broadcast %cst_256 : f32 to vector<2x32xf32>
    %923 = arith.maximumf %921, %922 : vector<2x32xf32>
    %924 = arith.truncf %923 : vector<2x32xf32> to vector<2x32xbf16>
    %cst_257 = arith.constant dense<0.000000e+00> : vector<2x1xf32>
    %925 = tpu.matmul %924, %70, %cst_257 {dimension_numbers = #tpu.dot_dimension_numbers<[1], [0], [0], [1], [0, 0, 1, 1], [], []>} : vector<2x32xbf16>, vector<32x1xbf16>, vector<2x1xf32> -> vector<2x1xf32>
    %926 = vector.broadcast %71 : vector<1x1xf32> to vector<2x1xf32>
    %927 = arith.addf %925, %926 : vector<2x1xf32>
    %928 = arith.negf %927 : vector<2x1xf32>
    %929 = math.exp %928 : vector<2x1xf32>
    %cst_258 = arith.constant 1.000000e+00 : f32
    %930 = vector.broadcast %cst_258 : f32 to vector<2x1xf32>
    %931 = arith.addf %930, %929 : vector<2x1xf32>
    %932 = arith.divf %930, %931 : vector<2x1xf32>
    %933 = tpu.concatenate %373, %533, %684, %844 in 1 : vector<2x32xf32>, vector<2x32xf32>, vector<2x32xf32>, vector<2x32xf32> -> vector<2x128xf32>
    %c0_259 = arith.constant 0 : index
    %c0_260 = arith.constant 0 : index
    %934 = vector.load %arg4[%c0_259, %c0_260] : memref<2x128xf32, #tpu.memory_space<vmem>>, vector<2x128xf32>
    tpu.vector_store %arg4[%c0_259, %c0_260], %933 {strides = array<i32>} : memref<2x128xf32, #tpu.memory_space<vmem>>, vector<2x128xf32>,
    %935 = tpu.concatenate %119, %443, %603, %754, %914 in 1 : vector<2x32xf32>, vector<2x32xf32>, vector<2x32xf32>, vector<2x32xf32>, vector<2x32xf32> -> vector<2x160xf32>
    %c0_261 = arith.constant 0 : index
    %c0_262 = arith.constant 0 : index
    %936 = vector.load %arg5[%c0_261, %c0_262] : memref<2x160xf32, #tpu.memory_space<vmem>>, vector<2x160xf32>
    tpu.vector_store %arg5[%c0_261, %c0_262], %935 {strides = array<i32>} : memref<2x160xf32, #tpu.memory_space<vmem>>, vector<2x160xf32>,
    %937 = vector.extract_strided_slice %297 {offsets = [0, 0], sizes = [2, 1], strides = [1, 1]} : vector<4x1xf32> to vector<2x1xf32>
    %938 = vector.extract_strided_slice %297 {offsets = [2, 0], sizes = [2, 1], strides = [1, 1]} : vector<4x1xf32> to vector<2x1xf32>
    %939 = tpu.concatenate %937, %938, %932 in 1 : vector<2x1xf32>, vector<2x1xf32>, vector<2x1xf32> -> vector<2x3xf32>
    %c0_263 = arith.constant 0 : index
    %c0_264 = arith.constant 0 : index
    %940 = vector.load %arg7[%c0_263, %c0_264] : memref<2x3xf32, #tpu.memory_space<vmem>>, vector<2x3xf32>
    tpu.vector_store %arg7[%c0_263, %c0_264], %939 {strides = array<i32>} : memref<2x3xf32, #tpu.memory_space<vmem>>, vector<2x3xf32>,
    return
  }
}

</mosaic_0001>

<bundles_post_ra>
// kernel: forward.1
= control target key start
LH: loop header
LB: loop body
LE: loop exit
PB: predicated region body
PF: predicated region fallthrough
CT: control target
= control target key end

     0   :  { %13 = vsyncpa [#allocation4], 0  ;;  %s5132_s24 = smov [#allocation3]   ;;  %s6508_s0 = inlined_call_operand.vmem [shape: f32[880,32], index: 0, kind: input, shape index: {}]   ;;  %s6509_s1 = inlined_call_operand.hbm [shape: f32[192,768], index: 1, kind: input, shape index: {}]   ;;  %s6510_s2 = inlined_call_operand.vmem [shape: f32[2,32], index: 2, kind: input, shape index: {}]   ;;  %s6511_s3 = inlined_call_operand.vmem [shape: f32[2,32], index: 3, kind: input, shape index: {}]   ;;  %s6512_s4 = inlined_call_operand.vmem [shape: f32[2,128], index: 4, kind: output, shape index: {0}]   ;;  %s6513_s5 = inlined_call_operand.vmem [shape: f32[2,160], index: 5, kind: output, shape index: {1}]   ;;  %s6514_s6 = inlined_call_operand.vmem [shape: f32[2,64], index: 6, kind: output, shape index: {2}]   ;;  %s6515_s7 = inlined_call_operand.vmem [shape: f32[2,3], index: 7, kind: output, shape index: {3}]  }
   0x1   :  { %s21_s25 = sshll.u32 %s5132_s24, 4  ;;  %s5108_s28 = scalar_lea.hbm %s6509_s1, 18432  ;;  %s22_s25 = int_to_ptr.vmem [resolvable:$true] %s21_s25 }
   0x2   :  { %p5109_p0 = scmp.ne.s32.totalorder %s6509_s1, %s5108_s28  ;;  %p5112_p1 = scmp.lt.u32.totalorder %s5108_s28, %s6509_s1 }
   0x4   :  { %p5114_p2 = pnand %p5112_p1, %p5109_p0 }
   0x6   :  { %5117 = shalt.err (!%p5114_p2)
}
   0x7   :  { %s5118_s10 = scalar_lea.vmem %s22_s25, 18432  ;;  %p5123_p4 = scmp.lt.s32.totalorder %s22_s25, %s22_s25 }
   0x8   :  { %p5119_p3 = scmp.ne.s32.totalorder %s22_s25, %s5118_s10  ;;  %p5124_p5 = scmp.lt.s32.totalorder %s5118_s10, %s5118_s10 }
   0xa   :  { %p5125_p6 = por %p5124_p5, %p5123_p4 }
   0xc   :  { %p5126_p7 = pnand %p5125_p6, %p5119_p3 }
   0xe   :  { %5129 = shalt.err (!%p5126_p7)
}
   0xf   :  { %s5133_s11 = smov 768   ;;  %s5134_s12 = smov 48  }
  0x10   :  { %27 = dma.hbm_to_vmem [thread:$0]  %s6509_s1, 18432, %s22_s25, [#allocation4], %s5133_s11, %s5133_s11, %s5134_s12  }
  0x11   :  { %5130 = dma.done.wait [#allocation4], 18432  }
  0x12   :  { %5131 = vsyncadd [#allocation4], 4294948864  ;;  %v6520_v0 = vmov 0.0   ;;  %vm5136_vm0 = vmmov 0   ;;  %v36_v1 = vld [vmem:[%s6508_s0] sm:$0xff]  ;;  %v37_v2 = vld [vmem:[%s6508_s0 + $0x8] sm:$0xff] }
  0x13   :  { %4550 = vmatprep.subr.bf16.mxu0 %v6520_v0  ;;  %4554 = vmatprep.mubr.msk.bf16.mxu0 %vm5136_vm0, %v6520_v0  ;;  %v38_v3 = vld [vmem:[%s6508_s0 + $0x10] sm:$0xff]  ;;  %v40_v4 = vpack.c.bf16 %v37_v2, %v36_v1  ;;  %v39_v5 = vld [vmem:[%s6508_s0 + $0x18] sm:$0xff]  ;;  %v295_v7 = vld [vmem:[%s6510_s2] sm:$0x3]  ;;  %vm302_vm1 = vcmask 261120   ;;  %vm346_vm2 = vcmask 254976  }
  0x14   :  { %4558 = vmatprep.subr.bf16.mxu1 %v6520_v0  ;;  %4562 = vmatprep.mubr.msk.bf16.mxu1 %vm5136_vm0, %v6520_v0  ;;  %v41_v6 = vpack.c.bf16 %v39_v5, %v38_v3  ;;  %v52_v8 = vld [vmem:[%s6508_s0 + $0x60] sm:$0xff]  ;;  %v53_v9 = vld [vmem:[%s6508_s0 + $0x68] sm:$0xff]  ;;  %v297_v10 = vpack.c.bf16 %v295_v7, %v295_v7  ;;  %v54_v12 = vld [vmem:[%s6508_s0 + $0x70] sm:$0xff]  ;;  %vm1042_vm3 = vcmask 257024   ;;  %vm1167_vm4 = vcmask 130048   ;;  %s5138_s28 = smov 64  }
  0x15   :  { %4551 = vmatpush3.bf16.msra.mxu0 %v40_v4  ;;  %v56_v11 = vpack.c.bf16 %v53_v9, %v52_v8  ;;  %v55_v13 = vld [vmem:[%s6508_s0 + $0x78] sm:$0xff]  ;;  %v296_v15 = vld [vmem:[%s6511_s3] sm:$0x3]  ;;  %v69_v17 = vld [vmem:[%s6508_s0 + $0xc8] sm:$0xff]  ;;  %vm2085_vm5 = vcmask 1024   ;;  %s5139_s29 = smov 32  }
  0x16   :  { %4552 = vmatprep.subr.bf16.mxu0 %v6520_v0  ;;  %v57_v14 = vpack.c.bf16 %v55_v13, %v54_v12  ;;  %v68_v16 = vld [vmem:[%s6508_s0 + $0xc0] sm:$0xff]  ;;  %v422_v18 = vpack.c.bf16 %v296_v15, %v296_v15  ;;  %v70_v20 = vld [vmem:[%s6508_s0 + $0xd0] sm:$0xff]  ;;  %v71_v21 = vld [vmem:[%s6508_s0 + $0xd8] sm:$0xff]  ;;  %s5140_s2 = smov 1   ;;  %s5141_s30 = smov 96   ;;  %vm4200_vm9 = vcmask 523264  }
  0x17   :  { %v72_v19 = vpack.c.bf16 %v69_v17, %v68_v16  ;;  %v73_v22 = vpack.c.bf16 %v71_v21, %v70_v20  ;;  %v4267_v23 = vld [vmem:[%s6508_s0 + $0x20] ss:$0 sm:$0xff]  ;;  %v45_v50 = vld [vmem:[%s6508_s0 + $0x38] sm:$0xff]  ;;  %v47_v53 = vld [vmem:[%s6508_s0 + $0x48] sm:$0xff]  ;;  %vm4202_vm10 = vcmask 785408   ;;  %vm4231_vm11 = vcmask 1041408  }
  0x18   :  { %v4273_v31 = vld [vmem:[%s6508_s0 + $0x80] ss:$0 sm:$0xff]  ;;  %v48_v54 = vld [vmem:[%s6508_s0 + $0x50] sm:$0xff]  ;;  %v4269_v15 = vld [vmem:[%s6508_s0 + $0x28] ss:$0 sm:$0xff]  ;;  %vm4232_vm12 = vcmask 257026  }
  0x19   :  { %4553 = vmatpush3.bf16.msra.mxu0 %v41_v6  ;;  %v4279_v40 = vld [vmem:[%s6508_s0 + $0xe0] ss:$0 sm:$0xff]  ;;  %v50_v55 = vpack.c.bf16 %v48_v54, %v47_v53  ;;  %v61_v21 = vld [vmem:[%s6508_s0 + $0x98] sm:$0xff]  ;;  %v186_v53 = vld [vmem:[#allocation3 + $0x8] sm:$0xff]  ;;  %vm1223_vm14 = vcmask 517120   ;;  %vm4244_vm15 = vcmask 7168  }
  0x1a   :  { %4566 = vmatprep.subr.bf16.mxu0 %v6520_v0  ;;  %v46_v51 = vld [vmem:[%s6508_s0 + $0x40] sm:$0xff]  ;;  %vm4233_vm13 = vmor %vm4232_vm12, %vm4231_vm11 }
  0x1b   :  { %v49_v52 = vpack.c.bf16 %v46_v51, %v45_v50  ;;  %v189_v54 = vld [vmem:[#allocation3 + $0x38] sm:$0xff] }
  0x1c   :  { %4555 = vmatmul.mubr.msk.bf16.vlgmr.msra.gmra.mrb[0].mxu0 %vm302_vm1, %v297_v10 }
  0x1d   :  { %4567 = vmatpush3.bf16.msra.mxu0 %v56_v11  ;;  %4570 = vmatprep.mubr.msk.bf16.mxu0 %vm5136_vm0, %v6520_v0 }
  0x1e   :  { %4568 = vmatprep.subr.bf16.mxu0 %v6520_v0  ;;  %4559 = vmatpush3.bf16.msra.mxu1 %v49_v52 }
  0x1f   :  { %4560 = vmatprep.subr.bf16.mxu1 %v6520_v0 }
  0x21   :  { %4569 = vmatpush3.bf16.msra.mxu0 %v57_v14 }
  0x22   :  { %4582 = vmatprep.subr.bf16.mxu0 %v6520_v0  ;;  %4561 = vmatpush3.bf16.msra.mxu1 %v50_v55  ;;  %v198_v55 = vpack.c.bf16 %v189_v54, %v186_v53 }
  0x23   :  { %4574 = vmatprep.subr.bf16.mxu1 %v6520_v0 }
  0x24   :  { %4571 = vmatmul.mubr.msk.bf16.vlgmr.msra.gmra.mrb[4].mxu0 %vm302_vm1, %v422_v18 }
  0x25   :  { %4583 = vmatpush3.bf16.msra.mxu0 %v72_v19  ;;  %4586 = vmatprep.mubr.msk.bf16.mxu0 %vm5136_vm0, %v6520_v0 }
  0x26   :  { %4584 = vmatprep.subr.bf16.mxu0 %v6520_v0 }
  0x29   :  { %4585 = vmatpush3.bf16.msra.mxu0 %v73_v22  ;;  %v62_v22 = vld [vmem:[%s6508_s0 + $0xa0] sm:$0xff] }
  0x2a   :  { %682 = vmatprep.subr.bf16.mxu0 %v198_v55  ;;  %v224_v55 = vld [vmem:[#allocation3 + $0x1b0] ss:$8 sm:$0x7] }
  0x2c   :  { %4587 = vmatmul.mubr.msk.bf16.vlgmr.msra.gmra.mrb[8].mxu0 %vm302_vm1, %v422_v18  ;;  %v4270_v18 = vld [vmem:[%s6508_s0 + $0x30] ss:$0 sm:$0xff] }
  0xef   :  { %v340_v24 = vpop.f32.mrb[0].mxu0 }
  0xf0   :  { %v5259_v25 = vadd.f32 %v4267_v23, %v340_v24  ;;  %v4556_v26 = vpop.f32.mrb[1].mxu0 }
  0xf1   :  { %v343_v27 = vpop.f32.mrb[2].mxu0  ;;  %v65_v26 = vpack.c.bf16 %v62_v22, %v61_v21  ;;  %v203_v21 = vld [vmem:[#allocation3 + $0xc0] sm:$0xff]  ;;  %v206_v22 = vld [vmem:[#allocation3 + $0xf0] sm:$0xff] }
  0xf2   :  { %v4557_v28 = vpop.f32.mrb[3].mxu0  ;;  %v347_v29 = vsel %vm346_vm2, %v5259_v25, 0.0  ;;  %v352_v30 = vmul.f32 %v5259_v25, %v5259_v25  ;;  %v4275_v27 = vld [vmem:[%s6508_s0 + $0x88] ss:$0 sm:$0xff] }
  0xf3   :  { %348 = vadd.xlane.f32.xlu0 %v347_v29 }
  0xf4   :  { %v353_v32 = vsel %vm346_vm2, %v352_v30, 0.0  ;;  %v63_v30 = vld [vmem:[%s6508_s0 + $0xa8] sm:$0xff] }
  0xf7   :  { %354 = vadd.xlane.f32.xlu0 %v353_v32  ;;  %v464_v33 = vpop.f32.mrb[4].mxu0  ;;  %v4276_v32 = vld [vmem:[%s6508_s0 + $0x90] ss:$0 sm:$0xff] }
  0xf8   :  { %v5269_v34 = vadd.f32 %v4273_v31, %v464_v33  ;;  %v4572_v35 = vpop.f32.mrb[5].mxu0  ;;  %v64_v31 = vld [vmem:[%s6508_s0 + $0xb0] sm:$0xff] }
  0xf9   :  { %v467_v36 = vpop.f32.mrb[6].mxu0 }
  0xfa   :  { %v4573_v37 = vpop.f32.mrb[7].mxu0  ;;  %v470_v38 = vsel %vm346_vm2, %v5269_v34, 0.0  ;;  %v474_v39 = vmul.f32 %v5269_v34, %v5269_v34 }
  0xfb   :  { %471 = vadd.xlane.f32.xlu1 %v470_v38  ;;  %v77_v37 = vld [vmem:[%s6508_s0 + $0xf8] sm:$0xff]  ;;  %v78_v38 = vld [vmem:[%s6508_s0 + $0x100] sm:$0xff] }
  0xfc   :  { %v475_v41 = vsel %vm346_vm2, %v474_v39, 0.0 }
  0xff   :  { %476 = vadd.xlane.f32.xlu1 %v475_v41  ;;  %v582_v42 = vpop.f32.mrb[8].mxu0 }
 0x100   :  { %v5279_v43 = vadd.f32 %v4279_v40, %v582_v42  ;;  %v4588_v44 = vpop.f32.mrb[9].mxu0  ;;  %v4281_v40 = vld [vmem:[%s6508_s0 + $0xe8] ss:$0 sm:$0xff] }
 0x101   :  { %v585_v45 = vpop.f32.mrb[10].mxu0  ;;  %v4282_v44 = vld [vmem:[%s6508_s0 + $0xf0] ss:$0 sm:$0xff] }
 0x102   :  { %v4589_v46 = vpop.f32.mrb[11].mxu0  ;;  %v588_v47 = vsel %vm346_vm2, %v5279_v43, 0.0  ;;  %v592_v48 = vmul.f32 %v5279_v43, %v5279_v43 }
 0x103   :  { %589 = vadd.xlane.f32.xlu0 %v588_v47  ;;  %v79_v46 = vld [vmem:[%s6508_s0 + $0x108] sm:$0xff]  ;;  %v80_v47 = vld [vmem:[%s6508_s0 + $0x110] sm:$0xff] }
 0x104   :  { %v593_v49 = vsel %vm346_vm2, %v592_v48, 0.0  ;;  %v82_v50 = vpack.c.bf16 %v80_v47, %v79_v46 }
 0x105   :  { %594 = vadd.xlane.f32.xlu1 %v593_v49 }
 0x180   :  { %v349_v56 = vpop.xlane.xlu0 %348 }
 0x181   :  { %v351_v57 = vmul.f32 0.03125, %v349_v56  ;;  %v185_v56 = vld [vmem:[#allocation3] sm:$0xff] }
 0x183   :  { %v357_v59 = vmul.f32 %v351_v57, %v351_v57  ;;  %v359_v12 = vsub.f32 %v5259_v25, %v351_v57  ;;  %v188_v57 = vld [vmem:[#allocation3 + $0x30] sm:$0xff] }
 0x184   :  { %v355_v58 = vpop.xlane.xlu0 %354 }
 0x185   :  { %v356_v60 = vmul.f32 0.03125, %v355_v58  ;;  %v187_v58 = vld [vmem:[#allocation3 + $0x10] sm:$0xff] }
 0x187   :  { %v358_v61 = vsub.f32 %v356_v60, %v357_v59  ;;  %v197_v59 = vpack.c.bf16 %v188_v57, %v185_v56  ;;  %v190_v60 = vld [vmem:[#allocation3 + $0x40] sm:$0xff] }
 0x188   :  { %v472_v62 = vpop.xlane.xlu1 %471 }
 0x189   :  { %v360_v63 = vadd.f32 1e-05, %v358_v61  ;;  %v473_v1 = vmul.f32 0.03125, %v472_v62  ;;  %v199_v61 = vpack.c.bf16 %v190_v60, %v187_v58  ;;  %683 = vmatpush1.bf16.msra.mxu0 %v197_v59  ;;  %v192_v62 = vld [vmem:[#allocation3 + $0x68] sm:$0xff] }
 0x18b   :  { %4978 = vrsqrt.f32 %v360_v63  ;;  %v479_v3 = vmul.f32 %v473_v1, %v473_v1  ;;  %v481_v23 = vsub.f32 %v5269_v34, %v473_v1  ;;  %v66_v34 = vpack.c.bf16 %v64_v31, %v63_v30  ;;  %v195_v63 = vld [vmem:[#allocation3 + $0x98] sm:$0xff] }
 0x18c   :  { %v477_v2 = vpop.xlane.xlu1 %476  ;;  %v201_v1 = vpack.c.bf16 %v195_v63, %v192_v62  ;;  %v215_v31 = vpack.c.bf16 %v206_v22, %v203_v21 }
 0x18d   :  { %v478_v4 = vmul.f32 0.03125, %v477_v2  ;;  %v191_v2 = vld [vmem:[#allocation3 + $0x60] sm:$0xff] }
 0x18e   :  { %684 = vmatprep.subr.bf16.mxu0 %v201_v1 }
 0x18f   :  { %v480_v5 = vsub.f32 %v478_v4, %v479_v3  ;;  %v194_v3 = vld [vmem:[#allocation3 + $0x90] sm:$0xff] }
 0x190   :  { %v590_v6 = vpop.xlane.xlu0 %589  ;;  %v193_v4 = vld [vmem:[#allocation3 + $0x70] sm:$0xff] }
 0x191   :  { %v482_v7 = vadd.f32 1e-05, %v480_v5  ;;  %v591_v8 = vmul.f32 0.03125, %v590_v6  ;;  %v200_v5 = vpack.c.bf16 %v194_v3, %v191_v2  ;;  %v196_v6 = vld [vmem:[#allocation3 + $0xa0] sm:$0xff] }
 0x192   :  { %v595_v9 = vpop.xlane.xlu1 %594 }
 0x193   :  { %4980 = vrsqrt.f32 %v482_v7  ;;  %v597_v10 = vmul.f32 %v591_v8, %v591_v8  ;;  %v596_v11 = vmul.f32 0.03125, %v595_v9  ;;  %v599_v35 = vsub.f32 %v5279_v43, %v591_v8  ;;  %685 = vmatpush1.bf16.msra.mxu0 %v200_v5  ;;  %v204_v8 = vld [vmem:[#allocation3 + $0xc8] sm:$0xff]  ;;  %v207_v9 = vld [vmem:[#allocation3 + $0xf8] sm:$0xff] }
 0x194   :  { %v81_v43 = vpack.c.bf16 %v78_v38, %v77_v37  ;;  %v202_v7 = vpack.c.bf16 %v196_v6, %v193_v4  ;;  %v212_v37 = vld [vmem:[#allocation3 + $0x150] sm:$0xff] }
 0x195   :  { %v4979_v13 = vpop.eup %4978  ;;  %v598_v14 = vsub.f32 %v596_v11, %v597_v10  ;;  %v216_v10 = vpack.c.bf16 %v207_v9, %v204_v8  ;;  %v6516_v11 = vmov 0   ;;  %v211_v38 = vld [vmem:[#allocation3 + $0x130] sm:$0xff] }
 0x196   :  { %v362_v16 = vmul.f32 %v4979_v13, %v359_v12  ;;  %714 = vmatprep.mubr.bf16.mxu0 %v6516_v11  ;;  %4976 = vset.pattern.permute.xlu0 %v6516_v11 }
 0x197   :  { %v600_v17 = vadd.f32 1e-05, %v598_v14  ;;  %783 = vmatprep.subr.bf16.mxu0 %v216_v10  ;;  %4977 = vset.pattern.permute.xlu1 %v6516_v11 }
 0x198   :  { %v367_v19 = vmul.f32 %v4269_v15, %v362_v16 }
 0x199   :  { %4982 = vrsqrt.f32 %v600_v17 }
 0x19a   :  { %v372_v20 = vadd.f32 %v4270_v18, %v367_v19 }
 0x19c   :  { %v373_v24 = vmax.f32 %v372_v20, 0.0  ;;  %v4283_v20 = vld [vmem:[%s6508_s0 + $0x118] ss:$0 sm:$0xff] }
 0x19d   :  { %v4981_v25 = vpop.eup %4980 }
 0x19e   :  { %v484_v28 = vmul.f32 %v4981_v25, %v481_v23  ;;  %v374_v29 = vpack.c.bf16 %v373_v24, %v373_v24  ;;  %v205_v23 = vld [vmem:[#allocation3 + $0xd0] sm:$0xff]  ;;  %v208_v24 = vld [vmem:[#allocation3 + $0x100] sm:$0xff] }
 0x1a0   :  { %4563 = vmatmul.mubr.msk.bf16.vlgmr.msra.gmra.mrb[0].mxu1 %vm302_vm1, %v374_v29  ;;  %v489_v33 = vmul.f32 %v4275_v27, %v484_v28  ;;  %v213_v27 = vld [vmem:[#allocation3 + $0x158] sm:$0xff] }
 0x1a1   :  { %4575 = vmatpush3.bf16.msra.mxu1 %v65_v26  ;;  %4578 = vmatprep.mubr.msk.bf16.mxu1 %vm5136_vm0, %v6520_v0  ;;  %v210_v26 = vld [vmem:[#allocation3 + $0x128] sm:$0xff] }
 0x1a2   :  { %4576 = vmatprep.subr.bf16.mxu1 %v6520_v0  ;;  %v494_v36 = vadd.f32 %v4276_v32, %v489_v33  ;;  %v217_v32 = vpack.c.bf16 %v208_v24, %v205_v23  ;;  %v209_v33 = vld [vmem:[#allocation3 + $0x120] sm:$0xff] }
 0x1a3   :  { %v4983_v39 = vpop.eup %4982 }
 0x1a4   :  { %v602_v41 = vmul.f32 %v4983_v39, %v599_v35  ;;  %v495_v42 = vmax.f32 %v494_v36, 0.0  ;;  %v219_v36 = vpack.c.bf16 %v213_v27, %v210_v26  ;;  %v214_v39 = vld [vmem:[#allocation3 + $0x160] sm:$0xff] }
 0x1a5   :  { %4577 = vmatpush3.bf16.msra.mxu1 %v66_v34 }
 0x1a6   :  { %v496_v45 = vpack.c.bf16 %v495_v42, %v495_v42  ;;  %4590 = vmatprep.subr.bf16.mxu1 %v6520_v0  ;;  %v607_v48 = vmul.f32 %v4281_v40, %v602_v41  ;;  %v4271_v40 = vld [vmem:[%s6508_s0 + $0x58] ss:$0 sm:$0xff]  ;;  %v218_v41 = vpack.c.bf16 %v212_v37, %v209_v33  ;;  %v220_v42 = vpack.c.bf16 %v214_v39, %v211_v38  ;;  %v84_v37 = vld [vmem:[%s6508_s0 + $0x120] sm:$0xff]  ;;  %v85_v38 = vld [vmem:[%s6508_s0 + $0x128] sm:$0xff] }
 0x1a7   :  { %v86_v39 = vld [vmem:[%s6508_s0 + $0x130] sm:$0xff] }
 0x1a8   :  { %4579 = vmatmul.mubr.msk.bf16.vlgmr.msra.gmra.mrb[4].mxu1 %vm302_vm1, %v496_v45  ;;  %v612_v49 = vadd.f32 %v4282_v44, %v607_v48  ;;  %v664_v45 = vlaneseq }
 0x1a9   :  { %4591 = vmatpush3.bf16.msra.mxu1 %v81_v43  ;;  %4594 = vmatprep.mubr.msk.bf16.mxu1 %vm5136_vm0, %v6520_v0 }
 0x1aa   :  { %4592 = vmatprep.subr.bf16.mxu1 %v6520_v0  ;;  %v613_v51 = vmax.f32 %v612_v49, 0.0  ;;  %v5394_v46 = vshrl.u32 %v664_v45, 7  ;;  %v222_v49 = vld [vmem:[#allocation3 + $0x180] ss:$8 sm:$0x7] }
 0x1ac   :  { %v614_v52 = vpack.c.bf16 %v613_v51, %v613_v51  ;;  %6563 = vst [vmem:[#allocation8_spill] sm:$0xff] %v5394_v46  ;;  %v5400_v58 = vsub.s32 1, %v5394_v46 }
 0x1ad   :  { %4593 = vmatpush3.bf16.msra.mxu1 %v82_v50  ;;  %v5397_v50 = vsub.s32 0, %v5394_v46 }
 0x1ae   :  { %4598 = vmatprep.subr.bf16.mxu1 %v6520_v0  ;;  %v671_v62 = vrot.slane %v222_v49, %v5400_v58 }
 0x1af   :  { %v667_v59 = vrot.slane %v222_v49, %v5397_v50  ;;  %v768_v60 = vrot.slane %v224_v55, %v5397_v50 }
 0x1b0   :  { %4595 = vmatmul.mubr.msk.bf16.vlgmr.msra.gmra.mrb[8].mxu1 %vm302_vm1, %v614_v52 }
 0x1b1   :  { %4602 = vmatprep.mubr.msk.bf16.mxu1 %vm5136_vm0, %v6520_v0  ;;  %4599 = vmatpush3.bf16.msra.mxu1 %v199_v61  ;;  %v772_v61 = vrot.slane %v224_v55, %v5400_v58 }
 0x1b2   :  { %4600 = vmatprep.subr.bf16.mxu1 %v6520_v0 }
 0x1b5   :  { %4601 = vmatpush3.bf16.msra.mxu1 %v202_v7 }
 0x1b6   :  { %4606 = vmatprep.subr.bf16.mxu1 %v6520_v0 }
 0x273   :  { %v416_v12 = vpop.f32.mrb[0].mxu1 }
 0x274   :  { %v4564_v13 = vpop.f32.mrb[1].mxu1  ;;  %v5373_v43 = vadd.f32 %v4271_v40, %v416_v12  ;;  %v88_v40 = vpack.c.bf16 %v85_v38, %v84_v37  ;;  %v171_v37 = vld [vmem:[%s6508_s0 + $0x320] sm:$0xff]  ;;  %v172_v38 = vld [vmem:[%s6508_s0 + $0x328] sm:$0xff] }
 0x275   :  { %v419_v14 = vpop.f32.mrb[2].mxu1 }
 0x276   :  { %v4565_v15 = vpop.f32.mrb[3].mxu1  ;;  %6562 = vst [vmem:[#allocation7_spill] sm:$0xff] %v5373_v43  ;;  %v5381_v44 = vpack.c.bf16 %v5373_v43, %v5373_v43 }
 0x27b   :  { %v5363_v16 = vpop.f32.mrb[4].mxu1 }
 0x27c   :  { %6561 = vst [vmem:[#allocation6_spill] sm:$0xff] %v5363_v16  ;;  %v4580_v17 = vpop.f32.mrb[5].mxu1 }
 0x27d   :  { %v541_v18 = vpop.f32.mrb[6].mxu1 }
 0x27e   :  { %v4581_v19 = vpop.f32.mrb[7].mxu1 }
 0x283   :  { %v656_v25 = vpop.f32.mrb[8].mxu1 }
 0x284   :  { %v657_v28 = vadd.f32 %v4283_v20, %v656_v25  ;;  %v4596_v29 = vpop.f32.mrb[9].mxu1  ;;  %v5407_v20 = vsub.s32 2, %v5394_v46 }
 0x285   :  { %v659_v30 = vpop.f32.mrb[10].mxu1 }
 0x286   :  { %v662_v34 = vpack.c.bf16 %v657_v28, %v657_v28  ;;  %v4597_v35 = vpop.f32.mrb[11].mxu1  ;;  %v776_v22 = vrot.slane %v224_v55, %v5407_v20  ;;  %v675_v23 = vrot.slane %v222_v49, %v5407_v20 }
 0x288   :  { %4285 = vmatmul.mubr.msk.bf16.vlgmr.msra.gmra.mrb[12].mxu0 %vm302_vm1, %v662_v34  ;;  %4603 = vmatmul.mubr.msk.bf16.vlgmr.msra.gmra.mrb[12].mxu1 %vm302_vm1, %v662_v34 }
 0x289   :  { %784 = vmatpush1.bf16.msra.mxu0 %v215_v31  ;;  %4607 = vmatpush3.bf16.msra.mxu1 %v217_v32 }
 0x28a   :  { %785 = vmatprep.subr.bf16.mxu0 %v219_v36  ;;  %4608 = vmatprep.subr.bf16.mxu1 %v6520_v0 }
 0x28b   :  { %815 = vmatprep.mubr.bf16.mxu0 %v6516_v11  ;;  %4610 = vmatprep.mubr.msk.bf16.mxu1 %vm5136_vm0, %v6520_v0 }
 0x28d   :  { %786 = vmatpush1.bf16.msra.mxu0 %v218_v41  ;;  %4609 = vmatpush3.bf16.msra.mxu1 %v220_v42 }
 0x28e   :  { %890 = vmatprep.subr.bf16.mxu0 %v216_v10  ;;  %4614 = vmatprep.subr.bf16.mxu1 %v6520_v0 }
 0x290   :  { %4287 = vmatmul.mubr.msk.bf16.vlgmr.msra.gmra.mrb[16].mxu0 %vm302_vm1, %v5381_v44  ;;  %4611 = vmatmul.mubr.msk.bf16.vlgmr.msra.gmra.mrb[16].mxu1 %vm302_vm1, %v5381_v44 }
 0x291   :  { %891 = vmatpush1.bf16.msra.mxu0 %v215_v31  ;;  %4615 = vmatpush3.bf16.msra.mxu1 %v217_v32 }
 0x292   :  { %892 = vmatprep.subr.bf16.mxu0 %v219_v36  ;;  %4616 = vmatprep.subr.bf16.mxu1 %v6520_v0 }
 0x293   :  { %922 = vmatprep.mubr.bf16.mxu0 %v6516_v11  ;;  %4618 = vmatprep.mubr.msk.bf16.mxu1 %vm5136_vm0, %v6520_v0 }
 0x295   :  { %893 = vmatpush1.bf16.msra.mxu0 %v218_v41  ;;  %4617 = vmatpush3.bf16.msra.mxu1 %v220_v42  ;;  %v87_v41 = vld [vmem:[%s6508_s0 + $0x138] sm:$0xff] }
 0x296   :  { %4622 = vmatprep.subr.bf16.mxu0 %v6520_v0  ;;  %4630 = vmatprep.subr.bf16.mxu1 %v6520_v0  ;;  %v89_v42 = vpack.c.bf16 %v87_v41, %v86_v39  ;;  %v5477_v39 = vpack.c.bf16 %v172_v38, %v171_v37  ;;  %v174_v41 = vld [vmem:[%s6508_s0 + $0x338] sm:$0xff] }
 0x298   :  { %6568 = vst [vmem:[#allocation13_spill] sm:$0xff] %v5477_v39 }
 0x35b   :  { %v716_v47 = vpop.f32.mrb[12].mxu0  ;;  %v757_v48 = vpop.f32.mrb[12].mxu1 }
 0x35c   :  { %v718_v51 = vpop.f32.mrb[13].mxu0  ;;  %v4604_v52 = vpop.f32.mrb[13].mxu1  ;;  %v717_v2 = vadd.f32 %v716_v47, %v667_v59  ;;  %v758_v27 = vadd.f32 %v757_v48, %v675_v23  ;;  %v262_v23 = vld [vmem:[#allocation3 + $0x2a8] sm:$0xff] }
 0x35d   :  { %v720_v53 = vpop.f32.mrb[14].mxu0  ;;  %v760_v54 = vpop.f32.mrb[14].mxu1  ;;  %v719_v13 = vadd.f32 %v718_v51, %v671_v62 }
 0x35e   :  { %v721_v56 = vpop.f32.mrb[15].mxu0  ;;  %v4605_v57 = vpop.f32.mrb[15].mxu1 }
 0x363   :  { %v817_v63 = vpop.f32.mrb[16].mxu0  ;;  %v858_v1 = vpop.f32.mrb[16].mxu1 }
 0x364   :  { %v818_v3 = vadd.f32 %v817_v63, %v768_v60  ;;  %v819_v4 = vpop.f32.mrb[17].mxu0  ;;  %v4612_v5 = vpop.f32.mrb[17].mxu1  ;;  %v859_v25 = vadd.f32 %v858_v1, %v776_v22 }
 0x365   :  { %v820_v6 = vadd.f32 %v819_v4, %v772_v61  ;;  %v821_v7 = vpop.f32.mrb[18].mxu0  ;;  %v861_v8 = vpop.f32.mrb[18].mxu1 }
 0x366   :  { %v864_v9 = vadd.f32 %v818_v3, %v717_v2  ;;  %v822_v10 = vpop.f32.mrb[19].mxu0  ;;  %v4613_v12 = vpop.f32.mrb[19].mxu1 }
 0x367   :  { %v871_v15 = vadd.f32 %v820_v6, %v719_v13 }
 0x368   :  { %v4289_v14 = vmul.f32 -1.442695, %v864_v9 }
 0x369   :  { %v4290_v17 = vmul.f32 -1.442695, %v871_v15  ;;  %v133_v15 = vld [vmem:[%s6508_s0 + $0x248] sm:$0xff] }
 0x36a   :  { %4984 = vpow2.f32 %v4289_v14  ;;  %v132_v14 = vld [vmem:[%s6508_s0 + $0x240] sm:$0xff] }
 0x36b   :  { %4986 = vpow2.f32 %v4290_v17 }
 0x374   :  { %v4985_v18 = vpop.eup %4984 }
 0x375   :  { %v868_v19 = vadd.f32 1.0, %v4985_v18  ;;  %v4987_v21 = vpop.eup %4986  ;;  %v136_v18 = vpack.c.bf16 %v133_v15, %v132_v14 }
 0x376   :  { %v875_v24 = vadd.f32 1.0, %v4987_v21  ;;  %v134_v21 = vld [vmem:[%s6508_s0 + $0x250] sm:$0xff] }
 0x377   :  { %4988 = vrcp.f32 %v868_v19 }
 0x378   :  { %4990 = vrcp.f32 %v875_v24  ;;  %v265_v24 = vld [vmem:[#allocation3 + $0x2d8] sm:$0xff] }
 0x381   :  { %v4989_v26 = vpop.eup %4988 }
 0x382   :  { %v878_v28 = vmul.f32 %v4989_v26, %v859_v25  ;;  %v4991_v30 = vpop.eup %4990  ;;  %v5457_v26 = vpack.c.bf16 %v265_v24, %v262_v23 }
 0x383   :  { %v881_v31 = vsub.f32 1.0, %v4991_v30  ;;  %v883_v33 = vmul.f32 %v4991_v30, %v5373_v43  ;;  %v271_v30 = vld [vmem:[#allocation3 + $0x338] sm:$0xff] }
 0x384   :  { %v879_v29 = vadd.f32 %v878_v28, %v758_v27  ;;  %v264_v28 = vld [vmem:[#allocation3 + $0x2d0] sm:$0xff] }
 0x386   :  { %4992 = vtanh.f32 %v879_v29  ;;  %v268_v29 = vld [vmem:[#allocation3 + $0x308] sm:$0xff] }
 0x390   :  { %v4993_v32 = vpop.eup %4992 }
 0x391   :  { %v882_v34 = vmul.f32 %v4993_v32, %v881_v31  ;;  %v5462_v32 = vpack.c.bf16 %v271_v30, %v268_v29  ;;  %v95_v29 = vld [vmem:[%s6508_s0 + $0x168] sm:$0xff] }
 0x393   :  { %v884_v35 = vadd.f32 %v883_v33, %v882_v34  ;;  %6566 = vst [vmem:[#allocation11_spill] sm:$0xff] %v5462_v32  ;;  %v267_v33 = vld [vmem:[#allocation3 + $0x300] sm:$0xff]  ;;  %v270_v34 = vld [vmem:[#allocation3 + $0x330] sm:$0xff] }
 0x395   :  { %885 = vst.msk [vmem:[#allocation2] sm:$0x3] %vm346_vm2, %v884_v35  ;;  %v5413_v36 = vpack.c.bf16 %v884_v35, %v884_v35 }
 0x397   :  { %4291 = vmatmul.mubr.msk.bf16.vlgmr.msra.gmra.mrb[20].mxu0 %vm302_vm1, %v5413_v36  ;;  %4619 = vmatmul.mubr.msk.bf16.vlgmr.msra.gmra.mrb[20].mxu1 %vm302_vm1, %v5413_v36 }
 0x398   :  { %4626 = vmatprep.mubr.msk.bf16.mxu0 %vm5136_vm0, %v6520_v0  ;;  %4634 = vmatprep.mubr.msk.bf16.mxu1 %vm5136_vm0, %v6520_v0 }
 0x399   :  { %4623 = vmatpush3.bf16.msra.mxu0 %v88_v40  ;;  %v173_v40 = vld [vmem:[%s6508_s0 + $0x330] sm:$0xff] }
 0x39a   :  { %4624 = vmatprep.subr.bf16.mxu0 %v6520_v0 }
 0x39d   :  { %4625 = vmatpush3.bf16.msra.mxu0 %v89_v42  ;;  %v228_v42 = vld [vmem:[#allocation3 + $0x1f8] sm:$0xff] }
 0x39e   :  { %4638 = vmatprep.subr.bf16.mxu0 %v6520_v0 }
 0x46a   :  { %v924_v45 = vpop.f32.mrb[20].mxu0  ;;  %v965_v47 = vpop.f32.mrb[20].mxu1 }
 0x46b   :  { %v925_v48 = vadd.f32 %v924_v45, %v768_v60  ;;  %v926_v49 = vpop.f32.mrb[21].mxu0  ;;  %v4620_v51 = vpop.f32.mrb[21].mxu1  ;;  %v966_v6 = vadd.f32 %v965_v47, %v776_v22  ;;  %v135_v22 = vld [vmem:[%s6508_s0 + $0x258] sm:$0xff]  ;;  %v234_v45 = vld [vmem:[#allocation3 + $0x228] sm:$0xff]  ;;  %v5489_v47 = vpack.c.bf16 %v174_v41, %v173_v40 }
 0x46c   :  { %v927_v52 = vadd.f32 %v926_v49, %v772_v61  ;;  %v928_v53 = vpop.f32.mrb[22].mxu0  ;;  %v968_v54 = vpop.f32.mrb[22].mxu1  ;;  %v137_v25 = vpack.c.bf16 %v135_v22, %v134_v21  ;;  %v227_v49 = vld [vmem:[#allocation3 + $0x1f0] sm:$0xff]  ;;  %v233_v51 = vld [vmem:[#allocation3 + $0x220] sm:$0xff] }
 0x46d   :  { %v971_v55 = vadd.f32 %v925_v48, %v717_v2  ;;  %v929_v56 = vpop.f32.mrb[23].mxu0  ;;  %v4621_v57 = vpop.f32.mrb[23].mxu1  ;;  %6569 = vst [vmem:[#allocation14_spill] sm:$0xff] %v5489_v47  ;;  %v5494_v48 = vpack.c.bf16 %v234_v45, %v228_v42  ;;  %v246_v53 = vld [vmem:[#allocation3 + $0x288] sm:$0xff]  ;;  %v5497_v54 = vpack.c.bf16 %v233_v51, %v227_v49 }
 0x46e   :  { %v978_v62 = vadd.f32 %v927_v52, %v719_v13  ;;  %v240_v52 = vld [vmem:[#allocation3 + $0x258] sm:$0xff]  ;;  %v239_v56 = vld [vmem:[#allocation3 + $0x250] sm:$0xff]  ;;  %v245_v57 = vld [vmem:[#allocation3 + $0x280] sm:$0xff] }
 0x46f   :  { %v4293_v59 = vmul.f32 -1.442695, %v971_v55  ;;  %v5500_v55 = vpack.c.bf16 %v246_v53, %v240_v52  ;;  %v4297_v53 = vld [vmem:[%s6508_s0 + $0x148] ss:$0 sm:$0xff] }
 0x470   :  { %v4294_v63 = vmul.f32 -1.442695, %v978_v62  ;;  %v4295_v62 = vld [vmem:[%s6508_s0 + $0x140] ss:$0 sm:$0xff] }
 0x471   :  { %4994 = vpow2.f32 %v4293_v59  ;;  %v5505_v59 = vpack.c.bf16 %v245_v57, %v239_v56  ;;  %v4298_v57 = vld [vmem:[%s6508_s0 + $0x150] ss:$0 sm:$0xff] }
 0x472   :  { %4996 = vpow2.f32 %v4294_v63 }
 0x47b   :  { %v4995_v1 = vpop.eup %4994 }
 0x47c   :  { %v975_v3 = vadd.f32 1.0, %v4995_v1  ;;  %v4997_v4 = vpop.eup %4996 }
 0x47d   :  { %v982_v5 = vadd.f32 1.0, %v4997_v4 }
 0x47e   :  { %4998 = vrcp.f32 %v975_v3 }
 0x47f   :  { %5000 = vrcp.f32 %v982_v5 }
 0x488   :  { %v4999_v60 = vpop.eup %4998 }
 0x489   :  { %v985_v7 = vmul.f32 %v4999_v60, %v966_v6  ;;  %v5001_v8 = vpop.eup %5000 }
 0x48a   :  { %v988_v2 = vsub.f32 1.0, %v5001_v8  ;;  %v990_v12 = vmul.f32 %v5001_v8, %v884_v35  ;;  %v5466_v35 = vpack.c.bf16 %v270_v34, %v267_v33  ;;  %v96_v33 = vld [vmem:[%s6508_s0 + $0x170] sm:$0xff] }
 0x48b   :  { %v986_v61 = vadd.f32 %v985_v7, %v758_v27  ;;  %v261_v27 = vld [vmem:[#allocation3 + $0x2a0] sm:$0xff]  ;;  %v98_v34 = vpack.c.bf16 %v96_v33, %v95_v29  ;;  %v238_v29 = vld [vmem:[#allocation3 + $0x248] sm:$0xff] }
 0x48c   :  { %v5459_v31 = vpack.c.bf16 %v264_v28, %v261_v27  ;;  %6567 = vst [vmem:[#allocation12_spill] sm:$0xff] %v5466_v35  ;;  %v93_v27 = vld [vmem:[%s6508_s0 + $0x158] sm:$0xff]  ;;  %v94_v28 = vld [vmem:[%s6508_s0 + $0x160] sm:$0xff] }
 0x48d   :  { %5002 = vtanh.f32 %v986_v61  ;;  %v97_v30 = vpack.c.bf16 %v94_v28, %v93_v27  ;;  %v225_v27 = vld [vmem:[#allocation3 + $0x1e0] sm:$0xff]  ;;  %v231_v28 = vld [vmem:[#allocation3 + $0x210] sm:$0xff] }
 0x48e   :  { %6565 = vst [vmem:[#allocation10_spill] sm:$0xff] %v5459_v31  ;;  %v5572_v33 = vpack.c.bf16 %v231_v28, %v225_v27 }
 0x48f   :  { %4631 = vmatpush3.bf16.msra.mxu1 %v97_v30  ;;  %v244_v30 = vld [vmem:[#allocation3 + $0x278] sm:$0xff] }
 0x490   :  { %4632 = vmatprep.subr.bf16.mxu1 %v6520_v0 }
 0x493   :  { %4633 = vmatpush3.bf16.msra.mxu1 %v98_v34  ;;  %v5575_v34 = vpack.c.bf16 %v244_v30, %v238_v29  ;;  %v282_v29 = vld [vmem:[#allocation3 + $0x390] ss:$8 sm:$0x7] }
 0x494   :  { %4646 = vmatprep.subr.bf16.mxu1 %v6520_v0 }
 0x497   :  { %v5003_v9 = vpop.eup %5002 }
 0x498   :  { %v989_v10 = vmul.f32 %v5003_v9, %v988_v2 }
 0x49a   :  { %v5437_v13 = vadd.f32 %v990_v12, %v989_v10 }
 0x49c   :  { %6564 = vst [vmem:[#allocation9_spill] sm:$0xff] %v5437_v13  ;;  %992 = vst.msk [vmem:[#allocation2 + $0x2] sm:$0x3] %vm346_vm2, %v5437_v13 }
 0x4a3   :  { %v993_v17 = vld [vmem:[#allocation2] sm:$0xf] }
 0x4a4   :  { %v994_v19 = vpack.c.bf16 %v993_v17, %v993_v17 }
 0x4a6   :  { %4627 = vmatmul.mubr.msk.bf16.vlgmr.msra.gmra.mrb[24].mxu0 %vm302_vm1, %v994_v19 }
 0x4a7   :  { %4639 = vmatpush3.bf16.msra.mxu0 %v136_v18  ;;  %4642 = vmatprep.mubr.msk.bf16.mxu0 %vm5136_vm0, %v6520_v0 }
 0x4a8   :  { %4640 = vmatprep.subr.bf16.mxu0 %v6520_v0 }
 0x4ab   :  { %4641 = vmatpush3.bf16.msra.mxu0 %v137_v25 }
 0x4ac   :  { %1241 = vmatprep.subr.bf16.mxu0 %v5457_v26 }
 0x4ae   :  { %4643 = vmatmul.mubr.msk.bf16.vlgmr.msra.gmra.mrb[28].mxu0 %vm302_vm1, %v994_v19 }
 0x4af   :  { %1242 = vmatpush1.bf16.msra.mxu0 %v5459_v31  ;;  %1273 = vmatprep.mubr.bf16.mxu0 %v6516_v11 }
 0x4b0   :  { %1243 = vmatprep.subr.bf16.mxu0 %v5462_v32 }
 0x4b3   :  { %1244 = vmatpush1.bf16.msra.mxu0 %v5466_v35 }
 0x4b4   :  { %4660 = vmatprep.subr.bf16.mxu0 %v6520_v0 }
 0x4b6   :  { %4306 = vmatmul.mubr.msk.bf16.vlgmr.msra.gmra.mrb[32].mxu0 %vm302_vm1, %v5413_v36 }
 0x4b7   :  { %4661 = vmatpush3.bf16.msra.mxu0 %v5477_v39  ;;  %4664 = vmatprep.mubr.msk.bf16.mxu0 %vm5136_vm0, %v6520_v0 }
 0x4b8   :  { %4662 = vmatprep.subr.bf16.mxu0 %v6520_v0 }
 0x4bb   :  { %4663 = vmatpush3.bf16.msra.mxu0 %v5489_v47 }
 0x4bc   :  { %1403 = vmatprep.subr.bf16.mxu0 %v5494_v48 }
 0x4be   :  { %4665 = vmatmul.mubr.msk.bf16.vlgmr.msra.gmra.mrb[36].mxu0 %vm302_vm1, %v5413_v36 }
 0x4bf   :  { %1404 = vmatpush1.bf16.msra.mxu0 %v5497_v54  ;;  %1435 = vmatprep.mubr.bf16.mxu0 %v6516_v11 }
 0x4c0   :  { %1405 = vmatprep.subr.bf16.mxu0 %v5500_v55 }
 0x4c3   :  { %1406 = vmatpush1.bf16.msra.mxu0 %v5505_v59 }
 0x4c4   :  { %4668 = vmatprep.subr.bf16.mxu0 %v6520_v0 }
 0x4c6   :  { %4310 = vmatmul.mubr.msk.bf16.vlgmr.msra.gmra.mrb[40].mxu0 %vm302_vm1, %v5381_v44 }
 0x4c7   :  { %4672 = vmatprep.mubr.msk.bf16.mxu0 %vm5136_vm0, %v6520_v0 }
 0x579   :  { %v1036_v63 = vpop.f32.mrb[24].mxu0 }
 0x57a   :  { %v1037_v1 = vadd.f32 %v4295_v62, %v1036_v63  ;;  %v4628_v3 = vpop.f32.mrb[25].mxu0 }
 0x57b   :  { %v1039_v4 = vpop.f32.mrb[26].mxu0  ;;  %v139_v3 = vld [vmem:[%s6508_s0 + $0x268] sm:$0xff] }
 0x57c   :  { %v4629_v5 = vpop.f32.mrb[27].mxu0  ;;  %v1043_v6 = vsel %vm1042_vm3, %v1037_v1, 0.0  ;;  %v1047_v60 = vmul.f32 %v1037_v1, %v1037_v1  ;;  %v4301_v4 = vld [vmem:[%s6508_s0 + $0x260] ss:$0 sm:$0xff] }
 0x57d   :  { %1044 = vadd.xlane.f32.xlu0 %v1043_v6 }
 0x57e   :  { %v1048_v7 = vsel %vm1042_vm3, %v1047_v60, 0.0 }
 0x57f   :  { %1049 = vadd.xlane.f32.xlu1 %v1048_v7 }
 0x581   :  { %v1155_v61 = vpop.f32.mrb[28].mxu0 }
 0x582   :  { %v4644_v8 = vpop.f32.mrb[29].mxu0  ;;  %v1156_v60 = vadd.f32 %v4301_v4, %v1155_v61  ;;  %v232_v61 = vld [vmem:[#allocation3 + $0x218] sm:$0xff]  ;;  %v118_v4 = vld [vmem:[%s6508_s0 + $0x1f0] sm:$0xff] }
 0x583   :  { %v1158_v2 = vpop.f32.mrb[30].mxu0 }
 0x584   :  { %v4645_v9 = vpop.f32.mrb[31].mxu0  ;;  %v1161_v8 = vmax.f32 %v1156_v60, 0.0  ;;  %v263_v2 = vld [vmem:[#allocation3 + $0x2b0] sm:$0xff] }
 0x585   :  { %v266_v9 = vld [vmem:[#allocation3 + $0x2e0] sm:$0xff] }
 0x589   :  { %v5518_v10 = vpop.f32.mrb[32].mxu0 }
 0x58a   :  { %v5520_v12 = vpop.f32.mrb[33].mxu0 }
 0x58b   :  { %v1279_v14 = vpop.f32.mrb[34].mxu0 }
 0x58c   :  { %v1280_v15 = vpop.f32.mrb[35].mxu0  ;;  %v5561_v14 = vpack.c.bf16 %v266_v9, %v263_v2 }
 0x58d   :  { %v1162_v15 = vpack.c.bf16 %v1161_v8, %v1161_v8 }
 0x58e   :  { %6570 = vst [vmem:[#allocation15_spill] sm:$0xff] %v5561_v14 }
 0x591   :  { %v5522_v17 = vpop.f32.mrb[36].mxu0 }
 0x592   :  { %v4666_v18 = vpop.f32.mrb[37].mxu0 }
 0x593   :  { %v1359_v19 = vpop.f32.mrb[38].mxu0  ;;  %v269_v18 = vld [vmem:[#allocation3 + $0x310] sm:$0xff] }
 0x594   :  { %v4667_v21 = vpop.f32.mrb[39].mxu0  ;;  %v272_v19 = vld [vmem:[#allocation3 + $0x340] sm:$0xff] }
 0x595   :  { %v226_v21 = vld [vmem:[#allocation3 + $0x1e8] sm:$0xff] }
 0x599   :  { %v5524_v22 = vpop.f32.mrb[40].mxu0 }
 0x59a   :  { %v5526_v23 = vpop.f32.mrb[41].mxu0 }
 0x59b   :  { %v1441_v24 = vpop.f32.mrb[42].mxu0 }
 0x59c   :  { %v1442_v25 = vpop.f32.mrb[43].mxu0  ;;  %v5564_v24 = vpack.c.bf16 %v272_v19, %v269_v18 }
 0x59d   :  { %v5569_v25 = vpack.c.bf16 %v232_v61, %v226_v21  ;;  %v280_v61 = vld [vmem:[#allocation3 + $0x360] ss:$8 sm:$0x7] }
 0x59e   :  { %6571 = vst [vmem:[#allocation16_spill] sm:$0xff] %v5564_v24 }
 0x60a   :  { %v1045_v37 = vpop.xlane.xlu0 %1044 }
 0x60b   :  { %v1046_v38 = vmul.f32 0.03125, %v1045_v37  ;;  %v237_v37 = vld [vmem:[#allocation3 + $0x240] sm:$0xff] }
 0x60c   :  { %v1050_v40 = vpop.xlane.xlu1 %1049 }
 0x60d   :  { %v1052_v41 = vmul.f32 %v1046_v38, %v1046_v38  ;;  %v1051_v42 = vmul.f32 0.03125, %v1050_v40  ;;  %v1054_v51 = vsub.f32 %v1037_v1, %v1046_v38  ;;  %v140_v1 = vld [vmem:[%s6508_s0 + $0x270] sm:$0xff]  ;;  %v243_v38 = vld [vmem:[#allocation3 + $0x270] sm:$0xff] }
 0x60e   :  { %v141_v6 = vpack.c.bf16 %v140_v1, %v139_v3  ;;  %v230_v40 = vld [vmem:[#allocation3 + $0x208] sm:$0xff]  ;;  %v116_v3 = vld [vmem:[%s6508_s0 + $0x1e0] sm:$0xff]  ;;  %v117_v1 = vld [vmem:[%s6508_s0 + $0x1e8] sm:$0xff] }
 0x60f   :  { %v1053_v45 = vsub.f32 %v1051_v42, %v1052_v41  ;;  %v236_v41 = vld [vmem:[#allocation3 + $0x238] sm:$0xff]  ;;  %v5580_v42 = vpack.c.bf16 %v243_v38, %v237_v37  ;;  %v5630_v37 = vrot.slane %v280_v61, %v5397_v50 }
 0x611   :  { %v1055_v49 = vadd.f32 1e-05, %v1053_v45  ;;  %v5584_v45 = vpack.c.bf16 %v236_v41, %v230_v40  ;;  %6577 = vst [vmem:[#allocation22_spill] sm:$0xff] %v5630_v37  ;;  %v5633_v40 = vrot.slane %v282_v29, %v5397_v50  ;;  %v5637_v41 = vadd.f32 %v5518_v10, %v5630_v37 }
 0x612   :  { %v5646_v50 = vrot.slane %v282_v29, %v5400_v58 }
 0x613   :  { %5004 = vrsqrt.f32 %v1055_v49  ;;  %v229_v49 = vld [vmem:[#allocation3 + $0x200] sm:$0xff] }
 0x614   :  { %6579 = vst [vmem:[#allocation24_spill] sm:$0xff] %v5646_v50 }
 0x61d   :  { %v5005_v52 = vpop.eup %5004 }
 0x61e   :  { %v1057_v56 = vmul.f32 %v5005_v52, %v1054_v51  ;;  %v235_v51 = vld [vmem:[#allocation3 + $0x230] sm:$0xff]  ;;  %v242_v52 = vld [vmem:[#allocation3 + $0x268] sm:$0xff] }
 0x620   :  { %v1062_v62 = vmul.f32 %v4297_v53, %v1057_v56  ;;  %v248_v53 = vld [vmem:[#allocation3 + $0x298] sm:$0xff]  ;;  %v5587_v56 = vpack.c.bf16 %v235_v51, %v229_v49  ;;  %v1504_v51 = vadd.f32 %v5633_v40, %v5526_v23 }
 0x622   :  { %v1067_v63 = vadd.f32 %v4298_v57, %v1062_v62  ;;  %v241_v57 = vld [vmem:[#allocation3 + $0x260] sm:$0xff]  ;;  %v247_v62 = vld [vmem:[#allocation3 + $0x290] sm:$0xff] }
 0x624   :  { %v1068_v5 = vmax.f32 %v1067_v63, 0.0  ;;  %v5595_v63 = vpack.c.bf16 %v247_v62, %v241_v57  ;;  %v5643_v62 = vrot.slane %v280_v61, %v5400_v58  ;;  %v5655_v58 = vrot.slane %v280_v61, %v5407_v20 }
 0x626   :  { %v1069_v7 = vpack.c.bf16 %v1068_v5, %v1068_v5  ;;  %6572 = vst [vmem:[#allocation17_spill] sm:$0xff] %v5595_v63  ;;  %v5614_v5 = vpack.c.bf16 %v117_v1, %v116_v3  ;;  %6578 = vst [vmem:[#allocation23_spill] sm:$0xff] %v5643_v62  ;;  %v5650_v10 = vadd.f32 %v5520_v12, %v5643_v62  ;;  %v158_v62 = vld [vmem:[%s6508_s0 + $0x2d8] sm:$0xff] }
 0x627   :  { %6580 = vst [vmem:[#allocation25_spill] sm:$0xff] %v5655_v58 }
 0x628   :  { %4635 = vmatmul.mubr.msk.bf16.vlgmr.msra.gmra.mrb[24].mxu1 %vm302_vm1, %v1069_v7  ;;  %6573 = vst [vmem:[#allocation18_spill] sm:$0xff] %v5614_v5  ;;  %4669 = vmatpush3.bf16.msra.mxu0 %v5614_v5 }
 0x629   :  { %4647 = vmatpush3.bf16.msra.mxu1 %v141_v6  ;;  %4648 = vmatprep.mubr.msk.bf16.mxu1 %vm5136_vm0, %v6520_v0  ;;  %v119_v6 = vld [vmem:[%s6508_s0 + $0x1f8] sm:$0xff] }
 0x62a   :  { %4652 = vmatprep.subr.bf16.mxu1 %v6520_v0  ;;  %v5620_v60 = vpack.c.bf16 %v119_v6, %v118_v4  ;;  %4670 = vmatprep.subr.bf16.mxu0 %v6520_v0 }
 0x62c   :  { %6574 = vst [vmem:[#allocation19_spill] sm:$0xff] %v5620_v60  ;;  %4671 = vmatpush3.bf16.msra.mxu0 %v5620_v60 }
 0x62d   :  { %4684 = vmatprep.subr.bf16.mxu0 %v6520_v0 }
 0x630   :  { %4649 = vmatmul.mubr.msk.bf16.vlgmr.msra.gmra.mrb[28].mxu1 %vm1167_vm4, %v1162_v15 }
 0x631   :  { %4653 = vmatpush3.bf16.msra.mxu1 %v5561_v14  ;;  %4656 = vmatprep.mubr.msk.bf16.mxu1 %vm5136_vm0, %v6520_v0  ;;  %v165_v14 = vld [vmem:[%s6508_s0 + $0x300] sm:$0xff] }
 0x632   :  { %4654 = vmatprep.subr.bf16.mxu1 %v6520_v0 }
 0x635   :  { %4655 = vmatpush3.bf16.msra.mxu1 %v5564_v24 }
 0x636   :  { %1362 = vmatprep.subr.bf16.mxu1 %v5569_v25 }
 0x638   :  { %4657 = vmatmul.mubr.msk.bf16.vlgmr.msra.gmra.mrb[32].mxu1 %vm302_vm1, %v5413_v36  ;;  %v5590_v36 = vpack.c.bf16 %v248_v53, %v242_v52 }
 0x639   :  { %1363 = vmatpush1.bf16.msra.mxu1 %v5572_v33  ;;  %1394 = vmatprep.mubr.bf16.mxu1 %v6516_v11 }
 0x63a   :  { %1364 = vmatprep.subr.bf16.mxu1 %v5575_v34 }
 0x63d   :  { %1365 = vmatpush1.bf16.msra.mxu1 %v5580_v42 }
 0x63e   :  { %1444 = vmatprep.subr.bf16.mxu1 %v5584_v45 }
 0x640   :  { %4309 = vmatmul.mubr.msk.bf16.vlgmr.msra.gmra.mrb[36].mxu1 %vm302_vm1, %v5381_v44 }
 0x641   :  { %1445 = vmatpush1.bf16.msra.mxu1 %v5587_v56  ;;  %1476 = vmatprep.mubr.bf16.mxu1 %v6516_v11 }
 0x642   :  { %1446 = vmatprep.subr.bf16.mxu1 %v5590_v36 }
 0x645   :  { %1447 = vmatpush1.bf16.msra.mxu1 %v5595_v63 }
 0x646   :  { %4676 = vmatprep.subr.bf16.mxu1 %v6520_v0 }
 0x648   :  { %4311 = vmatmul.mubr.msk.bf16.vlgmr.msra.gmra.mrb[40].mxu1 %vm302_vm1, %v5381_v44 }
 0x649   :  { %4680 = vmatprep.mubr.msk.bf16.mxu1 %vm5136_vm0, %v6520_v0 }
 0x6fb   :  { %v5625_v7 = vpop.f32.mrb[24].mxu1 }
 0x6fc   :  { %6575 = vst [vmem:[#allocation20_spill] sm:$0xff] %v5625_v7  ;;  %v4636_v8 = vpop.f32.mrb[25].mxu1 }
 0x6fd   :  { %v1114_v2 = vpop.f32.mrb[26].mxu1 }
 0x6fe   :  { %v4637_v9 = vpop.f32.mrb[27].mxu1 }
 0x703   :  { %v5627_v15 = vpop.f32.mrb[28].mxu1 }
 0x704   :  { %6576 = vst [vmem:[#allocation21_spill] sm:$0xff] %v5627_v15  ;;  %v4650_v18 = vpop.f32.mrb[29].mxu1 }
 0x705   :  { %v1208_v19 = vpop.f32.mrb[30].mxu1 }
 0x706   :  { %v4651_v21 = vpop.f32.mrb[31].mxu1 }
 0x70b   :  { %v1316_v27 = vpop.f32.mrb[32].mxu1 }
 0x70c   :  { %v4658_v28 = vpop.f32.mrb[33].mxu1 }
 0x70d   :  { %v1319_v30 = vpop.f32.mrb[34].mxu1 }
 0x70e   :  { %v4659_v38 = vpop.f32.mrb[35].mxu1 }
 0x70f   :  { %v5658_v38 = vrot.slane %v282_v29, %v5407_v20 }
 0x713   :  { %v1396_v49 = vpop.f32.mrb[36].mxu1 }
 0x714   :  { %v1485_v52 = vadd.f32 %v1396_v49, %v5637_v41  ;;  %v1398_v53 = vpop.f32.mrb[37].mxu1  ;;  %v5661_v49 = vadd.f32 %v1316_v27, %v5655_v58 }
 0x715   :  { %v1400_v57 = vpop.f32.mrb[38].mxu1  ;;  %v1486_v23 = vadd.f32 %v1398_v53, %v5650_v10 }
 0x716   :  { %v1507_v3 = vadd.f32 %v1504_v51, %v1485_v52  ;;  %v1401_v1 = vpop.f32.mrb[39].mxu1  ;;  %v1487_v57 = vadd.f32 %v5524_v22, %v5661_v49  ;;  %v5673_v22 = vld [vmem:[%s6508_s0 + $0x200] ss:$0 sm:$0xff] }
 0x718   :  { %v4312_v4 = vmul.f32 -1.442695, %v1507_v3 }
 0x71a   :  { %5006 = vpow2.f32 %v4312_v4 }
 0x71b   :  { %v1478_v6 = vpop.f32.mrb[40].mxu1 }
 0x71c   :  { %v1505_v8 = vadd.f32 %v5646_v50, %v1478_v6  ;;  %v1480_v2 = vpop.f32.mrb[41].mxu1 }
 0x71d   :  { %v1482_v9 = vpop.f32.mrb[42].mxu1  ;;  %v1506_v52 = vadd.f32 %v5658_v38, %v1480_v2 }
 0x71e   :  { %v1514_v18 = vadd.f32 %v1505_v8, %v1486_v23  ;;  %v1483_v19 = vpop.f32.mrb[43].mxu1 }
 0x720   :  { %v4313_v21 = vmul.f32 -1.442695, %v1514_v18 }
 0x722   :  { %5008 = vpow2.f32 %v4313_v21 }
 0x724   :  { %v5007_v28 = vpop.eup %5006 }
 0x725   :  { %v1511_v30 = vadd.f32 1.0, %v5007_v28 }
 0x727   :  { %5010 = vrcp.f32 %v1511_v30 }
 0x72c   :  { %v5009_v12 = vpop.eup %5008 }
 0x72d   :  { %v1518_v51 = vadd.f32 1.0, %v5009_v12  ;;  %v125_v12 = vld [vmem:[%s6508_s0 + $0x218] sm:$0xff] }
 0x72f   :  { %5012 = vrcp.f32 %v1518_v51  ;;  %v126_v51 = vld [vmem:[%s6508_s0 + $0x220] sm:$0xff] }
 0x731   :  { %v5011_v53 = vpop.eup %5010 }
 0x732   :  { %v1521_v3 = vmul.f32 %v5011_v53, %v1506_v52  ;;  %v127_v52 = vld [vmem:[%s6508_s0 + $0x228] sm:$0xff]  ;;  %v5687_v53 = vpack.c.bf16 %v126_v51, %v125_v12 }
 0x734   :  { %v1522_v1 = vadd.f32 %v1521_v3, %v1487_v57  ;;  %6581 = vst [vmem:[#allocation26_spill] sm:$0xff] %v5687_v53  ;;  %v128_v57 = vld [vmem:[%s6508_s0 + $0x230] sm:$0xff]  ;;  %4677 = vmatpush3.bf16.msra.mxu1 %v5687_v53 }
 0x735   :  { %v5693_v3 = vpack.c.bf16 %v128_v57, %v127_v52  ;;  %4678 = vmatprep.subr.bf16.mxu1 %v6520_v0 }
 0x736   :  { %5014 = vtanh.f32 %v1522_v1  ;;  %v100_v1 = vld [vmem:[%s6508_s0 + $0x180] sm:$0xff] }
 0x737   :  { %6582 = vst [vmem:[#allocation27_spill] sm:$0xff] %v5693_v3 }
 0x738   :  { %4679 = vmatpush3.bf16.msra.mxu1 %v5693_v3 }
 0x739   :  { %v5013_v61 = vpop.eup %5012  ;;  %4692 = vmatprep.subr.bf16.mxu1 %v6520_v0 }
 0x73a   :  { %v1524_v4 = vsub.f32 1.0, %v5013_v61  ;;  %v1526_v20 = vmul.f32 %v5013_v61, %v5373_v43  ;;  %v101_v61 = vld [vmem:[%s6508_s0 + $0x188] sm:$0xff] }
 0x740   :  { %v5015_v6 = vpop.eup %5014 }
 0x741   :  { %v1525_v23 = vmul.f32 %v5015_v6, %v1524_v4  ;;  %v5704_v4 = vpack.c.bf16 %v101_v61, %v100_v1  ;;  %v103_v1 = vld [vmem:[%s6508_s0 + $0x198] sm:$0xff] }
 0x743   :  { %v1527_v29 = vadd.f32 %v1526_v20, %v1525_v23 }
 0x745   :  { %v1528_v27 = vpack.c.bf16 %v1527_v29, %v1527_v29 }
 0x747   :  { %4673 = vmatmul.mubr.msk.bf16.vlgmr.msra.gmra.mrb[44].mxu0 %vm302_vm1, %v1528_v27 }
 0x748   :  { %4688 = vmatprep.mubr.msk.bf16.mxu0 %vm5136_vm0, %v6520_v0  ;;  %4685 = vmatpush3.bf16.msra.mxu0 %v5704_v4 }
 0x749   :  { %4686 = vmatprep.subr.bf16.mxu0 %v6520_v0 }
 0x81a   :  { %v1570_v8 = vpop.f32.mrb[44].mxu0 }
 0x81b   :  { %v1571_v2 = vadd.f32 %v5673_v22, %v1570_v8  ;;  %v4674_v9 = vpop.f32.mrb[45].mxu0 }
 0x81c   :  { %v1573_v18 = vpop.f32.mrb[46].mxu0 }
 0x81d   :  { %v4675_v19 = vpop.f32.mrb[47].mxu0  ;;  %v1576_v21 = vsel %vm346_vm2, %v1571_v2, 0.0  ;;  %v1580_v28 = vmul.f32 %v1571_v2, %v1571_v2 }
 0x81e   :  { %1577 = vadd.xlane.f32.xlu0 %v1576_v21  ;;  %v5711_v21 = vld [vmem:[%s6508_s0 + $0x208] ss:$0 sm:$0xff] }
 0x81f   :  { %v1581_v30 = vsel %vm346_vm2, %v1580_v28, 0.0 }
 0x820   :  { %1582 = vadd.xlane.f32.xlu1 %v1581_v30  ;;  %v5716_v30 = vld [vmem:[%s6508_s0 + $0x210] ss:$0 sm:$0xff] }
 0x8ab   :  { %v1578_v6 = vpop.xlane.xlu0 %1577 }
 0x8ac   :  { %v1579_v23 = vmul.f32 0.03125, %v1578_v6  ;;  %v5735_v6 = vld [vmem:[%s6508_s0 + $0x238] ss:$0 sm:$0xff] }
 0x8ad   :  { %v1583_v20 = vpop.xlane.xlu1 %1582 }
 0x8ae   :  { %v1585_v29 = vmul.f32 %v1579_v23, %v1579_v23  ;;  %v1584_v27 = vmul.f32 0.03125, %v1583_v20  ;;  %v1587_v18 = vsub.f32 %v1571_v2, %v1579_v23  ;;  %v102_v2 = vld [vmem:[%s6508_s0 + $0x190] sm:$0xff] }
 0x8af   :  { %v5729_v61 = vpack.c.bf16 %v103_v1, %v102_v2 }
 0x8b0   :  { %v1586_v8 = vsub.f32 %v1584_v27, %v1585_v29 }
 0x8b1   :  { %4687 = vmatpush3.bf16.msra.mxu0 %v5729_v61 }
 0x8b2   :  { %v1588_v9 = vadd.f32 1e-05, %v1586_v8 }
 0x8b4   :  { %5016 = vrsqrt.f32 %v1588_v9 }
 0x8be   :  { %v5017_v19 = vpop.eup %5016 }
 0x8bf   :  { %v1590_v28 = vmul.f32 %v5017_v19, %v1587_v18  ;;  %v5747_v18 = vld [vmem:[%s6508_s0 + $0x1a0] ss:$0 sm:$0xff] }
 0x8c1   :  { %v1595_v12 = vmul.f32 %v5711_v21, %v1590_v28 }
 0x8c3   :  { %v1600_v51 = vadd.f32 %v5716_v30, %v1595_v12 }
 0x8c5   :  { %v1601_v52 = vmax.f32 %v1600_v51, 0.0 }
 0x8c7   :  { %v1602_v57 = vpack.c.bf16 %v1601_v52, %v1601_v52 }
 0x8c9   :  { %4681 = vmatmul.mubr.msk.bf16.vlgmr.msra.gmra.mrb[44].mxu1 %vm302_vm1, %v1602_v57 }
 0x8ca   :  { %4696 = vmatprep.mubr.msk.bf16.mxu1 %vm5136_vm0, %v6520_v0 }
 0x99c   :  { %v1644_v23 = vpop.f32.mrb[44].mxu1 }
 0x99d   :  { %v5738_v20 = vadd.f32 %v5735_v6, %v1644_v23  ;;  %v4682_v29 = vpop.f32.mrb[45].mxu1  ;;  %v109_v23 = vld [vmem:[%s6508_s0 + $0x1b8] sm:$0xff] }
 0x99e   :  { %v1647_v27 = vpop.f32.mrb[46].mxu1  ;;  %v110_v29 = vld [vmem:[%s6508_s0 + $0x1c0] sm:$0xff] }
 0x99f   :  { %6583 = vst [vmem:[#allocation28_spill] sm:$0xff] %v5738_v20  ;;  %v1650_v8 = vpack.c.bf16 %v5738_v20, %v5738_v20  ;;  %v4683_v9 = vpop.f32.mrb[47].mxu1  ;;  %v111_v27 = vld [vmem:[%s6508_s0 + $0x1c8] sm:$0xff] }
 0x9a0   :  { %v112_v9 = vld [vmem:[%s6508_s0 + $0x1d0] sm:$0xff] }
 0x9a1   :  { %4689 = vmatmul.mubr.msk.bf16.vlgmr.msra.gmra.mrb[48].mxu0 %vm302_vm1, %v1650_v8  ;;  %v5761_v8 = vpack.c.bf16 %v110_v29, %v109_v23 }
 0x9a2   :  { %1808 = vmatprep.mubr.bf16.mxu0 %v6516_v11 }
 0x9a3   :  { %4693 = vmatpush3.bf16.msra.mxu1 %v5761_v8 }
 0x9a4   :  { %4694 = vmatprep.subr.bf16.mxu1 %v6520_v0 }
 0xa74   :  { %v1692_v19 = vpop.f32.mrb[48].mxu0 }
 0xa75   :  { %v1693_v28 = vadd.f32 %v5747_v18, %v1692_v19  ;;  %v4690_v12 = vpop.f32.mrb[49].mxu0  ;;  %v5767_v19 = vpack.c.bf16 %v112_v9, %v111_v27 }
 0xa76   :  { %v1695_v51 = vpop.f32.mrb[50].mxu0  ;;  %v284_v12 = vld [vmem:[#allocation3 + $0x3c8] sm:$0xff] }
 0xa77   :  { %v4691_v52 = vpop.f32.mrb[51].mxu0  ;;  %v1698_v57 = vsel %vm346_vm2, %v1693_v28, 0.0  ;;  %v1702_v2 = vmul.f32 %v1693_v28, %v1693_v28  ;;  %4695 = vmatpush3.bf16.msra.mxu1 %v5767_v19  ;;  %v286_v51 = vld [vmem:[#allocation3 + $0x3f8] sm:$0xff] }
 0xa78   :  { %1699 = vadd.xlane.f32.xlu0 %v1698_v57  ;;  %4700 = vmatprep.subr.bf16.mxu1 %v6520_v0  ;;  %v283_v52 = vld [vmem:[#allocation3 + $0x3c0] sm:$0xff]  ;;  %v5772_v57 = vpack.c.bf16 %v286_v51, %v284_v12 }
 0xa79   :  { %v1703_v1 = vsel %vm346_vm2, %v1702_v2, 0.0  ;;  %v285_v2 = vld [vmem:[#allocation3 + $0x3f0] sm:$0xff]  ;;  %v5781_v12 = vld [vmem:[%s6508_s0 + $0x1a8] ss:$0 sm:$0xff] }
 0xa7a   :  { %1704 = vadd.xlane.f32.xlu1 %v1703_v1  ;;  %v5774_v1 = vpack.c.bf16 %v285_v2, %v283_v52  ;;  %1776 = vmatprep.subr.bf16.mxu0 %v5772_v57  ;;  %v5786_v52 = vld [vmem:[%s6508_s0 + $0x1b0] ss:$0 sm:$0xff] }
 0xa7c   :  { %1777 = vmatpush1.bf16.msra.mxu0 %v5774_v1 }
 0xb05   :  { %v1700_v23 = vpop.xlane.xlu0 %1699 }
 0xb06   :  { %v1701_v29 = vmul.f32 0.03125, %v1700_v23 }
 0xb07   :  { %v1705_v27 = vpop.xlane.xlu1 %1704 }
 0xb08   :  { %v1707_v9 = vmul.f32 %v1701_v29, %v1701_v29  ;;  %v1706_v11 = vmul.f32 0.03125, %v1705_v27  ;;  %v1709_v0 = vsub.f32 %v1693_v28, %v1701_v29  ;;  %v146_v29 = vld [vmem:[%s6508_s0 + $0x298] sm:$0xff] }
 0xb0a   :  { %v1708_v20 = vsub.f32 %v1706_v11, %v1707_v9  ;;  %v143_v11 = vld [vmem:[%s6508_s0 + $0x280] sm:$0xff]  ;;  %v6584_v9 = vmov 0.0  }
 0xb0c   :  { %v1710_v46 = vadd.f32 1e-05, %v1708_v20 }
 0xb0e   :  { %5018 = vrsqrt.f32 %v1710_v46  ;;  %v144_v46 = vld [vmem:[%s6508_s0 + $0x288] sm:$0xff] }
 0xb0f   :  { %v5796_v28 = vpack.c.bf16 %v144_v46, %v143_v11  ;;  %v287_v11 = vld [vmem:[#allocation3 + $0x420] sm:$0xff]  ;;  %v289_v46 = vld [vmem:[#allocation3 + $0x450] sm:$0xff] }
 0xb18   :  { %v5019_v7 = vpop.eup %5018 }
 0xb19   :  { %v1712_v51 = vmul.f32 %v5019_v7, %v1709_v0  ;;  %v145_v7 = vld [vmem:[%s6508_s0 + $0x290] sm:$0xff] }
 0xb1a   :  { %v5806_v27 = vpack.c.bf16 %v146_v29, %v145_v7 }
 0xb1b   :  { %v1717_v2 = vmul.f32 %v5781_v12, %v1712_v51  ;;  %v288_v51 = vld [vmem:[#allocation3 + $0x428] sm:$0xff] }
 0xb1d   :  { %v1722_v23 = vadd.f32 %v5786_v52, %v1717_v2  ;;  %v290_v2 = vld [vmem:[#allocation3 + $0x458] sm:$0xff] }
 0xb1f   :  { %v1723_v20 = vmax.f32 %v1722_v23, 0.0  ;;  %v5817_v23 = vpack.c.bf16 %v290_v2, %v288_v51 }
 0xb21   :  { %v1724_v0 = vpack.c.bf16 %v1723_v20, %v1723_v20  ;;  %v5819_v20 = vpack.c.bf16 %v289_v46, %v287_v11  ;;  %1778 = vmatprep.subr.bf16.mxu0 %v5817_v23 }
 0xb23   :  { %4697 = vmatmul.mubr.msk.bf16.vlgmr.msra.gmra.mrb[48].mxu1 %vm302_vm1, %v1724_v0  ;;  %1779 = vmatpush1.bf16.msra.mxu0 %v5819_v20 }
 0xb24   :  { %4701 = vmatpush3.bf16.msra.mxu1 %v5796_v28  ;;  %4704 = vmatprep.mubr.msk.bf16.mxu1 %vm5136_vm0, %v6584_v9 }
 0xb25   :  { %4702 = vmatprep.subr.bf16.mxu1 %v6584_v9  ;;  %4708 = vmatprep.subr.bf16.mxu0 %v6584_v9 }
 0xb28   :  { %4703 = vmatpush3.bf16.msra.mxu1 %v5806_v27 }
 0xb29   :  { %4716 = vmatprep.subr.bf16.mxu1 %v6584_v9 }
 0xb2b   :  { %4705 = vmatmul.mubr.msk.bf16.vlgmr.msra.gmra.mrb[52].mxu1 %vm302_vm1, %v5381_v44  ;;  %v5827_v44 = vld [vmem:[%s6508_s0 + $0x1d8] ss:$0 sm:$0xff] }
 0xb2c   :  { %4720 = vmatprep.mubr.msk.bf16.mxu1 %vm5136_vm0, %v6584_v9 }
 0xbf6   :  { %v1766_v0 = vpop.f32.mrb[48].mxu1 }
 0xbf7   :  { %v1767_v7 = vadd.f32 %v5827_v44, %v1766_v0  ;;  %v4698_v29 = vpop.f32.mrb[49].mxu1  ;;  %v159_v0 = vld [vmem:[%s6508_s0 + $0x2e0] sm:$0xff] }
 0xbf8   :  { %v1769_v51 = vpop.f32.mrb[50].mxu1  ;;  %v5839_v29 = vpack.c.bf16 %v159_v0, %v158_v62  ;;  %v160_v62 = vld [vmem:[%s6508_s0 + $0x2e8] sm:$0xff] }
 0xbf9   :  { %v1772_v2 = vpack.c.bf16 %v1767_v7, %v1767_v7  ;;  %v4699_v16 = vpop.f32.mrb[51].mxu1  ;;  %v151_v7 = vld [vmem:[%s6508_s0 + $0x2b0] sm:$0xff] }
 0xbfa   :  { %v150_v16 = vld [vmem:[%s6508_s0 + $0x2a8] sm:$0xff]  ;;  %4717 = vmatpush3.bf16.msra.mxu1 %v5839_v29 }
 0xbfb   :  { %4326 = vmatmul.mubr.msk.bf16.vlgmr.msra.gmra.mrb[52].mxu0 %vm302_vm1, %v1772_v2  ;;  %4718 = vmatprep.subr.bf16.mxu1 %v6584_v9  ;;  %v152_v2 = vld [vmem:[%s6508_s0 + $0x2b8] sm:$0xff] }
 0xbfc   :  { %4712 = vmatprep.mubr.msk.bf16.mxu0 %vm5136_vm0, %v6584_v9 }
 0xbfe   :  { %v1851_v11 = vpop.f32.mrb[52].mxu1 }
 0xbff   :  { %v4706_v46 = vpop.f32.mrb[53].mxu1 }
 0xc00   :  { %v1854_v15 = vpop.f32.mrb[54].mxu1  ;;  %v153_v46 = vld [vmem:[%s6508_s0 + $0x2c0] sm:$0xff] }
 0xc01   :  { %v4707_v58 = vpop.f32.mrb[55].mxu1  ;;  %v5847_v15 = vpack.c.bf16 %v151_v7, %v150_v16  ;;  %v5867_v0 = vpack.c.bf16 %v153_v46, %v152_v2  ;;  %v5876_v16 = vld [vmem:[%s6508_s0 + $0x2d0] ss:$0 sm:$0xff]  ;;  %v5881_v7 = vld [vmem:[%s6508_s0 + $0x2a0] ss:$0 sm:$0xff] }
 0xc02   :  { %v161_v58 = vld [vmem:[%s6508_s0 + $0x2f0] sm:$0xff]  ;;  %6585 = vst [vmem:[#allocation29_spill] sm:$0xff] %v5881_v7 }
 0xc03   :  { %4709 = vmatpush3.bf16.msra.mxu0 %v5847_v15  ;;  %v5859_v51 = vpack.c.bf16 %v161_v58, %v160_v62 }
 0xc04   :  { %4710 = vmatprep.subr.bf16.mxu0 %v6584_v9 }
 0xc05   :  { %4719 = vmatpush3.bf16.msra.mxu1 %v5859_v51 }
 0xc06   :  { %4732 = vmatprep.subr.bf16.mxu1 %v6584_v9 }
 0xc07   :  { %4711 = vmatpush3.bf16.msra.mxu0 %v5867_v0 }
 0xc08   :  { %4724 = vmatprep.subr.bf16.mxu0 %v6584_v9 }
 0xcce   :  { %v1810_v62 = vpop.f32.mrb[52].mxu0 }
 0xccf   :  { %v1857_v58 = vadd.f32 %v1851_v11, %v1810_v62  ;;  %v1812_v2 = vpop.f32.mrb[53].mxu0 }
 0xcd0   :  { %v1922_v46 = vadd.f32 %v5876_v16, %v1812_v2  ;;  %v1814_v37 = vpop.f32.mrb[54].mxu0 }
 0xcd1   :  { %v1862_v47 = vadd.f32 %v5881_v7, %v1857_v58  ;;  %v1815_v39 = vpop.f32.mrb[55].mxu0  ;;  %v5894_v37 = vld [vmem:[%s6508_s0 + $0x2c8] ss:$0 sm:$0xff] }
 0xcd2   :  { %v1923_v13 = vmax.f32 %v1922_v46, 0.0 }
 0xcd3   :  { %v1863_v35 = vmax.f32 %v1862_v47, 0.0 }
 0xcd4   :  { %v1924_v24 = vpack.c.bf16 %v1923_v13, %v1923_v13 }
 0xcd5   :  { %v1864_v32 = vpack.c.bf16 %v1863_v35, %v1863_v35 }
 0xcd6   :  { %4721 = vmatmul.mubr.msk.bf16.vlgmr.msra.gmra.mrb[56].mxu1 %vm302_vm1, %v1924_v24 }
 0xcd7   :  { %4713 = vmatmul.mubr.msk.bf16.vlgmr.msra.gmra.mrb[56].mxu0 %vm302_vm1, %v1864_v32  ;;  %4736 = vmatprep.mubr.msk.bf16.mxu1 %vm5136_vm0, %v6584_v9 }
 0xcd8   :  { %4728 = vmatprep.mubr.msk.bf16.mxu0 %vm5136_vm0, %v6584_v9 }
 0xda9   :  { %v1966_v39 = vpop.f32.mrb[56].mxu1 }
 0xdaa   :  { %v1906_v11 = vpop.f32.mrb[56].mxu0  ;;  %v4722_v47 = vpop.f32.mrb[57].mxu1 }
 0xdab   :  { %v1907_v13 = vadd.f32 %v5894_v37, %v1906_v11  ;;  %v4714_v35 = vpop.f32.mrb[57].mxu0  ;;  %v1969_v24 = vpop.f32.mrb[58].mxu1  ;;  %v166_v47 = vld [vmem:[%s6508_s0 + $0x308] sm:$0xff] }
 0xdac   :  { %v1909_v62 = vpop.f32.mrb[58].mxu0  ;;  %v4723_v32 = vpop.f32.mrb[59].mxu1  ;;  %v5903_v11 = vpack.c.bf16 %v166_v47, %v165_v14  ;;  %v5920_v14 = vld [vmem:[%s6508_s0 + $0x2f8] ss:$0 sm:$0xff]  ;;  %v6589_v47 = vmov 0  }
 0xdad   :  { %v4331_v58 = vmul.f32 -1.442695, %v1907_v13  ;;  %v4715_v2 = vpop.f32.mrb[59].mxu0  ;;  %v168_v13 = vld [vmem:[%s6508_s0 + $0x318] sm:$0xff]  ;;  %v1979_v32 = vmul.f32 0.0, %v5373_v43 }
 0xdae   :  { %6586 = vst [vmem:[#allocation30_spill] sm:$0xff] %v5903_v11  ;;  %4725 = vmatpush3.bf16.msra.mxu0 %v5903_v11 }
 0xdaf   :  { %5020 = vpow2.f32 %v4331_v58  ;;  %4726 = vmatprep.subr.bf16.mxu0 %v6584_v9 }
 0xdb9   :  { %v5021_v46 = vpop.eup %5020 }
 0xdba   :  { %v1915_v31 = vadd.f32 1.0, %v5021_v46 }
 0xdbc   :  { %5022 = vrcp.f32 %v1915_v31  ;;  %v167_v31 = vld [vmem:[%s6508_s0 + $0x310] sm:$0xff] }
 0xdbd   :  { %v5913_v35 = vpack.c.bf16 %v168_v13, %v167_v31  ;;  %v179_v31 = vld [vmem:[%s6508_s0 + $0x350] sm:$0xff] }
 0xdbf   :  { %6587 = vst [vmem:[#allocation31_spill] sm:$0xff] %v5913_v35  ;;  %4727 = vmatpush3.bf16.msra.mxu0 %v5913_v35 }
 0xdc0   :  { %2098 = vmatprep.subr.bf16.mxu0 %v5569_v25 }
 0xdc6   :  { %v5023_v7 = vpop.eup %5022 }
 0xdc7   :  { %1974 = vperm.xlu0 %4976, %v5023_v7   ;;  %v1967_v7 = vadd.f32 %v5920_v14, %v1966_v39  ;;  %v178_v39 = vld [vmem:[%s6508_s0 + $0x348] sm:$0xff] }
 0xdc8   :  { %v5959_v13 = vpack.c.bf16 %v179_v31, %v178_v39 }
 0xdca   :  { %6590 = vst [vmem:[#allocation33_spill] sm:$0xff] %v5959_v13  ;;  %4733 = vmatpush3.bf16.msra.mxu1 %v5959_v13 }
 0xdcb   :  { %4734 = vmatprep.subr.bf16.mxu1 %v6584_v9 }
 0xe46   :  { %v1975_v24 = vpop.permute.xlu0 %1974 }
 0xe47   :  { %v1977_v62 = vmul.f32 %v1975_v24, %v1967_v7  ;;  %v180_v7 = vld [vmem:[%s6508_s0 + $0x358] sm:$0xff]  ;;  %v181_v24 = vld [vmem:[%s6508_s0 + $0x360] sm:$0xff] }
 0xe49   :  { %v1978_v58 = vadd.f32 %v1977_v62, %v5373_v43  ;;  %v5969_v62 = vpack.c.bf16 %v181_v24, %v180_v7 }
 0xe4b   :  { %v5925_v2 = vadd.f32 %v1979_v32, %v1978_v58  ;;  %6591 = vst [vmem:[#allocation34_spill] sm:$0xff] %v5969_v62  ;;  %4735 = vmatpush3.bf16.msra.mxu1 %v5969_v62  ;;  %v4336_v32 = vld [vmem:[%s6508_s0 + $0x340] ss:$0 sm:$0xff] }
 0xe4c   :  { %2139 = vmatprep.subr.bf16.mxu1 %v5494_v48 }
 0xe4d   :  { %6588 = vst [vmem:[#allocation32_spill] sm:$0xff] %v5925_v2  ;;  %v5929_v46 = vpack.c.bf16 %v5925_v2, %v5925_v2 }
 0xe4f   :  { %4729 = vmatmul.mubr.msk.bf16.vlgmr.msra.gmra.mrb[60].mxu0 %vm302_vm1, %v5929_v46 }
 0xe50   :  { %2099 = vmatpush1.bf16.msra.mxu0 %v5572_v33  ;;  %2130 = vmatprep.mubr.bf16.mxu0 %v6589_v47 }
 0xe51   :  { %2100 = vmatprep.subr.bf16.mxu0 %v5575_v34 }
 0xe54   :  { %2101 = vmatpush1.bf16.msra.mxu0 %v5580_v42 }
 0xe55   :  { %2180 = vmatprep.subr.bf16.mxu0 %v5584_v45 }
 0xe57   :  { %4341 = vmatmul.mubr.msk.bf16.vlgmr.msra.gmra.mrb[64].mxu0 %vm302_vm1, %v5929_v46 }
 0xe58   :  { %2181 = vmatpush1.bf16.msra.mxu0 %v5587_v56  ;;  %2212 = vmatprep.mubr.bf16.mxu0 %v6589_v47 }
 0xe59   :  { %2182 = vmatprep.subr.bf16.mxu0 %v5590_v36 }
 0xe5c   :  { %2183 = vmatpush1.bf16.msra.mxu0 %v5595_v63 }
 0xe5d   :  { %4748 = vmatprep.subr.bf16.mxu0 %v6584_v9 }
 0xe5f   :  { %4343 = vmatmul.mubr.msk.bf16.vlgmr.msra.gmra.mrb[68].mxu0 %vm302_vm1, %v5929_v46 }
 0xe60   :  { %4749 = vmatpush3.bf16.msra.mxu0 %v5687_v53  ;;  %4752 = vmatprep.mubr.msk.bf16.mxu0 %vm5136_vm0, %v6584_v9 }
 0xe61   :  { %4750 = vmatprep.subr.bf16.mxu0 %v6584_v9 }
 0xe64   :  { %4751 = vmatpush3.bf16.msra.mxu0 %v5693_v3 }
 0xe65   :  { %4764 = vmatprep.subr.bf16.mxu0 %v6584_v9 }
 0xf22   :  { %v2019_v58 = vpop.f32.mrb[60].mxu0 }
 0xf23   :  { %v2020_v39 = vadd.f32 %v2019_v58, %v5522_v17  ;;  %v4730_v31 = vpop.f32.mrb[61].mxu0 }
 0xf24   :  { %v2022_v43 = vpop.f32.mrb[62].mxu0 }
 0xf25   :  { %v2029_v35 = vadd.f32 %v4336_v32, %v2020_v39  ;;  %v4731_v11 = vpop.f32.mrb[63].mxu0 }
 0xf27   :  { %v2030_v13 = vmax.f32 %v2029_v35, 0.0 }
 0xf29   :  { %v2031_v3 = vpack.c.bf16 %v2030_v13, %v2030_v13 }
 0xf2a   :  { %v2132_v53 = vpop.f32.mrb[64].mxu0 }
 0xf2b   :  { %4737 = vmatmul.mubr.msk.bf16.vlgmr.msra.gmra.mrb[60].mxu1 %vm302_vm1, %v2031_v3  ;;  %v2134_v7 = vpop.f32.mrb[65].mxu0 }
 0xf2c   :  { %v2136_v24 = vpop.f32.mrb[66].mxu0  ;;  %2140 = vmatpush1.bf16.msra.mxu1 %v5497_v54  ;;  %2171 = vmatprep.mubr.bf16.mxu1 %v6589_v47  ;;  %v2222_v17 = vadd.f32 %v2134_v7, %v5650_v10 }
 0xf2d   :  { %v2137_v62 = vpop.f32.mrb[67].mxu0  ;;  %2141 = vmatprep.subr.bf16.mxu1 %v5500_v55  ;;  %v2221_v24 = vadd.f32 %v2132_v53, %v5637_v41 }
 0xf30   :  { %2142 = vmatpush1.bf16.msra.mxu1 %v5505_v59 }
 0xf31   :  { %4740 = vmatprep.subr.bf16.mxu1 %v6584_v9 }
 0xf32   :  { %v2214_v43 = vpop.f32.mrb[68].mxu0 }
 0xf33   :  { %v2225_v11 = vadd.f32 %v2214_v43, %v5646_v50  ;;  %4342 = vmatmul.mubr.msk.bf16.vlgmr.msra.gmra.mrb[64].mxu1 %vm302_vm1, %v5929_v46  ;;  %v2216_v3 = vpop.f32.mrb[69].mxu0 }
 0xf34   :  { %v2218_v35 = vpop.f32.mrb[70].mxu0  ;;  %4741 = vmatpush3.bf16.msra.mxu1 %v5614_v5  ;;  %4744 = vmatprep.mubr.msk.bf16.mxu1 %vm5136_vm0, %v6584_v9 }
 0xf35   :  { %v2234_v13 = vadd.f32 %v2225_v11, %v2222_v17  ;;  %v2219_v62 = vpop.f32.mrb[71].mxu0  ;;  %4742 = vmatprep.subr.bf16.mxu1 %v6584_v9 }
 0xf37   :  { %v4345_v50 = vmul.f32 -1.442695, %v2234_v13 }
 0xf38   :  { %4743 = vmatpush3.bf16.msra.mxu1 %v5620_v60 }
 0xf39   :  { %4756 = vmatprep.subr.bf16.mxu1 %v6584_v9 }
 0xffe   :  { %v5993_v10 = vpop.f32.mrb[60].mxu1 }
 0xfff   :  { %v4738_v32 = vpop.f32.mrb[61].mxu1 }
0x1000   :  { %v2076_v58 = vpop.f32.mrb[62].mxu1 }
0x1001   :  { %v4739_v39 = vpop.f32.mrb[63].mxu1  ;;  %v2226_v58 = vadd.f32 %v2216_v3, %v5658_v38 }
0x1006   :  { %v2173_v31 = vpop.f32.mrb[64].mxu1 }
0x1007   :  { %v2175_v7 = vpop.f32.mrb[65].mxu1  ;;  %v2223_v41 = vadd.f32 %v2173_v31, %v5661_v49 }
0x1008   :  { %v2224_v43 = vadd.f32 %v2175_v7, %v5633_v40  ;;  %v2177_v35 = vpop.f32.mrb[66].mxu1 }
0x1009   :  { %v2178_v17 = vpop.f32.mrb[67].mxu1 }
0x100a   :  { %v2227_v11 = vadd.f32 %v2224_v43, %v2221_v24 }
0x100c   :  { %v4344_v62 = vmul.f32 -1.442695, %v2227_v11 }
0x100e   :  { %5024 = vpow2.f32 %v4344_v62 }
0x100f   :  { %5026 = vpow2.f32 %v4345_v50 }
0x1018   :  { %v5025_v60 = vpop.eup %5024 }
0x1019   :  { %v2231_v63 = vadd.f32 1.0, %v5025_v60  ;;  %v5027_v5 = vpop.eup %5026 }
0x101a   :  { %v2238_v32 = vadd.f32 1.0, %v5027_v5 }
0x101b   :  { %5028 = vrcp.f32 %v2231_v63 }
0x101c   :  { %5030 = vrcp.f32 %v2238_v32 }
0x1025   :  { %v5029_v39 = vpop.eup %5028 }
0x1026   :  { %v2241_v53 = vmul.f32 %v5029_v39, %v2226_v58  ;;  %v5031_v35 = vpop.eup %5030 }
0x1027   :  { %v2244_v24 = vsub.f32 1.0, %v5031_v35  ;;  %v2246_v50 = vmul.f32 %v5031_v35, %v5925_v2 }
0x1028   :  { %v2242_v7 = vadd.f32 %v2241_v53, %v2223_v41 }
0x102a   :  { %5032 = vtanh.f32 %v2242_v7 }
0x1034   :  { %v5033_v43 = vpop.eup %5032 }
0x1035   :  { %v2245_v17 = vmul.f32 %v5033_v43, %v2244_v24 }
0x1037   :  { %v2247_v13 = vadd.f32 %v2246_v50, %v2245_v17 }
0x1039   :  { %v2248_v60 = vpack.c.bf16 %v2247_v13, %v2247_v13 }
0x103b   :  { %4745 = vmatmul.mubr.msk.bf16.vlgmr.msra.gmra.mrb[68].mxu1 %vm302_vm1, %v2248_v60 }
0x103c   :  { %4757 = vmatpush3.bf16.msra.mxu1 %v5704_v4  ;;  %4760 = vmatprep.mubr.msk.bf16.mxu1 %vm5136_vm0, %v6584_v9 }
0x103d   :  { %4758 = vmatprep.subr.bf16.mxu1 %v6584_v9 }
0x1040   :  { %4759 = vmatpush3.bf16.msra.mxu1 %v5729_v61 }
0x1041   :  { %2464 = vmatprep.subr.bf16.mxu1 %v5772_v57 }
0x110e   :  { %v2286_v63 = vpop.f32.mrb[68].mxu1 }
0x110f   :  { %v2287_v5 = vadd.f32 %v5673_v22, %v2286_v63  ;;  %v4746_v49 = vpop.f32.mrb[69].mxu1 }
0x1110   :  { %v2289_v3 = vpop.f32.mrb[70].mxu1 }
0x1111   :  { %v4747_v31 = vpop.f32.mrb[71].mxu1  ;;  %v2292_v11 = vsel %vm346_vm2, %v2287_v5, 0.0  ;;  %v2296_v62 = vmul.f32 %v2287_v5, %v2287_v5 }
0x1112   :  { %2293 = vadd.xlane.f32.xlu1 %v2292_v11 }
0x1113   :  { %v2297_v32 = vsel %vm346_vm2, %v2296_v62, 0.0 }
0x1116   :  { %2298 = vadd.xlane.f32.xlu1 %v2297_v32 }
0x119f   :  { %v2294_v58 = vpop.xlane.xlu1 %2293 }
0x11a0   :  { %v2295_v39 = vmul.f32 0.03125, %v2294_v58 }
0x11a2   :  { %v2301_v53 = vmul.f32 %v2295_v39, %v2295_v39  ;;  %v2303_v43 = vsub.f32 %v2287_v5, %v2295_v39 }
0x11a3   :  { %v2299_v41 = vpop.xlane.xlu1 %2298 }
0x11a4   :  { %v2300_v7 = vmul.f32 0.03125, %v2299_v41 }
0x11a6   :  { %v2302_v35 = vsub.f32 %v2300_v7, %v2301_v53 }
0x11a8   :  { %v2304_v24 = vadd.f32 1e-05, %v2302_v35 }
0x11aa   :  { %5034 = vrsqrt.f32 %v2304_v24 }
0x11b4   :  { %v5035_v22 = vpop.eup %5034 }
0x11b5   :  { %v2306_v17 = vmul.f32 %v5035_v22, %v2303_v43 }
0x11b7   :  { %v2307_v50 = vmul.f32 %v5711_v21, %v2306_v17 }
0x11b9   :  { %v2308_v13 = vadd.f32 %v5716_v30, %v2307_v50 }
0x11bb   :  { %v2309_v60 = vmax.f32 %v2308_v13, 0.0 }
0x11bd   :  { %v2310_v63 = vpack.c.bf16 %v2309_v60, %v2309_v60 }
0x11bf   :  { %4753 = vmatmul.mubr.msk.bf16.vlgmr.msra.gmra.mrb[72].mxu0 %vm302_vm1, %v2310_v63 }
0x11c0   :  { %4765 = vmatpush3.bf16.msra.mxu0 %v5761_v8  ;;  %4768 = vmatprep.mubr.msk.bf16.mxu0 %vm5136_vm0, %v6584_v9 }
0x11c1   :  { %4766 = vmatprep.subr.bf16.mxu0 %v6584_v9 }
0x11c4   :  { %4767 = vmatpush3.bf16.msra.mxu0 %v5767_v19 }
0x11c5   :  { %4772 = vmatprep.subr.bf16.mxu0 %v6584_v9 }
0x1292   :  { %v2348_v5 = vpop.f32.mrb[72].mxu0 }
0x1293   :  { %v6020_v21 = vadd.f32 %v5735_v6, %v2348_v5  ;;  %v4754_v30 = vpop.f32.mrb[73].mxu0  ;;  %v4337_v6 = vld [vmem:[%s6508_s0 + $0x368] ss:$0 sm:$0xff] }
0x1294   :  { %v2351_v49 = vpop.f32.mrb[74].mxu0  ;;  %v2074_v11 = vadd.f32 %v4337_v6, %v5993_v10 }
0x1295   :  { %v2354_v3 = vpack.c.bf16 %v6020_v21, %v6020_v21  ;;  %v4755_v31 = vpop.f32.mrb[75].mxu0 }
0x1296   :  { %v4339_v62 = vmul.f32 -1.442695, %v2074_v11 }
0x1297   :  { %4761 = vmatmul.mubr.msk.bf16.vlgmr.msra.gmra.mrb[72].mxu1 %vm302_vm1, %v2354_v3 }
0x1298   :  { %2465 = vmatpush1.bf16.msra.mxu1 %v5774_v1  ;;  %2496 = vmatprep.mubr.bf16.mxu1 %v6589_v47  ;;  %5036 = vpow2.f32 %v4339_v62 }
0x1299   :  { %2466 = vmatprep.subr.bf16.mxu1 %v5817_v23 }
0x129c   :  { %2467 = vmatpush1.bf16.msra.mxu1 %v5819_v20 }
0x129d   :  { %4780 = vmatprep.subr.bf16.mxu1 %v6584_v9 }
0x12a2   :  { %v5037_v32 = vpop.eup %5036 }
0x12a3   :  { %v2082_v58 = vadd.f32 1.0, %v5037_v32 }
0x12a5   :  { %5038 = vrcp.f32 %v2082_v58 }
0x12af   :  { %v5039_v39 = vpop.eup %5038 }
0x12b0   :  { %v2086_v41 = vsel %vm2085_vm5, %v5039_v39, 0.0 }
0x12b1   :  { %v2087_v53 = vrot.slane %v2086_v41, 4 }
0x12b3   :  { %v2088_v7 = vadd.f32 %v2087_v53, %v2086_v41 }
0x12b5   :  { %v2089_v22 = vrot.slane %v2088_v7, 2 }
0x12b7   :  { %v2090_v60 = vadd.f32 %v2089_v22, %v2088_v7 }
0x12b9   :  { %v2091_v5 = vrot.slane %v2090_v60, 1 }
0x12bb   :  { %v2092_v30 = vadd.f32 %v2091_v5, %v2090_v60 }
0x12bd   :  { %v2094_v49 = vmul.f32 0.5, %v2092_v30 }
0x12bf   :  { %vm2095_vm6 = vcmp.le.f32.partialorder %v2094_v49, 0.9 }
0x12c0   :  { %v6039_v3 = vsel %vm2095_vm6, 1.0, %v6584_v9 }
0x136a   :  { %v2392_v35 = vpop.f32.mrb[72].mxu1 }
0x136b   :  { %v2393_v24 = vadd.f32 %v5747_v18, %v2392_v35  ;;  %v4762_v43 = vpop.f32.mrb[73].mxu1 }
0x136c   :  { %v2395_v17 = vpop.f32.mrb[74].mxu1 }
0x136d   :  { %v4763_v50 = vpop.f32.mrb[75].mxu1  ;;  %v2398_v10 = vsel %vm346_vm2, %v2393_v24, 0.0  ;;  %v2402_v13 = vmul.f32 %v2393_v24, %v2393_v24 }
0x136e   :  { %2399 = vadd.xlane.f32.xlu1 %v2398_v10 }
0x136f   :  { %v2403_v63 = vsel %vm346_vm2, %v2402_v13, 0.0 }
0x1372   :  { %2404 = vadd.xlane.f32.xlu1 %v2403_v63 }
0x1383   :  { %2653 = vperm.xlu1 %4977, %v6039_v3  }
0x13fb   :  { %v2400_v18 = vpop.xlane.xlu1 %2399 }
0x13fc   :  { %v2401_v31 = vmul.f32 0.03125, %v2400_v18 }
0x13fe   :  { %v2407_v11 = vmul.f32 %v2401_v31, %v2401_v31  ;;  %v2409_v39 = vsub.f32 %v2393_v24, %v2401_v31  ;;  %v6592_v31 = vld [vmem:[#allocation29_spill] sm:$0xff] }
0x13ff   :  { %v2405_v6 = vpop.xlane.xlu1 %2404 }
0x1400   :  { %v2406_v62 = vmul.f32 0.03125, %v2405_v6 }
0x1402   :  { %v2408_v32 = vsub.f32 %v2406_v62, %v2407_v11 }
0x1404   :  { %v2410_v58 = vadd.f32 1e-05, %v2408_v32 }
0x1406   :  { %5040 = vrsqrt.f32 %v2410_v58 }
0x1410   :  { %v5041_v41 = vpop.eup %5040 }
0x1411   :  { %v2412_v53 = vmul.f32 %v5041_v41, %v2409_v39  ;;  %v6593_v41 = vld [vmem:[#allocation15_spill] sm:$0xff] }
0x1413   :  { %v2413_v7 = vmul.f32 %v5781_v12, %v2412_v53  ;;  %v6595_v53 = vld [vmem:[#allocation11_spill] sm:$0xff] }
0x1415   :  { %v2414_v35 = vadd.f32 %v5786_v52, %v2413_v7  ;;  %v6597_v7 = vld [vmem:[#allocation12_spill] sm:$0xff] }
0x1417   :  { %v2415_v43 = vmax.f32 %v2414_v35, 0.0  ;;  %v6598_v35 = vld [vmem:[#allocation9_spill] sm:$0xff] }
0x1419   :  { %v2416_v22 = vpack.c.bf16 %v2415_v43, %v2415_v43  ;;  %v2676_v43 = vpack.c.bf16 %v6598_v35, %v6598_v35 }
0x141b   :  { %4769 = vmatmul.mubr.msk.bf16.vlgmr.msra.gmra.mrb[76].mxu0 %vm302_vm1, %v2416_v22  ;;  %v6599_v22 = vld [vmem:[#allocation13_spill] sm:$0xff] }
0x141c   :  { %4773 = vmatpush3.bf16.msra.mxu0 %v5796_v28  ;;  %4776 = vmatprep.mubr.msk.bf16.mxu0 %vm5136_vm0, %v6584_v9 }
0x141d   :  { %4774 = vmatprep.subr.bf16.mxu0 %v6584_v9 }
0x1420   :  { %4775 = vmatpush3.bf16.msra.mxu0 %v5806_v27 }
0x1421   :  { %4788 = vmatprep.subr.bf16.mxu0 %v6584_v9 }
0x1423   :  { %4777 = vmatmul.mubr.msk.bf16.vlgmr.msra.gmra.mrb[80].mxu0 %vm302_vm1, %v5929_v46 }
0x1424   :  { %4789 = vmatpush3.bf16.msra.mxu0 %v5839_v29  ;;  %4792 = vmatprep.mubr.msk.bf16.mxu0 %vm5136_vm0, %v6584_v9 }
0x1425   :  { %4790 = vmatprep.subr.bf16.mxu0 %v6584_v9 }
0x1428   :  { %4791 = vmatpush3.bf16.msra.mxu0 %v5859_v51 }
0x1429   :  { %4796 = vmatprep.subr.bf16.mxu0 %v6584_v9 }
0x14ee   :  { %v2454_v12 = vpop.f32.mrb[76].mxu0 }
0x14ef   :  { %v2455_v52 = vadd.f32 %v5827_v44, %v2454_v12  ;;  %v4770_v24 = vpop.f32.mrb[77].mxu0  ;;  %v6600_v12 = vld [vmem:[#allocation14_spill] sm:$0xff] }
0x14f0   :  { %v2457_v17 = vpop.f32.mrb[78].mxu0 }
0x14f1   :  { %v2460_v50 = vpack.c.bf16 %v2455_v52, %v2455_v52  ;;  %v4771_v10 = vpop.f32.mrb[79].mxu0 }
0x14f3   :  { %4350 = vmatmul.mubr.msk.bf16.vlgmr.msra.gmra.mrb[76].mxu1 %vm302_vm1, %v2460_v50 }
0x14f4   :  { %4781 = vmatpush3.bf16.msra.mxu1 %v5847_v15  ;;  %4784 = vmatprep.mubr.msk.bf16.mxu1 %vm5136_vm0, %v6584_v9 }
0x14f5   :  { %4782 = vmatprep.subr.bf16.mxu1 %v6584_v9 }
0x14f6   :  { %v2539_v46 = vpop.f32.mrb[80].mxu0 }
0x14f7   :  { %v4778_v13 = vpop.f32.mrb[81].mxu0 }
0x14f8   :  { %v2542_v60 = vpop.f32.mrb[82].mxu0  ;;  %4783 = vmatpush3.bf16.msra.mxu1 %v5867_v0 }
0x14f9   :  { %v4779_v63 = vpop.f32.mrb[83].mxu0  ;;  %2680 = vmatprep.subr.bf16.mxu1 %v5457_v26  ;;  %v6594_v26 = vld [vmem:[#allocation10_spill] sm:$0xff] }
0x15c6   :  { %v2498_v44 = vpop.f32.mrb[76].mxu1 }
0x15c7   :  { %v2545_v5 = vadd.f32 %v2539_v46, %v2498_v44  ;;  %v2500_v30 = vpop.f32.mrb[77].mxu1 }
0x15c8   :  { %v2598_v49 = vadd.f32 %v5876_v16, %v2500_v30  ;;  %v2502_v18 = vpop.f32.mrb[78].mxu1  ;;  %v6596_v16 = vld [vmem:[#allocation16_spill] sm:$0xff] }
0x15c9   :  { %v2546_v6 = vadd.f32 %v6592_v31, %v2545_v5  ;;  %v2503_v11 = vpop.f32.mrb[79].mxu1 }
0x15ca   :  { %v2599_v62 = vmax.f32 %v2598_v49, 0.0 }
0x15cb   :  { %v2547_v32 = vmax.f32 %v2546_v6, 0.0 }
0x15cc   :  { %v2600_v58 = vpack.c.bf16 %v2599_v62, %v2599_v62 }
0x15cd   :  { %v2548_v39 = vpack.c.bf16 %v2547_v32, %v2547_v32 }
0x15ce   :  { %4793 = vmatmul.mubr.msk.bf16.vlgmr.msra.gmra.mrb[84].mxu0 %vm302_vm1, %v2600_v58 }
0x15cf   :  { %4785 = vmatmul.mubr.msk.bf16.vlgmr.msra.gmra.mrb[80].mxu1 %vm302_vm1, %v2548_v39  ;;  %4797 = vmatpush3.bf16.msra.mxu0 %v6593_v41 }
0x15d0   :  { %2681 = vmatpush1.bf16.msra.mxu1 %v6594_v26  ;;  %4798 = vmatprep.subr.bf16.mxu0 %v6584_v9 }
0x15d1   :  { %2682 = vmatprep.subr.bf16.mxu1 %v6595_v53  ;;  %4800 = vmatprep.mubr.msk.bf16.mxu0 %vm5136_vm0, %v6584_v9 }
0x15d2   :  { %2712 = vmatprep.mubr.bf16.mxu1 %v6589_v47 }
0x15d3   :  { %4799 = vmatpush3.bf16.msra.mxu0 %v6596_v16  ;;  %v2657_v16 = vsub.f32 1.0, %v6039_v3  ;;  %v6602_v3 = vld [vmem:[#allocation17_spill] sm:$0xff] }
0x15d4   :  { %2683 = vmatpush1.bf16.msra.mxu1 %v6597_v7  ;;  %2805 = vmatprep.subr.bf16.mxu0 %v5569_v25  ;;  %v2654_v7 = vpop.permute.xlu1 %2653 }
0x15d5   :  { %4804 = vmatprep.subr.bf16.mxu1 %v6584_v9 }
0x15d6   :  { %4801 = vmatmul.mubr.msk.bf16.vlgmr.msra.gmra.mrb[88].mxu0 %vm302_vm1, %v2676_v43 }
0x15d7   :  { %4356 = vmatmul.mubr.msk.bf16.vlgmr.msra.gmra.mrb[84].mxu1 %vm302_vm1, %v2676_v43  ;;  %2806 = vmatpush1.bf16.msra.mxu0 %v5572_v33 }
0x15d8   :  { %4805 = vmatpush3.bf16.msra.mxu1 %v6599_v22  ;;  %4808 = vmatprep.mubr.msk.bf16.mxu1 %vm5136_vm0, %v6584_v9  ;;  %v6614_v22 = vld [vmem:[#allocation33_spill] sm:$0xff] }
0x15d9   :  { %4806 = vmatprep.subr.bf16.mxu1 %v6584_v9  ;;  %2807 = vmatprep.subr.bf16.mxu0 %v5575_v34 }
0x15da   :  { %2837 = vmatprep.mubr.bf16.mxu0 %v6589_v47 }
0x15db   :  { %2808 = vmatpush1.bf16.msra.mxu0 %v5580_v42 }
0x15dc   :  { %4807 = vmatpush3.bf16.msra.mxu1 %v6600_v12  ;;  %2887 = vmatprep.subr.bf16.mxu0 %v5584_v45 }
0x15dd   :  { %2846 = vmatprep.subr.bf16.mxu1 %v5494_v48 }
0x15df   :  { %4809 = vmatmul.mubr.msk.bf16.vlgmr.msra.gmra.mrb[88].mxu1 %vm302_vm1, %v2676_v43 }
0x15e0   :  { %2847 = vmatpush1.bf16.msra.mxu1 %v5497_v54  ;;  %2878 = vmatprep.mubr.bf16.mxu1 %v6589_v47 }
0x15e1   :  { %2848 = vmatprep.subr.bf16.mxu1 %v5500_v55 }
0x15e4   :  { %2849 = vmatpush1.bf16.msra.mxu1 %v5505_v59 }
0x15e5   :  { %4812 = vmatprep.subr.bf16.mxu1 %v6584_v9 }
0x16a1   :  { %v2638_v52 = vpop.f32.mrb[84].mxu0 }
0x16a2   :  { %v2586_v24 = vpop.f32.mrb[80].mxu1  ;;  %v4794_v17 = vpop.f32.mrb[85].mxu0  ;;  %v2639_v35 = vadd.f32 %v5920_v14, %v2638_v52  ;;  %v6601_v14 = vld [vmem:[#allocation18_spill] sm:$0xff]  ;;  %v6603_v52 = vld [vmem:[#allocation19_spill] sm:$0xff] }
0x16a3   :  { %v2587_v50 = vadd.f32 %v5894_v37, %v2586_v24  ;;  %v4786_v10 = vpop.f32.mrb[81].mxu1  ;;  %v2641_v46 = vpop.f32.mrb[86].mxu0 }
0x16a4   :  { %v2589_v13 = vpop.f32.mrb[82].mxu1  ;;  %v4795_v60 = vpop.f32.mrb[87].mxu0 }
0x16a5   :  { %v4353_v63 = vmul.f32 -1.442695, %v2587_v50  ;;  %v4787_v44 = vpop.f32.mrb[83].mxu1 }
0x16a6   :  { %v6605_v44 = vld [vmem:[#allocation27_spill] sm:$0xff] }
0x16a7   :  { %5042 = vpow2.f32 %v4353_v63  ;;  %v6604_v63 = vld [vmem:[#allocation26_spill] sm:$0xff] }
0x16a9   :  { %v6104_v5 = vpop.f32.mrb[88].mxu0 }
0x16aa   :  { %v2714_v30 = vpop.f32.mrb[84].mxu1  ;;  %v4802_v49 = vpop.f32.mrb[89].mxu0 }
0x16ab   :  { %v2716_v18 = vpop.f32.mrb[85].mxu1  ;;  %v2758_v31 = vpop.f32.mrb[90].mxu0  ;;  %v6606_v49 = vld [vmem:[#allocation22_spill] sm:$0xff] }
0x16ac   :  { %v2718_v6 = vpop.f32.mrb[86].mxu1  ;;  %v4803_v11 = vpop.f32.mrb[91].mxu0  ;;  %v6142_v31 = vadd.f32 %v2714_v30, %v6606_v49 }
0x16ad   :  { %v2719_v62 = vpop.f32.mrb[87].mxu1 }
0x16b1   :  { %v5043_v32 = vpop.eup %5042 }
0x16b2   :  { %v2595_v58 = vadd.f32 1.0, %v5043_v32  ;;  %v6106_v39 = vpop.f32.mrb[88].mxu1 }
0x16b3   :  { %v4810_v37 = vpop.f32.mrb[89].mxu1 }
0x16b4   :  { %5044 = vrcp.f32 %v2595_v58  ;;  %v2798_v41 = vpop.f32.mrb[90].mxu1 }
0x16b5   :  { %v4811_v26 = vpop.f32.mrb[91].mxu1 }
0x16be   :  { %v5045_v53 = vpop.eup %5044 }
0x16bf   :  { %2646 = vperm.xlu1 %4977, %v5045_v53  }
0x16c3   :  { %2660 = vperm.xlu1 %4977, %v2657_v16  }
0x173e   :  { %v2647_v43 = vpop.permute.xlu1 %2646 }
0x173f   :  { %v2649_v24 = vmul.f32 %v2647_v43, %v2639_v35  ;;  %v6607_v43 = vld [vmem:[#allocation23_spill] sm:$0xff] }
0x1741   :  { %v2650_v17 = vadd.f32 %v2649_v24, %v5925_v2  ;;  %v6147_v24 = vadd.f32 %v2716_v18, %v6607_v43 }
0x1742   :  { %v2661_v50 = vpop.permute.xlu1 %2660 }
0x1743   :  { %v2656_v10 = vmul.f32 %v2654_v7, %v2650_v17  ;;  %v2663_v46 = vmul.f32 %v2661_v50, %v5925_v2  ;;  %v6608_v50 = vld [vmem:[#allocation24_spill] sm:$0xff] }
0x1745   :  { %v6112_v13 = vadd.f32 %v2663_v46, %v2656_v10 }
0x1747   :  { %v6116_v60 = vpack.c.bf16 %v6112_v13, %v6112_v13 }
0x1749   :  { %4359 = vmatmul.mubr.msk.bf16.vlgmr.msra.gmra.mrb[92].mxu0 %vm302_vm1, %v6116_v60  ;;  %4360 = vmatmul.mubr.msk.bf16.vlgmr.msra.gmra.mrb[92].mxu1 %vm302_vm1, %v6116_v60 }
0x174a   :  { %2888 = vmatpush1.bf16.msra.mxu0 %v5587_v56  ;;  %2919 = vmatprep.mubr.bf16.mxu0 %v6589_v47 }
0x174b   :  { %2889 = vmatprep.subr.bf16.mxu0 %v5590_v36  ;;  %4813 = vmatpush3.bf16.msra.mxu1 %v6601_v14 }
0x174c   :  { %4814 = vmatprep.subr.bf16.mxu1 %v6584_v9  ;;  %4816 = vmatprep.mubr.msk.bf16.mxu1 %vm5136_vm0, %v6584_v9 }
0x174e   :  { %2890 = vmatpush1.bf16.msra.mxu0 %v6602_v3 }
0x174f   :  { %4815 = vmatpush3.bf16.msra.mxu1 %v6603_v52  ;;  %4820 = vmatprep.subr.bf16.mxu0 %v6584_v9 }
0x1750   :  { %4828 = vmatprep.subr.bf16.mxu1 %v6584_v9 }
0x1751   :  { %4361 = vmatmul.mubr.msk.bf16.vlgmr.msra.gmra.mrb[96].mxu0 %vm302_vm1, %v6116_v60 }
0x1752   :  { %4821 = vmatpush3.bf16.msra.mxu0 %v6604_v63  ;;  %4824 = vmatprep.mubr.msk.bf16.mxu0 %vm5136_vm0, %v6584_v9 }
0x1753   :  { %4822 = vmatprep.subr.bf16.mxu0 %v6584_v9 }
0x1756   :  { %4823 = vmatpush3.bf16.msra.mxu0 %v6605_v44 }
0x1757   :  { %4836 = vmatprep.subr.bf16.mxu0 %v6584_v9 }
0x181c   :  { %v2839_v6 = vpop.f32.mrb[92].mxu0  ;;  %v2880_v11 = vpop.f32.mrb[92].mxu1 }
0x181d   :  { %v2928_v62 = vadd.f32 %v2839_v6, %v6142_v31  ;;  %v2841_v32 = vpop.f32.mrb[93].mxu0  ;;  %v2882_v58 = vpop.f32.mrb[93].mxu1 }
0x181e   :  { %v2931_v37 = vadd.f32 %v2882_v58, %v5633_v40  ;;  %v2843_v41 = vpop.f32.mrb[94].mxu0  ;;  %v2884_v26 = vpop.f32.mrb[94].mxu1  ;;  %v2929_v17 = vadd.f32 %v2841_v32, %v6147_v24 }
0x181f   :  { %v2844_v53 = vpop.f32.mrb[95].mxu0  ;;  %v2885_v16 = vpop.f32.mrb[95].mxu1 }
0x1820   :  { %v2934_v7 = vadd.f32 %v2931_v37, %v2928_v62  ;;  %v6609_v53 = vld [vmem:[#allocation25_spill] sm:$0xff] }
0x1821   :  { %v6153_v18 = vadd.f32 %v6104_v5, %v6609_v53 }
0x1822   :  { %v4362_v35 = vmul.f32 -1.442695, %v2934_v7 }
0x1823   :  { %v2930_v7 = vadd.f32 %v2880_v11, %v6153_v18  ;;  %v6168_v11 = vld [vmem:[%s6508_s0 + $0x200] ss:$0 sm:$0xff] }
0x1824   :  { %5046 = vpow2.f32 %v4362_v35  ;;  %v2921_v30 = vpop.f32.mrb[96].mxu0 }
0x1825   :  { %v2932_v10 = vadd.f32 %v2921_v30, %v6608_v50  ;;  %v2923_v46 = vpop.f32.mrb[97].mxu0 }
0x1826   :  { %v2925_v49 = vpop.f32.mrb[98].mxu0  ;;  %v2933_v16 = vadd.f32 %v2923_v46, %v5658_v38 }
0x1827   :  { %v2941_v6 = vadd.f32 %v2932_v10, %v2929_v17  ;;  %v2926_v2 = vpop.f32.mrb[99].mxu0 }
0x1829   :  { %v4363_v58 = vmul.f32 -1.442695, %v2941_v6 }
0x182b   :  { %5048 = vpow2.f32 %v4363_v58 }
0x182e   :  { %v5047_v41 = vpop.eup %5046 }
0x182f   :  { %v2938_v26 = vadd.f32 1.0, %v5047_v41 }
0x1831   :  { %5050 = vrcp.f32 %v2938_v26 }
0x1835   :  { %v5049_v62 = vpop.eup %5048 }
0x1836   :  { %v2945_v37 = vadd.f32 1.0, %v5049_v62 }
0x1838   :  { %5052 = vrcp.f32 %v2945_v37 }
0x183b   :  { %v5051_v32 = vpop.eup %5050 }
0x183c   :  { %v2948_v35 = vmul.f32 %v5051_v32, %v2933_v16 }
0x183e   :  { %v2949_v43 = vadd.f32 %v2948_v35, %v2930_v7 }
0x1840   :  { %5054 = vtanh.f32 %v2949_v43 }
0x1842   :  { %v5053_v2 = vpop.eup %5052 }
0x1843   :  { %v2951_v30 = vsub.f32 1.0, %v5053_v2  ;;  %v2953_v49 = vmul.f32 %v5053_v2, %v6112_v13 }
0x184a   :  { %v5055_v17 = vpop.eup %5054 }
0x184b   :  { %v2952_v10 = vmul.f32 %v5055_v17, %v2951_v30 }
0x184d   :  { %v2954_v6 = vadd.f32 %v2953_v49, %v2952_v10 }
0x184f   :  { %v2955_v58 = vpack.c.bf16 %v2954_v6, %v2954_v6 }
0x1851   :  { %4817 = vmatmul.mubr.msk.bf16.vlgmr.msra.gmra.mrb[96].mxu1 %vm302_vm1, %v2955_v58  ;;  %v6176_v58 = vld [vmem:[%s6508_s0 + $0x208] ss:$0 sm:$0xff] }
0x1852   :  { %4829 = vmatpush3.bf16.msra.mxu1 %v5704_v4  ;;  %4832 = vmatprep.mubr.msk.bf16.mxu1 %vm5136_vm0, %v6584_v9 }
0x1853   :  { %4830 = vmatprep.subr.bf16.mxu1 %v6584_v9 }
0x1856   :  { %4831 = vmatpush3.bf16.msra.mxu1 %v5729_v61 }
0x1857   :  { %3171 = vmatprep.subr.bf16.mxu1 %v5772_v57 }
0x1924   :  { %v2993_v5 = vpop.f32.mrb[96].mxu1 }
0x1925   :  { %v2994_v46 = vadd.f32 %v6168_v11, %v2993_v5  ;;  %v4818_v41 = vpop.f32.mrb[97].mxu1 }
0x1926   :  { %v2996_v26 = vpop.f32.mrb[98].mxu1  ;;  %v6182_v41 = vld [vmem:[%s6508_s0 + $0x210] ss:$0 sm:$0xff] }
0x1927   :  { %v4819_v62 = vpop.f32.mrb[99].mxu1  ;;  %v2999_v37 = vsel %vm346_vm2, %v2994_v46, 0.0  ;;  %v3003_v53 = vmul.f32 %v2994_v46, %v2994_v46 }
0x1928   :  { %3000 = vadd.xlane.f32.xlu1 %v2999_v37 }
0x1929   :  { %v3004_v16 = vsel %vm346_vm2, %v3003_v53, 0.0  ;;  %v6195_v53 = vld [vmem:[%s6508_s0 + $0x238] ss:$0 sm:$0xff] }
0x192a   :  { %3005 = vadd.xlane.f32.xlu0 %v3004_v16 }
0x19b5   :  { %v3001_v32 = vpop.xlane.xlu1 %3000 }
0x19b6   :  { %v3002_v7 = vmul.f32 0.03125, %v3001_v32 }
0x19b7   :  { %v3006_v35 = vpop.xlane.xlu0 %3005 }
0x19b8   :  { %v3008_v43 = vmul.f32 %v3002_v7, %v3002_v7  ;;  %v3007_v2 = vmul.f32 0.03125, %v3006_v35  ;;  %v3010_v10 = vsub.f32 %v2994_v46, %v3002_v7 }
0x19ba   :  { %v3009_v30 = vsub.f32 %v3007_v2, %v3008_v43  ;;  %v4303_v2 = vld [vmem:[%s6508_s0 + $0x278] ss:$0 sm:$0xff] }
0x19bc   :  { %v3011_v17 = vadd.f32 1e-05, %v3009_v30  ;;  %v6611_v30 = vld [vmem:[#allocation21_spill] sm:$0xff] }
0x19be   :  { %5056 = vrsqrt.f32 %v3011_v17  ;;  %v1206_v17 = vadd.f32 %v4303_v2, %v6611_v30 }
0x19c8   :  { %v5057_v49 = vpop.eup %5056 }
0x19c9   :  { %v3013_v6 = vmul.f32 %v5057_v49, %v3010_v10  ;;  %v4305_v10 = vmul.f32 -1.442695, %v1206_v17 }
0x19cb   :  { %v3014_v5 = vmul.f32 %v6176_v58, %v3013_v6  ;;  %5058 = vpow2.f32 %v4305_v10 }
0x19cd   :  { %v3015_v26 = vadd.f32 %v6182_v41, %v3014_v5 }
0x19cf   :  { %v3016_v62 = vmax.f32 %v3015_v26, 0.0 }
0x19d1   :  { %v3017_v37 = vpack.c.bf16 %v3016_v62, %v3016_v62 }
0x19d3   :  { %4825 = vmatmul.mubr.msk.bf16.vlgmr.msra.gmra.mrb[100].mxu0 %vm302_vm1, %v3017_v37 }
0x19d4   :  { %4837 = vmatpush3.bf16.msra.mxu0 %v5761_v8  ;;  %4840 = vmatprep.mubr.msk.bf16.mxu0 %vm5136_vm0, %v6584_v9 }
0x19d5   :  { %4838 = vmatprep.subr.bf16.mxu0 %v6584_v9  ;;  %v5059_v49 = vpop.eup %5058 }
0x19d6   :  { %v1214_v6 = vadd.f32 1.0, %v5059_v49 }
0x19d8   :  { %4839 = vmatpush3.bf16.msra.mxu0 %v5767_v19  ;;  %5060 = vrcp.f32 %v1214_v6 }
0x19d9   :  { %4844 = vmatprep.subr.bf16.mxu0 %v6584_v9 }
0x19e2   :  { %v6212_v5 = vpop.eup %5060 }
0x19e3   :  { %v2665_v26 = vsel %vm2085_vm5, %v6212_v5, 0.0 }
0x19e4   :  { %v2666_v62 = vrot.slane %v2665_v26, 4 }
0x19e6   :  { %v2667_v37 = vadd.f32 %v2666_v62, %v2665_v26 }
0x1aa6   :  { %v3055_v46 = vpop.f32.mrb[100].mxu0 }
0x1aa7   :  { %v6198_v16 = vadd.f32 %v6195_v53, %v3055_v46  ;;  %v4826_v32 = vpop.f32.mrb[101].mxu0  ;;  %v2668_v46 = vrot.slane %v2667_v37, 2 }
0x1aa8   :  { %v3058_v7 = vpop.f32.mrb[102].mxu0 }
0x1aa9   :  { %6610 = vst [vmem:[#allocation29_spill] sm:$0xff] %v6198_v16  ;;  %v3061_v35 = vpack.c.bf16 %v6198_v16, %v6198_v16  ;;  %v4827_v43 = vpop.f32.mrb[103].mxu0  ;;  %v6219_v7 = vld [vmem:[%s6508_s0 + $0x1a0] ss:$0 sm:$0xff]  ;;  %v2669_v49 = vadd.f32 %v2668_v46, %v2667_v37 }
0x1aab   :  { %4833 = vmatmul.mubr.msk.bf16.vlgmr.msra.gmra.mrb[100].mxu1 %vm302_vm1, %v3061_v35  ;;  %v2670_v26 = vrot.slane %v2669_v49, 1 }
0x1aac   :  { %3172 = vmatpush1.bf16.msra.mxu1 %v5774_v1  ;;  %3203 = vmatprep.mubr.bf16.mxu1 %v6589_v47 }
0x1aad   :  { %3173 = vmatprep.subr.bf16.mxu1 %v5817_v23  ;;  %v2671_v62 = vadd.f32 %v2670_v26, %v2669_v49 }
0x1aaf   :  { %v2672_v16 = vmul.f32 0.5, %v2671_v62 }
0x1ab0   :  { %3174 = vmatpush1.bf16.msra.mxu1 %v5819_v20 }
0x1ab1   :  { %4852 = vmatprep.subr.bf16.mxu1 %v6584_v9  ;;  %vm2673_vm7 = vcmp.le.f32.partialorder %v2672_v16, 0.9  ;;  %v6232_v16 = vld [vmem:[%s6508_s0 + $0x1a8] ss:$0 sm:$0xff] }
0x1ab2   :  { %v6225_v12 = vsel %vm2673_vm7, 1.0, %v6584_v9 }
0x1b7e   :  { %v3099_v32 = vpop.f32.mrb[100].mxu1 }
0x1b7f   :  { %v3100_v35 = vadd.f32 %v6219_v7, %v3099_v32  ;;  %v4834_v43 = vpop.f32.mrb[101].mxu1  ;;  %v3364_v32 = vsub.f32 1.0, %v6225_v12 }
0x1b80   :  { %v3102_v2 = vpop.f32.mrb[102].mxu1 }
0x1b81   :  { %v4835_v30 = vpop.f32.mrb[103].mxu1  ;;  %v3105_v17 = vsel %vm346_vm2, %v3100_v35, 0.0  ;;  %v3109_v10 = vmul.f32 %v3100_v35, %v3100_v35 }
0x1b82   :  { %3106 = vadd.xlane.f32.xlu0 %v3105_v17 }
0x1b83   :  { %v3110_v6 = vsel %vm346_vm2, %v3109_v10, 0.0 }
0x1b84   :  { %3111 = vadd.xlane.f32.xlu1 %v3110_v6 }
0x1b95   :  { %3360 = vperm.xlu1 %4977, %v6225_v12  }
0x1b99   :  { %3367 = vperm.xlu1 %4977, %v3364_v32   ;;  %v6238_v32 = vld [vmem:[%s6508_s0 + $0x1b0] ss:$0 sm:$0xff] }
0x1c0f   :  { %v3107_v43 = vpop.xlane.xlu0 %3106 }
0x1c10   :  { %v3108_v2 = vmul.f32 0.03125, %v3107_v43 }
0x1c11   :  { %v3112_v30 = vpop.xlane.xlu1 %3111 }
0x1c12   :  { %v3114_v37 = vmul.f32 %v3108_v2, %v3108_v2  ;;  %v3113_v46 = vmul.f32 0.03125, %v3112_v30  ;;  %v3116_v6 = vsub.f32 %v3100_v35, %v3108_v2  ;;  %v6259_v2 = vld [vmem:[%s6508_s0 + $0x1d8] ss:$0 sm:$0xff] }
0x1c14   :  { %v3115_v17 = vsub.f32 %v3113_v46, %v3114_v37 }
0x1c16   :  { %v3117_v10 = vadd.f32 1e-05, %v3115_v17 }
0x1c18   :  { %5062 = vrsqrt.f32 %v3117_v10 }
0x1c22   :  { %v5063_v49 = vpop.eup %5062 }
0x1c23   :  { %v3119_v26 = vmul.f32 %v5063_v49, %v3116_v6 }
0x1c25   :  { %v3120_v62 = vmul.f32 %v6232_v16, %v3119_v26 }
0x1c27   :  { %v3121_v43 = vadd.f32 %v6238_v32, %v3120_v62 }
0x1c29   :  { %v3122_v30 = vmax.f32 %v3121_v43, 0.0 }
0x1c2b   :  { %v3123_v37 = vpack.c.bf16 %v3122_v30, %v3122_v30 }
0x1c2d   :  { %4841 = vmatmul.mubr.msk.bf16.vlgmr.msra.gmra.mrb[104].mxu0 %vm302_vm1, %v3123_v37 }
0x1c2e   :  { %4845 = vmatpush3.bf16.msra.mxu0 %v5796_v28  ;;  %4848 = vmatprep.mubr.msk.bf16.mxu0 %vm5136_vm0, %v6584_v9 }
0x1c2f   :  { %4846 = vmatprep.subr.bf16.mxu0 %v6584_v9 }
0x1c32   :  { %4847 = vmatpush3.bf16.msra.mxu0 %v5806_v27 }
0x1c33   :  { %4860 = vmatprep.subr.bf16.mxu0 %v6584_v9 }
0x1c35   :  { %4849 = vmatmul.mubr.msk.bf16.vlgmr.msra.gmra.mrb[108].mxu0 %vm302_vm1, %v6116_v60 }
0x1c36   :  { %4861 = vmatpush3.bf16.msra.mxu0 %v5839_v29  ;;  %4864 = vmatprep.mubr.msk.bf16.mxu0 %vm5136_vm0, %v6584_v9 }
0x1c37   :  { %4862 = vmatprep.subr.bf16.mxu0 %v6584_v9 }
0x1c3a   :  { %4863 = vmatpush3.bf16.msra.mxu0 %v5859_v51 }
0x1c3b   :  { %4876 = vmatprep.subr.bf16.mxu0 %v6584_v9 }
0x1d00   :  { %v3161_v35 = vpop.f32.mrb[104].mxu0 }
0x1d01   :  { %v3162_v46 = vadd.f32 %v6259_v2, %v3161_v35  ;;  %v4842_v60 = vpop.f32.mrb[105].mxu0 }
0x1d02   :  { %v3164_v17 = vpop.f32.mrb[106].mxu0 }
0x1d03   :  { %v3167_v10 = vpack.c.bf16 %v3162_v46, %v3162_v46  ;;  %v4843_v6 = vpop.f32.mrb[107].mxu0  ;;  %v6272_v46 = vld [vmem:[%s6508_s0 + $0x2d0] ss:$0 sm:$0xff] }
0x1d04   :  { %6612 = vst [vmem:[#allocation15_spill] sm:$0xff] %v6272_v46 }
0x1d05   :  { %4368 = vmatmul.mubr.msk.bf16.vlgmr.msra.gmra.mrb[104].mxu1 %vm302_vm1, %v3167_v10  ;;  %v6278_v10 = vld [vmem:[%s6508_s0 + $0x2a0] ss:$0 sm:$0xff] }
0x1d06   :  { %4853 = vmatpush3.bf16.msra.mxu1 %v5847_v15  ;;  %4856 = vmatprep.mubr.msk.bf16.mxu1 %vm5136_vm0, %v6584_v9  ;;  %6613 = vst [vmem:[#allocation10_spill] sm:$0xff] %v6278_v10 }
0x1d07   :  { %4854 = vmatprep.subr.bf16.mxu1 %v6584_v9 }
0x1d08   :  { %v3246_v49 = vpop.f32.mrb[108].mxu0 }
0x1d09   :  { %v4850_v26 = vpop.f32.mrb[109].mxu0 }
0x1d0a   :  { %v3249_v62 = vpop.f32.mrb[110].mxu0  ;;  %4855 = vmatpush3.bf16.msra.mxu1 %v5867_v0 }
0x1d0b   :  { %v4851_v43 = vpop.f32.mrb[111].mxu0  ;;  %4868 = vmatprep.subr.bf16.mxu1 %v6584_v9 }
0x1dd8   :  { %v3205_v30 = vpop.f32.mrb[104].mxu1 }
0x1dd9   :  { %v3252_v37 = vadd.f32 %v3246_v49, %v3205_v30  ;;  %v3207_v35 = vpop.f32.mrb[105].mxu1 }
0x1dda   :  { %v3305_v60 = vadd.f32 %v6272_v46, %v3207_v35  ;;  %v3209_v17 = vpop.f32.mrb[106].mxu1  ;;  %v6615_v35 = vld [vmem:[#allocation30_spill] sm:$0xff]  ;;  %v6304_v46 = vld [vmem:[%s6508_s0 + $0x2f8] ss:$0 sm:$0xff] }
0x1ddb   :  { %v3253_v6 = vadd.f32 %v6278_v10, %v3252_v37  ;;  %v3210_v26 = vpop.f32.mrb[107].mxu1  ;;  %v6616_v37 = vld [vmem:[#allocation34_spill] sm:$0xff] }
0x1ddc   :  { %v3306_v62 = vmax.f32 %v3305_v60, 0.0  ;;  %v6617_v60 = vld [vmem:[#allocation31_spill] sm:$0xff] }
0x1ddd   :  { %v3254_v43 = vmax.f32 %v3253_v6, 0.0 }
0x1dde   :  { %v3307_v49 = vpack.c.bf16 %v3306_v62, %v3306_v62  ;;  %v6298_v62 = vld [vmem:[%s6508_s0 + $0x2c8] ss:$0 sm:$0xff] }
0x1ddf   :  { %v3255_v30 = vpack.c.bf16 %v3254_v43, %v3254_v43 }
0x1de0   :  { %4865 = vmatmul.mubr.msk.bf16.vlgmr.msra.gmra.mrb[112].mxu0 %vm302_vm1, %v3307_v49 }
0x1de1   :  { %4857 = vmatmul.mubr.msk.bf16.vlgmr.msra.gmra.mrb[108].mxu1 %vm302_vm1, %v3255_v30  ;;  %4877 = vmatpush3.bf16.msra.mxu0 %v6614_v22 }
0x1de2   :  { %4869 = vmatpush3.bf16.msra.mxu1 %v6615_v35  ;;  %4872 = vmatprep.mubr.msk.bf16.mxu1 %vm5136_vm0, %v6584_v9 }
0x1de3   :  { %4870 = vmatprep.subr.bf16.mxu1 %v6584_v9  ;;  %4878 = vmatprep.subr.bf16.mxu0 %v6584_v9 }
0x1de4   :  { %4880 = vmatprep.mubr.msk.bf16.mxu0 %vm5136_vm0, %v6584_v9 }
0x1de5   :  { %4879 = vmatpush3.bf16.msra.mxu0 %v6616_v37 }
0x1de6   :  { %4871 = vmatpush3.bf16.msra.mxu1 %v6617_v60  ;;  %3521 = vmatprep.subr.bf16.mxu0 %v5494_v48 }
0x1de7   :  { %3480 = vmatprep.subr.bf16.mxu1 %v5569_v25 }
0x1eb3   :  { %v3345_v17 = vpop.f32.mrb[112].mxu0 }
0x1eb4   :  { %v3293_v6 = vpop.f32.mrb[108].mxu1  ;;  %v4866_v26 = vpop.f32.mrb[113].mxu0 }
0x1eb5   :  { %v3294_v43 = vadd.f32 %v6298_v62, %v3293_v6  ;;  %v4858_v49 = vpop.f32.mrb[109].mxu1  ;;  %v3348_v30 = vpop.f32.mrb[114].mxu0  ;;  %v3346_v6 = vadd.f32 %v6304_v46, %v3345_v17 }
0x1eb6   :  { %v3296_v22 = vpop.f32.mrb[110].mxu1  ;;  %v4867_v37 = vpop.f32.mrb[115].mxu0 }
0x1eb7   :  { %v4371_v35 = vmul.f32 -1.442695, %v3294_v43  ;;  %v4859_v60 = vpop.f32.mrb[111].mxu1  ;;  %v3361_v26 = vpop.permute.xlu1 %3360 }
0x1eb9   :  { %5064 = vpow2.f32 %v4371_v35 }
0x1ebb   :  { %v3368_v22 = vpop.permute.xlu1 %3367 }
0x1ebc   :  { %v3370_v35 = vmul.f32 %v3368_v22, %v6112_v13 }
0x1ec3   :  { %v5065_v48 = vpop.eup %5064 }
0x1ec4   :  { %v3302_v10 = vadd.f32 1.0, %v5065_v48 }
0x1ec6   :  { %5066 = vrcp.f32 %v3302_v10 }
0x1ed0   :  { %v5067_v25 = vpop.eup %5066 }
0x1ed1   :  { %3353 = vperm.xlu0 %4976, %v5067_v25  }
0x1f50   :  { %v3354_v49 = vpop.permute.xlu0 %3353 }
0x1f51   :  { %v3356_v30 = vmul.f32 %v3354_v49, %v3346_v6 }
0x1f53   :  { %v3357_v37 = vadd.f32 %v3356_v30, %v6112_v13 }
0x1f55   :  { %v3363_v60 = vmul.f32 %v3361_v26, %v3357_v37 }
0x1f57   :  { %v6309_v43 = vadd.f32 %v3370_v35, %v3363_v60 }
0x1f59   :  { %v6313_v10 = vpack.c.bf16 %v6309_v43, %v6309_v43 }
0x1f5b   :  { %4873 = vmatmul.mubr.msk.bf16.vlgmr.msra.gmra.mrb[112].mxu1 %vm302_vm1, %v6313_v10 }
0x1f5c   :  { %3481 = vmatpush1.bf16.msra.mxu1 %v5572_v33  ;;  %3512 = vmatprep.mubr.bf16.mxu1 %v6589_v47 }
0x1f5d   :  { %3482 = vmatprep.subr.bf16.mxu1 %v5575_v34 }
0x1f60   :  { %3483 = vmatpush1.bf16.msra.mxu1 %v5580_v42 }
0x1f61   :  { %3562 = vmatprep.subr.bf16.mxu1 %v5584_v45 }
0x1f63   :  { %4377 = vmatmul.mubr.msk.bf16.vlgmr.msra.gmra.mrb[116].mxu1 %vm302_vm1, %v6313_v10 }
0x1f64   :  { %3563 = vmatpush1.bf16.msra.mxu1 %v5587_v56  ;;  %3594 = vmatprep.mubr.bf16.mxu1 %v6589_v47  ;;  %v6341_v56 = vld [vmem:[%s6508_s0 + $0x340] ss:$0 sm:$0xff] }
0x1f65   :  { %3564 = vmatprep.subr.bf16.mxu1 %v5590_v36 }
0x1f68   :  { %3565 = vmatpush1.bf16.msra.mxu1 %v6602_v3 }
0x1f69   :  { %4892 = vmatprep.subr.bf16.mxu1 %v6584_v9 }
0x1f6b   :  { %4379 = vmatmul.mubr.msk.bf16.vlgmr.msra.gmra.mrb[120].mxu1 %vm302_vm1, %v6313_v10 }
0x1f6c   :  { %4893 = vmatpush3.bf16.msra.mxu1 %v6604_v63  ;;  %4896 = vmatprep.mubr.msk.bf16.mxu1 %vm5136_vm0, %v6584_v9 }
0x1f6d   :  { %4894 = vmatprep.subr.bf16.mxu1 %v6584_v9 }
0x1f70   :  { %4895 = vmatpush3.bf16.msra.mxu1 %v6605_v44 }
0x1f71   :  { %4908 = vmatprep.subr.bf16.mxu1 %v6584_v9 }
0x202e   :  { %v3410_v33 = vpop.f32.mrb[112].mxu1 }
0x202f   :  { %v3411_v34 = vadd.f32 %v3410_v33, %v6106_v39  ;;  %v4874_v42 = vpop.f32.mrb[113].mxu1 }
0x2030   :  { %v3413_v45 = vpop.f32.mrb[114].mxu1 }
0x2031   :  { %v3416_v36 = vadd.f32 %v6341_v56, %v3411_v34  ;;  %v4875_v3 = vpop.f32.mrb[115].mxu1 }
0x2033   :  { %v3417_v63 = vmax.f32 %v3416_v36, 0.0 }
0x2035   :  { %v3418_v17 = vpack.c.bf16 %v3417_v63, %v3417_v63 }
0x2036   :  { %v3514_v48 = vpop.f32.mrb[116].mxu1 }
0x2037   :  { %4881 = vmatmul.mubr.msk.bf16.vlgmr.msra.gmra.mrb[116].mxu0 %vm302_vm1, %v3418_v17  ;;  %v3516_v44 = vpop.f32.mrb[117].mxu1 }
0x2038   :  { %v3518_v25 = vpop.f32.mrb[118].mxu1  ;;  %3522 = vmatpush1.bf16.msra.mxu0 %v5497_v54  ;;  %3553 = vmatprep.mubr.bf16.mxu0 %v6589_v47  ;;  %v3604_v6 = vadd.f32 %v3516_v44, %v6147_v24 }
0x2039   :  { %v3519_v39 = vpop.f32.mrb[119].mxu1  ;;  %3523 = vmatprep.subr.bf16.mxu0 %v5500_v55 }
0x203c   :  { %3524 = vmatpush1.bf16.msra.mxu0 %v5505_v59 }
0x203d   :  { %4884 = vmatprep.subr.bf16.mxu0 %v6584_v9 }
0x203e   :  { %v3596_v26 = vpop.f32.mrb[120].mxu1 }
0x203f   :  { %v3607_v49 = vadd.f32 %v3596_v26, %v6608_v50  ;;  %4378 = vmatmul.mubr.msk.bf16.vlgmr.msra.gmra.mrb[120].mxu0 %vm302_vm1, %v6313_v10  ;;  %v3598_v30 = vpop.f32.mrb[121].mxu1 }
0x2040   :  { %v3600_v22 = vpop.f32.mrb[122].mxu1  ;;  %4885 = vmatpush3.bf16.msra.mxu0 %v6601_v14  ;;  %4888 = vmatprep.mubr.msk.bf16.mxu0 %vm5136_vm0, %v6584_v9  ;;  %v3603_v14 = vadd.f32 %v3514_v48, %v6142_v31  ;;  %v3608_v25 = vadd.f32 %v3598_v30, %v5658_v38 }
0x2041   :  { %v3616_v54 = vadd.f32 %v3607_v49, %v3604_v6  ;;  %v3601_v55 = vpop.f32.mrb[123].mxu1  ;;  %4886 = vmatprep.subr.bf16.mxu0 %v6584_v9 }
0x2043   :  { %v4381_v3 = vmul.f32 -1.442695, %v3616_v54 }
0x2044   :  { %4887 = vmatpush3.bf16.msra.mxu0 %v6603_v52 }
0x2045   :  { %4900 = vmatprep.subr.bf16.mxu0 %v6584_v9 }
0x210a   :  { %v6360_v59 = vpop.f32.mrb[116].mxu0 }
0x210b   :  { %v4882_v24 = vpop.f32.mrb[117].mxu0 }
0x210c   :  { %v3459_v50 = vpop.f32.mrb[118].mxu0 }
0x210d   :  { %v4883_v37 = vpop.f32.mrb[119].mxu0 }
0x2112   :  { %v3555_v35 = vpop.f32.mrb[120].mxu0 }
0x2113   :  { %v3557_v60 = vpop.f32.mrb[121].mxu0  ;;  %v3605_v31 = vadd.f32 %v3555_v35, %v6153_v18 }
0x2114   :  { %v3606_v33 = vadd.f32 %v3557_v60, %v5633_v40  ;;  %v3559_v34 = vpop.f32.mrb[122].mxu0 }
0x2115   :  { %v3560_v42 = vpop.f32.mrb[123].mxu0 }
0x2116   :  { %v3609_v45 = vadd.f32 %v3606_v33, %v3603_v14 }
0x2118   :  { %v4380_v36 = vmul.f32 -1.442695, %v3609_v45 }
0x211a   :  { %5068 = vpow2.f32 %v4380_v36 }
0x211b   :  { %5070 = vpow2.f32 %v4381_v3 }
0x2124   :  { %v5069_v52 = vpop.eup %5068 }
0x2125   :  { %v3613_v63 = vadd.f32 1.0, %v5069_v52  ;;  %v5071_v17 = vpop.eup %5070 }
0x2126   :  { %v3620_v44 = vadd.f32 1.0, %v5071_v17 }
0x2127   :  { %5072 = vrcp.f32 %v3613_v63 }
0x2128   :  { %5074 = vrcp.f32 %v3620_v44 }
0x2131   :  { %v5073_v39 = vpop.eup %5072 }
0x2132   :  { %v3623_v48 = vmul.f32 %v5073_v39, %v3608_v25  ;;  %v5075_v26 = vpop.eup %5074 }
0x2133   :  { %v3626_v6 = vsub.f32 1.0, %v5075_v26  ;;  %v3628_v54 = vmul.f32 %v5075_v26, %v6309_v43 }
0x2134   :  { %v3624_v40 = vadd.f32 %v3623_v48, %v3605_v31 }
0x2136   :  { %5076 = vtanh.f32 %v3624_v40 }
0x2140   :  { %v5077_v49 = vpop.eup %5076 }
0x2141   :  { %v3627_v22 = vmul.f32 %v5077_v49, %v3626_v6 }
0x2143   :  { %v3629_v55 = vadd.f32 %v3628_v54, %v3627_v22 }
0x2145   :  { %v3630_v24 = vpack.c.bf16 %v3629_v55, %v3629_v55 }
0x2147   :  { %4889 = vmatmul.mubr.msk.bf16.vlgmr.msra.gmra.mrb[124].mxu0 %vm302_vm1, %v3630_v24 }
0x2148   :  { %4901 = vmatpush3.bf16.msra.mxu0 %v5704_v4  ;;  %4904 = vmatprep.mubr.msk.bf16.mxu0 %vm5136_vm0, %v6584_v9 }
0x2149   :  { %4902 = vmatprep.subr.bf16.mxu0 %v6584_v9 }
0x214c   :  { %4903 = vmatpush3.bf16.msra.mxu0 %v5729_v61 }
0x214d   :  { %3846 = vmatprep.subr.bf16.mxu0 %v5772_v57 }
0x221a   :  { %v3668_v38 = vpop.f32.mrb[124].mxu0 }
0x221b   :  { %v3669_v18 = vadd.f32 %v6168_v11, %v3668_v38  ;;  %v4890_v30 = vpop.f32.mrb[125].mxu0 }
0x221c   :  { %v3671_v50 = vpop.f32.mrb[126].mxu0 }
0x221d   :  { %v4891_v37 = vpop.f32.mrb[127].mxu0  ;;  %v3674_v35 = vsel %vm346_vm2, %v3669_v18, 0.0  ;;  %v3678_v60 = vmul.f32 %v3669_v18, %v3669_v18 }
0x221e   :  { %3675 = vadd.xlane.f32.xlu0 %v3674_v35 }
0x221f   :  { %v3679_v4 = vsel %vm346_vm2, %v3678_v60, 0.0 }
0x2220   :  { %3680 = vadd.xlane.f32.xlu1 %v3679_v4  ;;  %v4236_v4 = vrot.slane %v6212_v5, 2 }
0x22ab   :  { %v3676_v14 = vpop.xlane.xlu0 %3675 }
0x22ac   :  { %v3677_v33 = vmul.f32 0.03125, %v3676_v14 }
0x22ad   :  { %v3681_v34 = vpop.xlane.xlu1 %3680 }
0x22ae   :  { %v3683_v42 = vmul.f32 %v3677_v33, %v3677_v33  ;;  %v3682_v61 = vmul.f32 0.03125, %v3681_v34  ;;  %v3685_v36 = vsub.f32 %v3669_v18, %v3677_v33 }
0x22b0   :  { %v3684_v45 = vsub.f32 %v3682_v61, %v3683_v42 }
0x22b2   :  { %v3686_v57 = vadd.f32 1e-05, %v3684_v45 }
0x22b4   :  { %5078 = vrsqrt.f32 %v3686_v57 }
0x22be   :  { %v5079_v11 = vpop.eup %5078 }
0x22bf   :  { %v3688_v3 = vmul.f32 %v5079_v11, %v3685_v36 }
0x22c1   :  { %v3689_v52 = vmul.f32 %v6176_v58, %v3688_v3 }
0x22c3   :  { %v3690_v63 = vadd.f32 %v6182_v41, %v3689_v52 }
0x22c5   :  { %v3691_v17 = vmax.f32 %v3690_v63, 0.0 }
0x22c7   :  { %v3692_v44 = vpack.c.bf16 %v3691_v17, %v3691_v17 }
0x22c9   :  { %4897 = vmatmul.mubr.msk.bf16.vlgmr.msra.gmra.mrb[124].mxu1 %vm302_vm1, %v3692_v44 }
0x22ca   :  { %4909 = vmatpush3.bf16.msra.mxu1 %v5761_v8  ;;  %4912 = vmatprep.mubr.msk.bf16.mxu1 %vm5136_vm0, %v6584_v9  ;;  %v6396_v8 = vld [vmem:[%s6508_s0 + $0x368] ss:$0 sm:$0xff] }
0x22cb   :  { %4910 = vmatprep.subr.bf16.mxu1 %v6584_v9 }
0x22ce   :  { %4911 = vmatpush3.bf16.msra.mxu1 %v5767_v19  ;;  %v3457_v19 = vadd.f32 %v6396_v8, %v6360_v59 }
0x22cf   :  { %4916 = vmatprep.subr.bf16.mxu1 %v6584_v9 }
0x239c   :  { %v3730_v25 = vpop.f32.mrb[124].mxu1 }
0x239d   :  { %v3731_v58 = vadd.f32 %v6195_v53, %v3730_v25  ;;  %v4898_v39 = vpop.f32.mrb[125].mxu1  ;;  %v4375_v53 = vmul.f32 -1.442695, %v3457_v19 }
0x239e   :  { %v3733_v41 = vpop.f32.mrb[126].mxu1  ;;  %v6618_v39 = vld [vmem:[#allocation15_spill] sm:$0xff] }
0x239f   :  { %v3736_v31 = vpack.c.bf16 %v3731_v58, %v3731_v58  ;;  %v4899_v48 = vpop.f32.mrb[127].mxu1  ;;  %5080 = vpow2.f32 %v4375_v53 }
0x23a1   :  { %4905 = vmatmul.mubr.msk.bf16.vlgmr.msra.gmra.mrb[128].mxu0 %vm302_vm1, %v3736_v31 }
0x23a2   :  { %3847 = vmatpush1.bf16.msra.mxu0 %v5774_v1  ;;  %3878 = vmatprep.mubr.bf16.mxu0 %v6589_v47 }
0x23a3   :  { %3848 = vmatprep.subr.bf16.mxu0 %v5817_v23 }
0x23a6   :  { %3849 = vmatpush1.bf16.msra.mxu0 %v5819_v20 }
0x23a7   :  { %4924 = vmatprep.subr.bf16.mxu0 %v6584_v9 }
0x23a9   :  { %v5081_v40 = vpop.eup %5080 }
0x23aa   :  { %v3465_v1 = vadd.f32 1.0, %v5081_v40 }
0x23ac   :  { %5082 = vrcp.f32 %v3465_v1 }
0x23b6   :  { %v5083_v47 = vpop.eup %5082 }
0x23b7   :  { %v3468_v23 = vsel %vm2085_vm5, %v5083_v47, 0.0 }
0x23b8   :  { %v3469_v26 = vrot.slane %v3468_v23, 4 }
0x23ba   :  { %v3470_v20 = vadd.f32 %v3469_v26, %v3468_v23  ;;  %v6620_v23 = vld [vmem:[#allocation30_spill] sm:$0xff]  ;;  %v6621_v26 = vld [vmem:[#allocation13_spill] sm:$0xff] }
0x23bc   :  { %v3471_v55 = vrot.slane %v3470_v20, 2 }
0x23be   :  { %v3472_v18 = vadd.f32 %v3471_v55, %v3470_v20  ;;  %v6622_v20 = vld [vmem:[#allocation6_spill] sm:$0xff]  ;;  %v6625_v55 = vld [vmem:[#allocation33_spill] sm:$0xff] }
0x23c0   :  { %v3473_v50 = vrot.slane %v3472_v18, 1 }
0x23c2   :  { %v3474_v37 = vadd.f32 %v3473_v50, %v3472_v18 }
0x23c4   :  { %v3475_v35 = vmul.f32 0.5, %v3474_v37 }
0x23c6   :  { %vm3476_vm8 = vcmp.le.f32.partialorder %v3475_v35, 0.9 }
0x23c7   :  { %v4376_v60 = vsel %vm3476_vm8, 1.0, %v6584_v9 }
0x2474   :  { %v3774_v6 = vpop.f32.mrb[128].mxu0 }
0x2475   :  { %v3775_v49 = vadd.f32 %v6219_v7, %v3774_v6  ;;  %v4906_v22 = vpop.f32.mrb[129].mxu0  ;;  %v6406_v7 = vmul.f32 %v4376_v60, %v6225_v12 }
0x2476   :  { %v3777_v54 = vpop.f32.mrb[130].mxu0  ;;  %v6624_v22 = vld [vmem:[#allocation14_spill] sm:$0xff] }
0x2477   :  { %v4907_v24 = vpop.f32.mrb[131].mxu0  ;;  %v3780_v38 = vsel %vm346_vm2, %v3775_v49, 0.0  ;;  %v3784_v59 = vmul.f32 %v3775_v49, %v3775_v49 }
0x2478   :  { %3781 = vadd.xlane.f32.xlu0 %v3780_v38  ;;  %v6626_v24 = vld [vmem:[#allocation34_spill] sm:$0xff] }
0x2479   :  { %v3785_v30 = vsel %vm346_vm2, %v3784_v59, 0.0  ;;  %vm4248_vm2 = vcmask 17408  }
0x247c   :  { %3786 = vadd.xlane.f32.xlu0 %v3785_v30 }
0x2492   :  { %4035 = vperm.xlu0 %4976, %v6406_v7  }
0x2496   :  { %4210 = vrot.lane.b32.xlu0 %v6112_v13, %s5138_s28 }
0x249a   :  { %4188 = vrot.lane.b32.xlu0 %v6020_v21, %s5139_s29 }
0x249e   :  { %4237 = vrot.lane.b32.xlu0 %v4236_v4, %s5140_s2 }
0x24a2   :  { %4196 = vrot.lane.b32.xlu0 %v3731_v58, %s5141_s30 }
0x2505   :  { %v3782_v14 = vpop.xlane.xlu0 %3781 }
0x2506   :  { %v3783_v12 = vmul.f32 0.03125, %v3782_v14 }
0x2508   :  { %v3789_v34 = vmul.f32 %v3783_v12, %v3783_v12  ;;  %v3791_v13 = vsub.f32 %v3775_v49, %v3783_v12  ;;  %v6623_v49 = vld [vmem:[#allocation31_spill] sm:$0xff] }
0x2509   :  { %v3787_v33 = vpop.xlane.xlu0 %3786 }
0x250a   :  { %v3788_v42 = vmul.f32 0.03125, %v3787_v33 }
0x250c   :  { %v3790_v61 = vsub.f32 %v3788_v42, %v3789_v34 }
0x250e   :  { %v3792_v45 = vadd.f32 1e-05, %v3790_v61 }
0x2510   :  { %5084 = vrsqrt.f32 %v3792_v45 }
0x251a   :  { %v5085_v57 = vpop.eup %5084 }
0x251b   :  { %v3794_v36 = vmul.f32 %v5085_v57, %v3791_v13  ;;  %v4039_v13 = vsub.f32 1.0, %v6406_v7  ;;  %v4299_v57 = vld [vmem:[%s6508_s0 + $0x178] ss:$0 sm:$0xff]  ;;  %v4036_v7 = vpop.permute.xlu0 %4035 }
0x251d   :  { %v3795_v21 = vmul.f32 %v6232_v16, %v3794_v36  ;;  %v6628_v36 = vld [vmem:[#allocation20_spill] sm:$0xff] }
0x251f   :  { %v3796_v11 = vadd.f32 %v6238_v32, %v3795_v21  ;;  %v1112_v21 = vadd.f32 %v4299_v57, %v6628_v36 }
0x2521   :  { %v3797_v3 = vmax.f32 %v3796_v11, 0.0  ;;  %v6629_v11 = vld [vmem:[#allocation29_spill] sm:$0xff] }
0x2523   :  { %v3798_v52 = vpack.c.bf16 %v3797_v3, %v3797_v3  ;;  %v1218_v3 = vrot.slane %v1112_v21, 2 }
0x2525   :  { %4913 = vmatmul.mubr.msk.bf16.vlgmr.msra.gmra.mrb[128].mxu1 %vm302_vm1, %v3798_v52  ;;  %v4211_v52 = vpop.permute.xlu0 %4210 }
0x2526   :  { %4917 = vmatpush3.bf16.msra.mxu1 %v5796_v28  ;;  %4920 = vmatprep.mubr.msk.bf16.mxu1 %vm5136_vm0, %v6584_v9 }
0x2527   :  { %4918 = vmatprep.subr.bf16.mxu1 %v6584_v9 }
0x252a   :  { %4919 = vmatpush3.bf16.msra.mxu1 %v5806_v27 }
0x252b   :  { %4932 = vmatprep.subr.bf16.mxu1 %v6584_v9 }
0x252d   :  { %4921 = vmatmul.mubr.msk.bf16.vlgmr.msra.gmra.mrb[132].mxu1 %vm302_vm1, %v6313_v10 }
0x252e   :  { %4933 = vmatpush3.bf16.msra.mxu1 %v5839_v29  ;;  %4936 = vmatprep.mubr.msk.bf16.mxu1 %vm5136_vm0, %v6584_v9 }
0x252f   :  { %4934 = vmatprep.subr.bf16.mxu1 %v6584_v9 }
0x2532   :  { %4935 = vmatpush3.bf16.msra.mxu1 %v5859_v51 }
0x2533   :  { %4948 = vmatprep.subr.bf16.mxu1 %v6584_v9 }
0x25f8   :  { %v3836_v28 = vpop.f32.mrb[128].mxu1 }
0x25f9   :  { %v3837_v16 = vadd.f32 %v6259_v2, %v3836_v28  ;;  %v4914_v27 = vpop.f32.mrb[129].mxu1 }
0x25fa   :  { %v3839_v32 = vpop.f32.mrb[130].mxu1 }
0x25fb   :  { %v3842_v63 = vpack.c.bf16 %v3837_v16, %v3837_v16  ;;  %v4915_v17 = vpop.f32.mrb[131].mxu1 }
0x25fc   :  { %v5142_v17 = vmov 1983009808  }
0x25fd   :  { %4386 = vmatmul.mubr.msk.bf16.vlgmr.msra.gmra.mrb[132].mxu0 %vm302_vm1, %v3842_v63 }
0x25fe   :  { %4925 = vmatpush3.bf16.msra.mxu0 %v5847_v15  ;;  %4928 = vmatprep.mubr.msk.bf16.mxu0 %vm5136_vm0, %v6584_v9  ;;  %v6619_v15 = vld [vmem:[#allocation10_spill] sm:$0xff] }
0x25ff   :  { %4926 = vmatprep.subr.bf16.mxu0 %v6584_v9 }
0x2600   :  { %v3921_v29 = vpop.f32.mrb[132].mxu1 }
0x2601   :  { %v4922_v51 = vpop.f32.mrb[133].mxu1 }
0x2602   :  { %v3924_v10 = vpop.f32.mrb[134].mxu1  ;;  %4927 = vmatpush3.bf16.msra.mxu0 %v5867_v0  ;;  %v4277_v0 = vld [vmem:[%s6508_s0 + $0xb8] ss:$0 sm:$0xff]  ;;  %v4189_v51 = vpop.permute.xlu0 %4188 }
0x2603   :  { %v4923_v44 = vpop.f32.mrb[135].mxu1  ;;  %4940 = vmatprep.subr.bf16.mxu0 %v6584_v9  ;;  %v539_v6 = vadd.f32 %v4277_v0, %v6622_v20 }
0x2605   :  { %v4048_v54 = vpack.c.bf16 %v539_v6, %v539_v6 }
0x26d0   :  { %v3880_v2 = vpop.f32.mrb[132].mxu0 }
0x26d1   :  { %v3927_v25 = vadd.f32 %v3921_v29, %v3880_v2  ;;  %v3882_v58 = vpop.f32.mrb[133].mxu0  ;;  %v4224_v29 = vunpack.c.l.s4 %v5142_v17 }
0x26d2   :  { %v3980_v41 = vadd.f32 %v6618_v39, %v3882_v58  ;;  %v3884_v31 = vpop.f32.mrb[134].mxu0 }
0x26d3   :  { %v3928_v48 = vadd.f32 %v6619_v15, %v3927_v25  ;;  %v3885_v19 = vpop.f32.mrb[135].mxu0  ;;  %v4225_v58 = vunpack.c.0.s8 %v4224_v29 }
0x26d4   :  { %v3981_v53 = vmax.f32 %v3980_v41, 0.0  ;;  %v6630_v41 = vld [vmem:[#allocation7_spill] sm:$0xff] }
0x26d5   :  { %v3929_v40 = vmax.f32 %v3928_v48, 0.0  ;;  %v6631_v48 = vld [vmem:[#allocation8_spill] sm:$0xff] }
0x26d6   :  { %v3982_v1 = vpack.c.bf16 %v3981_v53, %v3981_v53  ;;  %v4228_v19 = vsub.s32 %v4225_v58, %v6631_v48 }
0x26d7   :  { %v3930_v47 = vpack.c.bf16 %v3929_v40, %v3929_v40 }
0x26d8   :  { %4937 = vmatmul.mubr.msk.bf16.vlgmr.msra.gmra.mrb[136].mxu1 %vm302_vm1, %v3982_v1  ;;  %v6632_v1 = vld [vmem:[#allocation28_spill] sm:$0xff] }
0x26d9   :  { %4929 = vmatmul.mubr.msk.bf16.vlgmr.msra.gmra.mrb[136].mxu0 %vm302_vm1, %v3930_v47  ;;  %4949 = vmatpush3.bf16.msra.mxu1 %v6620_v23  ;;  %v4199_v47 = vsel %vm302_vm1, %v6632_v1, %v4189_v51 }
0x26da   :  { %4941 = vmatpush3.bf16.msra.mxu0 %v6621_v26  ;;  %4944 = vmatprep.mubr.msk.bf16.mxu0 %vm5136_vm0, %v6584_v9 }
0x26db   :  { %4942 = vmatprep.subr.bf16.mxu0 %v6584_v9  ;;  %4950 = vmatprep.subr.bf16.mxu1 %v6584_v9 }
0x26dc   :  { %4952 = vmatprep.mubr.msk.bf16.mxu1 %vm5136_vm0, %v6584_v9 }
0x26dd   :  { %4951 = vmatpush3.bf16.msra.mxu1 %v6623_v49 }
0x26de   :  { %4943 = vmatpush3.bf16.msra.mxu0 %v6624_v22 }
0x26df   :  { %4956 = vmatprep.subr.bf16.mxu0 %v6584_v9 }
0x26e1   :  { %4945 = vmatmul.mubr.msk.bf16.vlgmr.msra.gmra.mrb[140].mxu0 %vm302_vm1, %v4048_v54 }
0x26e2   :  { %4957 = vmatpush3.bf16.msra.mxu0 %v6625_v55  ;;  %4960 = vmatprep.mubr.msk.bf16.mxu0 %vm5136_vm0, %v6584_v9  ;;  %vm4246_vm0 = vcmask 15360  }
0x26e3   :  { %4958 = vmatprep.subr.bf16.mxu0 %v6584_v9 }
0x26e6   :  { %4959 = vmatpush3.bf16.msra.mxu0 %v6626_v24 }
0x27ab   :  { %v4020_v38 = vpop.f32.mrb[136].mxu1 }
0x27ac   :  { %v3968_v59 = vpop.f32.mrb[136].mxu0  ;;  %v4938_v18 = vpop.f32.mrb[137].mxu1  ;;  %v4021_v28 = vadd.f32 %v6304_v46, %v4020_v38 }
0x27ad   :  { %v3969_v30 = vadd.f32 %v6298_v62, %v3968_v59  ;;  %v4930_v50 = vpop.f32.mrb[137].mxu0  ;;  %v4023_v37 = vpop.f32.mrb[138].mxu1  ;;  %v6627_v62 = vld [vmem:[#allocation32_spill] sm:$0xff] }
0x27ae   :  { %v3971_v35 = vpop.f32.mrb[138].mxu0  ;;  %v4939_v60 = vpop.f32.mrb[139].mxu1 }
0x27af   :  { %v4389_v4 = vmul.f32 -1.442695, %v3969_v30  ;;  %v4931_v14 = vpop.f32.mrb[139].mxu0  ;;  %v4238_v46 = vpop.permute.xlu0 %4237 }
0x27b1   :  { %5086 = vpow2.f32 %v4389_v4 }
0x27b3   :  { %v4197_v26 = vpop.permute.xlu0 %4196 }
0x27b4   :  { %v4086_v12 = vpop.f32.mrb[140].mxu0 }
0x27b5   :  { %v4946_v33 = vpop.f32.mrb[141].mxu0 }
0x27b6   :  { %v4089_v34 = vpop.f32.mrb[142].mxu0 }
0x27b7   :  { %v4947_v42 = vpop.f32.mrb[143].mxu0 }
0x27bb   :  { %v5087_v61 = vpop.eup %5086 }
0x27bc   :  { %v3977_v9 = vadd.f32 1.0, %v5087_v61 }
0x27be   :  { %5088 = vrcp.f32 %v3977_v9 }
0x27c8   :  { %v5089_v45 = vpop.eup %5088 }
0x27c9   :  { %4028 = vperm.xlu1 %4977, %v5089_v45  }
0x27cd   :  { %4042 = vperm.xlu1 %4977, %v4039_v13  }
0x27d1   :  { %4206 = vrot.lane.b32.xlu1 %v6627_v62, %s5139_s29 }
0x27d5   :  { %4214 = vrot.lane.b32.xlu1 %v6309_v43, %s5141_s30 }
0x27d9   :  { %4192 = vrot.lane.b32.xlu1 %v6629_v11, %s5138_s28 }
0x27dd   :  { %1219 = vrot.lane.b32.xlu1 %v1218_v3, %s5139_s29 }
0x2848   :  { %v4029_v16 = vpop.permute.xlu1 %4028 }
0x2849   :  { %v4031_v27 = vmul.f32 %v4029_v16, %v4021_v28 }
0x284b   :  { %v4032_v32 = vadd.f32 %v4031_v27, %v6309_v43 }
0x284c   :  { %v4043_v63 = vpop.permute.xlu1 %4042 }
0x284d   :  { %v4038_v10 = vmul.f32 %v4036_v7, %v4032_v32  ;;  %v4045_v44 = vmul.f32 %v4043_v63, %v6309_v43 }
0x284f   :  { %v4046_v2 = vadd.f32 %v4045_v44, %v4038_v10 }
0x2850   :  { %v4207_v25 = vpop.permute.xlu1 %4206 }
0x2851   :  { %v4047_v39 = vpack.c.bf16 %v4046_v2, %v4046_v2  ;;  %v4217_v31 = vsel %vm302_vm1, %v6630_v41, %v4207_v25 }
0x2852   :  { %v4218_v15 = vsel %vm4200_vm9, %v4217_v31, %v4211_v52 }
0x2853   :  { %4953 = vmatmul.mubr.msk.bf16.vlgmr.msra.gmra.mrb[140].mxu1 %vm302_vm1, %v4047_v39 }
0x2854   :  { %v4215_v53 = vpop.permute.xlu1 %4214 }
0x2855   :  { %v4219_v43 = vsel %vm4202_vm10, %v4218_v15, %v4215_v53 }
0x2856   :  { %v4222_v40 = vcombine.low %v4219_v43, %v4046_v2 }
0x2858   :  { %v4229_v0 = vrot.slane %v4222_v40, %v4228_v19  ;;  %v4193_v23 = vpop.permute.xlu1 %4192 }
0x2859   :  { %v4201_v20 = vsel %vm4200_vm9, %v4199_v47, %v4193_v23 }
0x285a   :  { %4234 = vst.msk [vmem:[%s6513_s5] sm:$0xf] %vm4233_vm13, %v4229_v0  ;;  %v4203_v6 = vsel %vm4202_vm10, %v4201_v20, %v4197_v26 }
0x285b   :  { %4204 = vst [vmem:[%s6512_s4] sm:$0x3] %v4203_v6  ;;  %s5143_s4 = smov 2  }
0x285c   :  { %v1220_v49 = vpop.permute.xlu1 %1219 }
0x285d   :  { %v1222_v22 = vsel %vm302_vm1, %v1112_v21, %v1220_v49 }
0x285e   :  { %1224 = vst.msk [vmem:[%s6514_s6] sm:$0x3] %vm1223_vm14, %v1222_v22 }
0x2926   :  { %v4129_v54 = vpop.f32.mrb[140].mxu1 }
0x2927   :  { %v4130_v55 = vadd.f32 %v4129_v54, %v4086_v12  ;;  %v4954_v24 = vpop.f32.mrb[141].mxu1 }
0x2928   :  { %v4132_v38 = vpop.f32.mrb[142].mxu1 }
0x2929   :  { %v4135_v59 = vadd.f32 %v6341_v56, %v4130_v55  ;;  %v4955_v18 = vpop.f32.mrb[143].mxu1  ;;  %v4245_v56 = vsel %vm4244_vm15, %v6212_v5, %v4238_v46 }
0x292b   :  { %v4136_v30 = vmax.f32 %v4135_v59, 0.0 }
0x292d   :  { %v4137_v50 = vpack.c.bf16 %v4136_v30, %v4136_v30 }
0x292f   :  { %4961 = vmatmul.mubr.msk.bf16.vlgmr.msra.gmra.mrb[144].mxu0 %vm302_vm1, %v4137_v50 }
0x2a02   :  { %v4175_v37 = vpop.f32.mrb[144].mxu0 }
0x2a03   :  { %v4176_v35 = vadd.f32 %v6396_v8, %v4175_v37  ;;  %v4962_v60 = vpop.f32.mrb[145].mxu0 }
0x2a04   :  { %v4178_v4 = vpop.f32.mrb[146].mxu0 }
0x2a05   :  { %v4394_v14 = vmul.f32 -1.442695, %v4176_v35  ;;  %v4963_v33 = vpop.f32.mrb[147].mxu0 }
0x2a07   :  { %5090 = vpow2.f32 %v4394_v14 }
0x2a11   :  { %v5091_v34 = vpop.eup %5090 }
0x2a12   :  { %v4184_v42 = vadd.f32 1.0, %v5091_v34 }
0x2a14   :  { %5092 = vrcp.f32 %v4184_v42 }
0x2a1e   :  { %v5093_v12 = vpop.eup %5092 }
0x2a1f   :  { %4241 = vrot.lane.b32.xlu1 %v5093_v12, %s5143_s4 }
0x2a91   :  { %v4242_v61 = vpop.permute.xlu1 %4241 }
0x2a92   :  { %v4247_v9 = vsel %vm4246_vm0, %v4245_v56, %v4242_v61 }
0x2a93   :  { %4249 = vst.msk [vmem:[%s6515_s7] sm:$0x3] %vm4248_vm2, %v4247_v9 }
0x2a94   :  { %4266 = vsyncpa [#allocation4], 1 }

</bundles_post_ra>
